<compile_context>
chip_gen: v7x
topology: tpu7x:2x2x1
jax: 0.10.0
libtpu: 0.0.40
codegen_flags: <defaults>
</compile_context>

<pallas_src>
import functools

import jax
import jax.numpy as jnp
from jax.experimental import pallas as pl
from jax.experimental.pallas import tpu as pltpu

LANE = 128
SUBLANE = 8

# Matmul-operand dtype.  Keep f32 for the toy-config numerical check; use
# jnp.bfloat16 on v6e/v7x at scale (accumulation stays f32 via
# preferred_element_type, gate nonlinearities and c/h state stay f32).
MXU_DTYPE = jnp.float32

VMEM_LIMIT_BYTES = 32 * 1024 * 1024  # explicit scoped-VMEM budget (safe on v5e..v7x)


def _round_up(x, m):
    return ((x + m - 1) // m) * m


def _full_spec(shape):
    ndim = len(shape)
    return pl.BlockSpec(shape, lambda i: (0,) * ndim)


# -----------------------------------------------------------------------------
# Kernel 1: all LSTM layers (recurrence is inherently serial -> single grid
# step, everything VMEM-resident).  Gate order follows PyTorch: i, f, g, o,
# with each gate occupying its own lane-aligned H_pad-wide block.
# -----------------------------------------------------------------------------
def _lstm_layers_kernel(num_layers, seq_len, batch_pad, x_ref, *args):
    """Ref layout after x_ref:
         [wih_0, whh_0, b_0, ..., wih_{L-1}, whh_{L-1}, b_{L-1},
          out_ref, hs_scratch]
       x_ref  : (T*Bp, E_pad)       time-major flattened embedded inputs
       wih_l  : (in_pad, 4*H_pad)   pre-transposed, gate-block-padded
       whh_l  : (H_pad, 4*H_pad)
       b_l    : (1, 4*H_pad)        fused bias (b_ih + b_hh), gate-block-padded
       out_ref: (T*Bp, H_pad)       last layer's hidden states
       hs_sc  : (T*Bp, H_pad)       VMEM scratch for intermediate layers
    """
    n_w = 3 * num_layers
    w_refs = args[:n_w]
    out_ref = args[n_w]
    hs_sc = args[n_w + 1]

    act = x_ref[...]                                       # (T*Bp, in_pad)
    for layer in range(num_layers):
        wih = w_refs[3 * layer][...]                       # (in_pad, 4*H_pad)
        whh = w_refs[3 * layer + 1][...]                   # (H_pad, 4*H_pad)
        bias = w_refs[3 * layer + 2][...]                  # (1, 4*H_pad)
        hp = whh.shape[0]                                  # H_pad
        # Last layer writes straight to the output ref; intermediate layers
        # write to the VMEM scratch which becomes the next layer's input.
        dst = out_ref if layer == num_layers - 1 else hs_sc

        # Input projection for ALL timesteps at once (one big MXU matmul).
        gx = jnp.dot(act.astype(MXU_DTYPE), wih.astype(MXU_DTYPE),
                     preferred_element_type=jnp.float32) + bias

        whh_mm = whh.astype(MXU_DTYPE)                     # hoisted (no per-step cast)
        h = jnp.zeros((batch_pad, hp), jnp.float32)
        c = jnp.zeros((batch_pad, hp), jnp.float32)

        # Sequential recurrence, statically unrolled (seq_len is small).
        # TODO(synk): for long sequences use lax.fori_loop(unroll=2..4) with
        #             ref[pl.ds(pl.multiple_of(t * batch_pad, 8), batch_pad)].
        for t in range(seq_len):
            row = t * batch_pad                            # 8-row aligned
            gates = gx[row:row + batch_pad, :] + jnp.dot(
                h.astype(MXU_DTYPE), whh_mm,
                preferred_element_type=jnp.float32)        # (Bp, 4*H_pad)
            # Lane-aligned whole-vreg gate slices (H_pad is a lane multiple).
            i_g = jax.nn.sigmoid(gates[:, 0 * hp:1 * hp])
            f_g = jax.nn.sigmoid(gates[:, 1 * hp:2 * hp])
            g_g = jnp.tanh(gates[:, 2 * hp:3 * hp])
            o_g = jax.nn.sigmoid(gates[:, 3 * hp:4 * hp])
            c = f_g * c + i_g * g_g
            h = o_g * jnp.tanh(c)
            dst[row:row + batch_pad, :] = h                # unmasked full-tile store

        if layer < num_layers - 1:
            act = hs_sc[...]                               # (T*Bp, H_pad)


# -----------------------------------------------------------------------------
# Kernel 2: tiled output Linear (lane-dense out tiles, parallel grid ->
# DMA/compute overlap + megacore sharding on v7x, VMEM bounded at large V).
# -----------------------------------------------------------------------------
def _linear_kernel(x_ref, w_ref, b_ref, o_ref):
    o_ref[...] = jnp.dot(x_ref[...].astype(MXU_DTYPE),
                         w_ref[...].astype(MXU_DTYPE),
                         preferred_element_type=jnp.float32) + b_ref[...]


# -----------------------------------------------------------------------------
# Forward pass
# -----------------------------------------------------------------------------
def vanilla_lstm_forward(prepared, data_ids):
    """prepared: output of prepare_params(). data_ids: (B, T) int32.
    Returns logits (B, T, words_num) float32."""
    B, T = data_ids.shape
    Bp = _round_up(B, SUBLANE)

    emb = prepared["embedding"]                   # (V, E_pad)
    E_pad = emb.shape[1]
    V = emb.shape[0]                              # unpadded vocab
    lin_w = prepared["linear_w_t"]                # (H_pad, V_pad)
    lin_b = prepared["linear_b"]                  # (1, V_pad)
    H_pad, V_pad = lin_w.shape
    layers = prepared["layers"]
    num_layers = len(layers)

    # Embedding gather stays in plain JAX (XLA gather), time-major + batch
    # padded to a sublane multiple, flattened to 2-D rows.
    # TODO(synk): fold the gather into the kernel via
    #             PrefetchScalarGridSpec(num_scalar_prefetch=1) + pl.Element
    #             row index_map once T*B*E is large enough to matter.
    ids_tm = jnp.transpose(data_ids)                              # (T, B)
    ids_tm = jnp.pad(ids_tm, ((0, 0), (0, Bp - B)))               # (T, Bp)
    x2d = emb[ids_tm].reshape(T * Bp, E_pad)                      # (T*Bp, E_pad)

    flat_w = []
    for lyr in layers:
        flat_w += [lyr["wih_t"], lyr["whh_t"], lyr["bias"]]

    lstm_kernel = functools.partial(_lstm_layers_kernel, num_layers, T, Bp)
    hs2d = pl.pallas_call(
        lstm_kernel,
        out_shape=jax.ShapeDtypeStruct((T * Bp, H_pad), jnp.float32),
        grid=(1,),
        in_specs=[_full_spec(x2d.shape)] + [_full_spec(w.shape) for w in flat_w],
        out_specs=_full_spec((T * Bp, H_pad)),
        scratch_shapes=[pltpu.VMEM((T * Bp, H_pad), jnp.float32)],
        compiler_params=pltpu.CompilerParams(
            dimension_semantics=("arbitrary",),
            vmem_limit_bytes=VMEM_LIMIT_BYTES),
    )(x2d, *flat_w)

    # Tiled, lane-dense, parallel output Linear.
    M = T * Bp                                   # multiple of 8
    TILE_M = M if M <= 256 else 256
    while M % TILE_M:
        TILE_M -= SUBLANE
    TILE_V = V_pad if V_pad <= 512 else 512
    while V_pad % TILE_V:
        TILE_V -= LANE

    out2d = pl.pallas_call(
        _linear_kernel,
        out_shape=jax.ShapeDtypeStruct((M, V_pad), jnp.float32),
        grid=(M // TILE_M, V_pad // TILE_V),
        in_specs=[pl.BlockSpec((TILE_M, H_pad), lambda i, j: (i, 0)),
                  pl.BlockSpec((H_pad, TILE_V), lambda i, j: (0, j)),
                  pl.BlockSpec((1, TILE_V), lambda i, j: (0, j))],
        out_specs=pl.BlockSpec((TILE_M, TILE_V), lambda i, j: (i, j)),
        compiler_params=pltpu.CompilerParams(
            dimension_semantics=("parallel", "parallel"),
            vmem_limit_bytes=VMEM_LIMIT_BYTES),
    )(hs2d, lin_w, lin_b)

    out = out2d.reshape(T, Bp, V_pad).transpose(1, 0, 2)  # (Bp, T, V_pad)
    return out[:B, :, :V]                                 # drop padding


# -----------------------------------------------------------------------------
# Parameter prep: transpose + pad weights ONCE (torch layout -> kernel layout).
# Padding uses zeros everywhere, which keeps padded hidden/cell lanes exactly
# zero through the recurrence (f=i=o=sigmoid(0), g=tanh(0)=0 -> c_pad=h_pad=0),
# so results on the valid lanes are unchanged.
# -----------------------------------------------------------------------------
def _pad_gate_mat(w, in_pad, H, H_pad):
    """w: (4H, in) torch layout -> (in_pad, 4*H_pad), gate k at cols
    [k*H_pad, k*H_pad + H)."""
    in_dim = w.shape[1]
    out = jnp.zeros((in_pad, 4 * H_pad), jnp.float32)
    for k in range(4):
        out = out.at[:in_dim, k * H_pad:k * H_pad + H].set(
            jnp.transpose(w[k * H:(k + 1) * H, :]))
    return out


def _pad_gate_vec(b, H, H_pad):
    out = jnp.zeros((1, 4 * H_pad), jnp.float32)
    for k in range(4):
        out = out.at[0, k * H_pad:k * H_pad + H].set(b[k * H:(k + 1) * H])
    return out


def prepare_params(params):
    emb = params["embedding"]
    V, E = emb.shape
    H = params["lstm"][0]["w_hh"].shape[1]
    E_pad = _round_up(E, LANE)
    H_pad = _round_up(H, LANE)
    V_pad = _round_up(V, LANE)

    layers = []
    for li, lyr in enumerate(params["lstm"]):
        in_pad = E_pad if li == 0 else H_pad
        layers.append({
            "wih_t": _pad_gate_mat(lyr["w_ih"], in_pad, H, H_pad),
            "whh_t": _pad_gate_mat(lyr["w_hh"], H_pad, H, H_pad),
            "bias": _pad_gate_vec(lyr["b_ih"] + lyr["b_hh"], H, H_pad),
        })

    emb_p = jnp.zeros((V, E_pad), jnp.float32).at[:, :E].set(emb)
    lin_w = jnp.zeros((H_pad, V_pad), jnp.float32).at[:H, :V].set(
        jnp.transpose(params["linear_w"]))
    lin_b = jnp.zeros((1, V_pad), jnp.float32).at[0, :V].set(params["linear_b"])

    return {"embedding": emb_p, "layers": layers,
            "linear_w_t": lin_w, "linear_b": lin_b}


# -----------------------------------------------------------------------------
# Pure-JAX reference (torch-convention weights) for validation
# -----------------------------------------------------------------------------
def vanilla_lstm_reference(params, data_ids):
    x = params["embedding"][data_ids]              # (B, T, E)
    B, T, _ = x.shape
    for layer in params["lstm"]:
        H = layer["w_hh"].shape[1]
        w_ih, w_hh = layer["w_ih"], layer["w_hh"]
        b = layer["b_ih"] + layer["b_hh"]

        def step(carry, xt):
            h, c = carry
            gates = xt @ w_ih.T + h @ w_hh.T + b
            i = jax.nn.sigmoid(gates[:, 0 * H:1 * H])
            f = jax.nn.sigmoid(gates[:, 1 * H:2 * H])
            g = jnp.tanh(gates[:, 2 * H:3 * H])
            o = jax.nn.sigmoid(gates[:, 3 * H:4 * H])
            c = f * c + i * g
            h = o * jnp.tanh(c)
            return (h, c), h

        h0 = jnp.zeros((B, H), jnp.float32)
        c0 = jnp.zeros((B, H), jnp.float32)
        _, hs = jax.lax.scan(step, (h0, c0), jnp.transpose(x, (1, 0, 2)))
        x = jnp.transpose(hs, (1, 0, 2))           # (B, T, H)
    return x @ params["linear_w"].T + params["linear_b"]


# -----------------------------------------------------------------------------
# Deterministic parameter init (shapes match nn.Embedding / nn.LSTM / nn.Linear)
# -----------------------------------------------------------------------------
def init_params(key, words_num, embedding_dim, hidden_size, num_layers):
    keys = jax.random.split(key, 3 + 4 * num_layers)
    params = {
        "embedding": jax.random.normal(
            keys[0], (words_num, embedding_dim), jnp.float32) * 0.1,
        "linear_w": jax.random.normal(
            keys[1], (words_num, hidden_size), jnp.float32) * 0.1,
        "linear_b": jax.random.normal(keys[2], (words_num,), jnp.float32) * 0.1,
        "lstm": [],
    }
    for l in range(num_layers):
        in_dim = embedding_dim if l == 0 else hidden_size
        k = keys[3 + 4 * l:3 + 4 * (l + 1)]
        params["lstm"].append({
            "w_ih": jax.random.normal(
                k[0], (4 * hidden_size, in_dim), jnp.float32) * 0.1,
            "w_hh": jax.random.normal(
                k[1], (4 * hidden_size, hidden_size), jnp.float32) * 0.1,
            "b_ih": jax.random.normal(
                k[2], (4 * hidden_size,), jnp.float32) * 0.1,
            "b_hh": jax.random.normal(
                k[3], (4 * hidden_size,), jnp.float32) * 0.1,
        })
    return params


if __name__ == "__main__":
    WORDS_NUM = 64
    EMBEDDING_DIM = 32
    HIDDEN_SIZE = 32
    NUM_LAYERS = 2
    B, T = 2, 8

    root = jax.random.PRNGKey(0)
    k_params, k_data = jax.random.split(root)
    params = init_params(k_params, WORDS_NUM, EMBEDDING_DIM, HIDDEN_SIZE,
                         NUM_LAYERS)
    prepared = prepare_params(params)
    data_ids = jax.random.randint(k_data, (B, T), 0, WORDS_NUM,
                                  dtype=jnp.int32)

    fwd = jax.jit(vanilla_lstm_forward)
    out = jax.block_until_ready(fwd(prepared, data_ids))

    ref = jax.block_until_ready(vanilla_lstm_reference(params, data_ids))

    assert out.shape == (B, T, WORDS_NUM), out.shape
    max_err = float(jnp.max(jnp.abs(out - ref)))
    assert jnp.allclose(out, ref, atol=1e-4, rtol=1e-4), max_err

    print("KERNEL_OK")
</pallas_src>

<mosaic_0001>
module attributes {stable_mosaic.version = 11 : i64} {
  func.func @_linear_kernel(%arg0: i32, %arg1: i32, %arg2: memref<64x128xf32, #tpu.memory_space<vmem>>, %arg3: memref<128x128xf32, #tpu.memory_space<vmem>>, %arg4: memref<1x128xf32, #tpu.memory_space<vmem>>, %arg5: memref<64x128xf32, #tpu.memory_space<vmem>>) attributes {dimension_semantics = [#tpu.dimension_semantics<parallel>, #tpu.dimension_semantics<parallel>], iteration_bounds = array<i64: 1, 1>, scalar_prefetch = 0 : i64, scratch_operands = 0 : i64, tpu.core_type = #tpu.core_type<tc>, window_params = [{transform_indices = @transform_0, window_bounds = array<i64: 64, 128>}, {transform_indices = @transform_1, window_bounds = array<i64: 128, 128>}, {transform_indices = @transform_2, window_bounds = array<i64: 1, 128>}, {transform_indices = @transform_3, window_bounds = array<i64: 64, 128>}]} {
    %c0 = arith.constant 0 : index
    %c0_0 = arith.constant 0 : index
    %0 = vector.load %arg2[%c0, %c0_0] : memref<64x128xf32, #tpu.memory_space<vmem>>, vector<64x128xf32>
    %c0_1 = arith.constant 0 : index
    %c0_2 = arith.constant 0 : index
    %1 = vector.load %arg3[%c0_1, %c0_2] : memref<128x128xf32, #tpu.memory_space<vmem>>, vector<128x128xf32>
    %cst = arith.constant dense<0.000000e+00> : vector<64x128xf32>
    %2 = tpu.matmul %0, %1, %cst {dimension_numbers = #tpu.dot_dimension_numbers<[1], [0], [0], [1], [0, 0, 1, 1], [], []>} : vector<64x128xf32>, vector<128x128xf32>, vector<64x128xf32> -> vector<64x128xf32>
    %c0_3 = arith.constant 0 : index
    %c0_4 = arith.constant 0 : index
    %3 = vector.load %arg4[%c0_3, %c0_4] : memref<1x128xf32, #tpu.memory_space<vmem>>, vector<1x128xf32>
    %4 = vector.broadcast %3 : vector<1x128xf32> to vector<64x128xf32>
    %5 = arith.addf %2, %4 : vector<64x128xf32>
    %c0_5 = arith.constant 0 : index
    %c0_6 = arith.constant 0 : index
    %6 = vector.load %arg5[%c0_5, %c0_6] : memref<64x128xf32, #tpu.memory_space<vmem>>, vector<64x128xf32>
    tpu.vector_store %arg5[%c0_5, %c0_6], %5 {strides = array<i32>} : memref<64x128xf32, #tpu.memory_space<vmem>>, vector<64x128xf32>,
    return
  }
  func.func @transform_0(%arg0: i32, %arg1: i32) -> (i32, i32) {
    %c0_i32 = arith.constant 0 : i32
    %c0_i32_0 = arith.constant 0 : i32
    return %arg0, %c0_i32 : i32, i32
  }
  func.func @transform_1(%arg0: i32, %arg1: i32) -> (i32, i32) {
    %c0_i32 = arith.constant 0 : i32
    %c0_i32_0 = arith.constant 0 : i32
    return %c0_i32, %arg1 : i32, i32
  }
  func.func @transform_2(%arg0: i32, %arg1: i32) -> (i32, i32) {
    %c0_i32 = arith.constant 0 : i32
    %c0_i32_0 = arith.constant 0 : i32
    return %c0_i32, %arg1 : i32, i32
  }
  func.func @transform_3(%arg0: i32, %arg1: i32) -> (i32, i32) {
    %c0_i32 = arith.constant 0 : i32
    return %arg0, %arg1 : i32, i32
  }
}

module attributes {stable_mosaic.version = 11 : i64} {
  func.func @_lstm_layers_kernel(%arg0: i32, %arg1: memref<64x128xf32, #tpu.memory_space<vmem>>, %arg2: memref<128x512xf32, #tpu.memory_space<vmem>>, %arg3: memref<128x512xf32, #tpu.memory_space<vmem>>, %arg4: memref<1x512xf32, #tpu.memory_space<vmem>>, %arg5: memref<128x512xf32, #tpu.memory_space<vmem>>, %arg6: memref<128x512xf32, #tpu.memory_space<vmem>>, %arg7: memref<1x512xf32, #tpu.memory_space<vmem>>, %arg8: memref<64x128xf32, #tpu.memory_space<vmem>>, %arg9: memref<64x128xf32, #tpu.memory_space<vmem>>) attributes {dimension_semantics = [#tpu.dimension_semantics<arbitrary>], iteration_bounds = array<i64: 1>, scalar_prefetch = 0 : i64, scratch_operands = 1 : i64, tpu.core_type = #tpu.core_type<tc>, window_params = [{pipeline_mode = #tpu.pipeline_mode<synchronous>, transform_indices = @transform_0, window_bounds = array<i64: 64, 128>}, {pipeline_mode = #tpu.pipeline_mode<synchronous>, transform_indices = @transform_1, window_bounds = array<i64: 128, 512>}, {pipeline_mode = #tpu.pipeline_mode<synchronous>, transform_indices = @transform_2, window_bounds = array<i64: 128, 512>}, {pipeline_mode = #tpu.pipeline_mode<synchronous>, transform_indices = @transform_3, window_bounds = array<i64: 1, 512>}, {pipeline_mode = #tpu.pipeline_mode<synchronous>, transform_indices = @transform_4, window_bounds = array<i64: 128, 512>}, {pipeline_mode = #tpu.pipeline_mode<synchronous>, transform_indices = @transform_5, window_bounds = array<i64: 128, 512>}, {pipeline_mode = #tpu.pipeline_mode<synchronous>, transform_indices = @transform_6, window_bounds = array<i64: 1, 512>}, {pipeline_mode = #tpu.pipeline_mode<synchronous>, transform_indices = @transform_7, window_bounds = array<i64: 64, 128>}]} {
    %c0 = arith.constant 0 : index
    %c0_0 = arith.constant 0 : index
    %0 = vector.load %arg1[%c0, %c0_0] : memref<64x128xf32, #tpu.memory_space<vmem>>, vector<64x128xf32>
    %c0_1 = arith.constant 0 : index
    %c0_2 = arith.constant 0 : index
    %1 = vector.load %arg2[%c0_1, %c0_2] : memref<128x512xf32, #tpu.memory_space<vmem>>, vector<128x512xf32>
    %c0_3 = arith.constant 0 : index
    %c0_4 = arith.constant 0 : index
    %2 = vector.load %arg3[%c0_3, %c0_4] : memref<128x512xf32, #tpu.memory_space<vmem>>, vector<128x512xf32>
    %c0_5 = arith.constant 0 : index
    %c0_6 = arith.constant 0 : index
    %3 = vector.load %arg4[%c0_5, %c0_6] : memref<1x512xf32, #tpu.memory_space<vmem>>, vector<1x512xf32>
    %cst = arith.constant dense<0.000000e+00> : vector<64x512xf32>
    %4 = tpu.matmul %0, %1, %cst {dimension_numbers = #tpu.dot_dimension_numbers<[1], [0], [0], [1], [0, 0, 1, 1], [], []>} : vector<64x128xf32>, vector<128x512xf32>, vector<64x512xf32> -> vector<64x512xf32>
    %5 = vector.broadcast %3 : vector<1x512xf32> to vector<64x512xf32>
    %6 = arith.addf %4, %5 : vector<64x512xf32>
    %cst_7 = arith.constant 0.000000e+00 : f32
    %7 = vector.broadcast %cst_7 : f32 to vector<8x128xf32>
    %cst_8 = arith.constant 0.000000e+00 : f32
    %8 = vector.broadcast %cst_8 : f32 to vector<8x128xf32>
    %9 = vector.extract_strided_slice %6 {offsets = [0, 0], sizes = [8, 512], strides = [1, 1]} : vector<64x512xf32> to vector<8x512xf32>
    %cst_9 = arith.constant dense<0.000000e+00> : vector<8x512xf32>
    %10 = tpu.matmul %7, %2, %cst_9 {dimension_numbers = #tpu.dot_dimension_numbers<[1], [0], [0], [1], [0, 0, 1, 1], [], []>} : vector<8x128xf32>, vector<128x512xf32>, vector<8x512xf32> -> vector<8x512xf32>
    %11 = arith.addf %9, %10 : vector<8x512xf32>
    %12 = vector.extract_strided_slice %11 {offsets = [0, 0], sizes = [8, 128], strides = [1, 1]} : vector<8x512xf32> to vector<8x128xf32>
    %13 = arith.negf %12 : vector<8x128xf32>
    %14 = math.exp %13 : vector<8x128xf32>
    %cst_10 = arith.constant 1.000000e+00 : f32
    %15 = vector.broadcast %cst_10 : f32 to vector<8x128xf32>
    %16 = arith.addf %15, %14 : vector<8x128xf32>
    %17 = arith.divf %15, %16 : vector<8x128xf32>
    %18 = vector.extract_strided_slice %11 {offsets = [0, 128], sizes = [8, 128], strides = [1, 1]} : vector<8x512xf32> to vector<8x128xf32>
    %19 = arith.negf %18 : vector<8x128xf32>
    %20 = math.exp %19 : vector<8x128xf32>
    %cst_11 = arith.constant 1.000000e+00 : f32
    %21 = vector.broadcast %cst_11 : f32 to vector<8x128xf32>
    %22 = arith.addf %21, %20 : vector<8x128xf32>
    %23 = arith.divf %21, %22 : vector<8x128xf32>
    %24 = vector.extract_strided_slice %11 {offsets = [0, 256], sizes = [8, 128], strides = [1, 1]} : vector<8x512xf32> to vector<8x128xf32>
    %25 = math.tanh %24 : vector<8x128xf32>
    %26 = vector.extract_strided_slice %11 {offsets = [0, 384], sizes = [8, 128], strides = [1, 1]} : vector<8x512xf32> to vector<8x128xf32>
    %27 = arith.negf %26 : vector<8x128xf32>
    %28 = math.exp %27 : vector<8x128xf32>
    %cst_12 = arith.constant 1.000000e+00 : f32
    %29 = vector.broadcast %cst_12 : f32 to vector<8x128xf32>
    %30 = arith.addf %29, %28 : vector<8x128xf32>
    %31 = arith.divf %29, %30 : vector<8x128xf32>
    %32 = arith.mulf %23, %8 : vector<8x128xf32>
    %33 = arith.mulf %17, %25 : vector<8x128xf32>
    %34 = arith.addf %32, %33 : vector<8x128xf32>
    %35 = math.tanh %34 : vector<8x128xf32>
    %36 = arith.mulf %31, %35 : vector<8x128xf32>
    %c0_13 = arith.constant 0 : index
    %c0_14 = arith.constant 0 : index
    %37 = vector.load %arg9[%c0_13, %c0_14] : memref<64x128xf32, #tpu.memory_space<vmem>>, vector<8x128xf32>
    tpu.vector_store %arg9[%c0_13, %c0_14], %36 {strides = array<i32>} : memref<64x128xf32, #tpu.memory_space<vmem>>, vector<8x128xf32>,
    %38 = vector.extract_strided_slice %6 {offsets = [8, 0], sizes = [8, 512], strides = [1, 1]} : vector<64x512xf32> to vector<8x512xf32>
    %cst_15 = arith.constant dense<0.000000e+00> : vector<8x512xf32>
    %39 = tpu.matmul %36, %2, %cst_15 {dimension_numbers = #tpu.dot_dimension_numbers<[1], [0], [0], [1], [0, 0, 1, 1], [], []>} : vector<8x128xf32>, vector<128x512xf32>, vector<8x512xf32> -> vector<8x512xf32>
    %40 = arith.addf %38, %39 : vector<8x512xf32>
    %41 = vector.extract_strided_slice %40 {offsets = [0, 0], sizes = [8, 128], strides = [1, 1]} : vector<8x512xf32> to vector<8x128xf32>
    %42 = arith.negf %41 : vector<8x128xf32>
    %43 = math.exp %42 : vector<8x128xf32>
    %cst_16 = arith.constant 1.000000e+00 : f32
    %44 = vector.broadcast %cst_16 : f32 to vector<8x128xf32>
    %45 = arith.addf %44, %43 : vector<8x128xf32>
    %46 = arith.divf %44, %45 : vector<8x128xf32>
    %47 = vector.extract_strided_slice %40 {offsets = [0, 128], sizes = [8, 128], strides = [1, 1]} : vector<8x512xf32> to vector<8x128xf32>
    %48 = arith.negf %47 : vector<8x128xf32>
    %49 = math.exp %48 : vector<8x128xf32>
    %cst_17 = arith.constant 1.000000e+00 : f32
    %50 = vector.broadcast %cst_17 : f32 to vector<8x128xf32>
    %51 = arith.addf %50, %49 : vector<8x128xf32>
    %52 = arith.divf %50, %51 : vector<8x128xf32>
    %53 = vector.extract_strided_slice %40 {offsets = [0, 256], sizes = [8, 128], strides = [1, 1]} : vector<8x512xf32> to vector<8x128xf32>
    %54 = math.tanh %53 : vector<8x128xf32>
    %55 = vector.extract_strided_slice %40 {offsets = [0, 384], sizes = [8, 128], strides = [1, 1]} : vector<8x512xf32> to vector<8x128xf32>
    %56 = arith.negf %55 : vector<8x128xf32>
    %57 = math.exp %56 : vector<8x128xf32>
    %cst_18 = arith.constant 1.000000e+00 : f32
    %58 = vector.broadcast %cst_18 : f32 to vector<8x128xf32>
    %59 = arith.addf %58, %57 : vector<8x128xf32>
    %60 = arith.divf %58, %59 : vector<8x128xf32>
    %61 = arith.mulf %52, %34 : vector<8x128xf32>
    %62 = arith.mulf %46, %54 : vector<8x128xf32>
    %63 = arith.addf %61, %62 : vector<8x128xf32>
    %64 = math.tanh %63 : vector<8x128xf32>
    %65 = arith.mulf %60, %64 : vector<8x128xf32>
    %c8 = arith.constant 8 : index
    %c0_19 = arith.constant 0 : index
    %66 = vector.load %arg9[%c8, %c0_19] : memref<64x128xf32, #tpu.memory_space<vmem>>, vector<8x128xf32>
    tpu.vector_store %arg9[%c8, %c0_19], %65 {strides = array<i32>} : memref<64x128xf32, #tpu.memory_space<vmem>>, vector<8x128xf32>,
    %67 = vector.extract_strided_slice %6 {offsets = [16, 0], sizes = [8, 512], strides = [1, 1]} : vector<64x512xf32> to vector<8x512xf32>
    %cst_20 = arith.constant dense<0.000000e+00> : vector<8x512xf32>
    %68 = tpu.matmul %65, %2, %cst_20 {dimension_numbers = #tpu.dot_dimension_numbers<[1], [0], [0], [1], [0, 0, 1, 1], [], []>} : vector<8x128xf32>, vector<128x512xf32>, vector<8x512xf32> -> vector<8x512xf32>
    %69 = arith.addf %67, %68 : vector<8x512xf32>
    %70 = vector.extract_strided_slice %69 {offsets = [0, 0], sizes = [8, 128], strides = [1, 1]} : vector<8x512xf32> to vector<8x128xf32>
    %71 = arith.negf %70 : vector<8x128xf32>
    %72 = math.exp %71 : vector<8x128xf32>
    %cst_21 = arith.constant 1.000000e+00 : f32
    %73 = vector.broadcast %cst_21 : f32 to vector<8x128xf32>
    %74 = arith.addf %73, %72 : vector<8x128xf32>
    %75 = arith.divf %73, %74 : vector<8x128xf32>
    %76 = vector.extract_strided_slice %69 {offsets = [0, 128], sizes = [8, 128], strides = [1, 1]} : vector<8x512xf32> to vector<8x128xf32>
    %77 = arith.negf %76 : vector<8x128xf32>
    %78 = math.exp %77 : vector<8x128xf32>
    %cst_22 = arith.constant 1.000000e+00 : f32
    %79 = vector.broadcast %cst_22 : f32 to vector<8x128xf32>
    %80 = arith.addf %79, %78 : vector<8x128xf32>
    %81 = arith.divf %79, %80 : vector<8x128xf32>
    %82 = vector.extract_strided_slice %69 {offsets = [0, 256], sizes = [8, 128], strides = [1, 1]} : vector<8x512xf32> to vector<8x128xf32>
    %83 = math.tanh %82 : vector<8x128xf32>
    %84 = vector.extract_strided_slice %69 {offsets = [0, 384], sizes = [8, 128], strides = [1, 1]} : vector<8x512xf32> to vector<8x128xf32>
    %85 = arith.negf %84 : vector<8x128xf32>
    %86 = math.exp %85 : vector<8x128xf32>
    %cst_23 = arith.constant 1.000000e+00 : f32
    %87 = vector.broadcast %cst_23 : f32 to vector<8x128xf32>
    %88 = arith.addf %87, %86 : vector<8x128xf32>
    %89 = arith.divf %87, %88 : vector<8x128xf32>
    %90 = arith.mulf %81, %63 : vector<8x128xf32>
    %91 = arith.mulf %75, %83 : vector<8x128xf32>
    %92 = arith.addf %90, %91 : vector<8x128xf32>
    %93 = math.tanh %92 : vector<8x128xf32>
    %94 = arith.mulf %89, %93 : vector<8x128xf32>
    %c16 = arith.constant 16 : index
    %c0_24 = arith.constant 0 : index
    %95 = vector.load %arg9[%c16, %c0_24] : memref<64x128xf32, #tpu.memory_space<vmem>>, vector<8x128xf32>
    tpu.vector_store %arg9[%c16, %c0_24], %94 {strides = array<i32>} : memref<64x128xf32, #tpu.memory_space<vmem>>, vector<8x128xf32>,
    %96 = vector.extract_strided_slice %6 {offsets = [24, 0], sizes = [8, 512], strides = [1, 1]} : vector<64x512xf32> to vector<8x512xf32>
    %cst_25 = arith.constant dense<0.000000e+00> : vector<8x512xf32>
    %97 = tpu.matmul %94, %2, %cst_25 {dimension_numbers = #tpu.dot_dimension_numbers<[1], [0], [0], [1], [0, 0, 1, 1], [], []>} : vector<8x128xf32>, vector<128x512xf32>, vector<8x512xf32> -> vector<8x512xf32>
    %98 = arith.addf %96, %97 : vector<8x512xf32>
    %99 = vector.extract_strided_slice %98 {offsets = [0, 0], sizes = [8, 128], strides = [1, 1]} : vector<8x512xf32> to vector<8x128xf32>
    %100 = arith.negf %99 : vector<8x128xf32>
    %101 = math.exp %100 : vector<8x128xf32>
    %cst_26 = arith.constant 1.000000e+00 : f32
    %102 = vector.broadcast %cst_26 : f32 to vector<8x128xf32>
    %103 = arith.addf %102, %101 : vector<8x128xf32>
    %104 = arith.divf %102, %103 : vector<8x128xf32>
    %105 = vector.extract_strided_slice %98 {offsets = [0, 128], sizes = [8, 128], strides = [1, 1]} : vector<8x512xf32> to vector<8x128xf32>
    %106 = arith.negf %105 : vector<8x128xf32>
    %107 = math.exp %106 : vector<8x128xf32>
    %cst_27 = arith.constant 1.000000e+00 : f32
    %108 = vector.broadcast %cst_27 : f32 to vector<8x128xf32>
    %109 = arith.addf %108, %107 : vector<8x128xf32>
    %110 = arith.divf %108, %109 : vector<8x128xf32>
    %111 = vector.extract_strided_slice %98 {offsets = [0, 256], sizes = [8, 128], strides = [1, 1]} : vector<8x512xf32> to vector<8x128xf32>
    %112 = math.tanh %111 : vector<8x128xf32>
    %113 = vector.extract_strided_slice %98 {offsets = [0, 384], sizes = [8, 128], strides = [1, 1]} : vector<8x512xf32> to vector<8x128xf32>
    %114 = arith.negf %113 : vector<8x128xf32>
    %115 = math.exp %114 : vector<8x128xf32>
    %cst_28 = arith.constant 1.000000e+00 : f32
    %116 = vector.broadcast %cst_28 : f32 to vector<8x128xf32>
    %117 = arith.addf %116, %115 : vector<8x128xf32>
    %118 = arith.divf %116, %117 : vector<8x128xf32>
    %119 = arith.mulf %110, %92 : vector<8x128xf32>
    %120 = arith.mulf %104, %112 : vector<8x128xf32>
    %121 = arith.addf %119, %120 : vector<8x128xf32>
    %122 = math.tanh %121 : vector<8x128xf32>
    %123 = arith.mulf %118, %122 : vector<8x128xf32>
    %c24 = arith.constant 24 : index
    %c0_29 = arith.constant 0 : index
    %124 = vector.load %arg9[%c24, %c0_29] : memref<64x128xf32, #tpu.memory_space<vmem>>, vector<8x128xf32>
    tpu.vector_store %arg9[%c24, %c0_29], %123 {strides = array<i32>} : memref<64x128xf32, #tpu.memory_space<vmem>>, vector<8x128xf32>,
    %125 = vector.extract_strided_slice %6 {offsets = [32, 0], sizes = [8, 512], strides = [1, 1]} : vector<64x512xf32> to vector<8x512xf32>
    %cst_30 = arith.constant dense<0.000000e+00> : vector<8x512xf32>
    %126 = tpu.matmul %123, %2, %cst_30 {dimension_numbers = #tpu.dot_dimension_numbers<[1], [0], [0], [1], [0, 0, 1, 1], [], []>} : vector<8x128xf32>, vector<128x512xf32>, vector<8x512xf32> -> vector<8x512xf32>
    %127 = arith.addf %125, %126 : vector<8x512xf32>
    %128 = vector.extract_strided_slice %127 {offsets = [0, 0], sizes = [8, 128], strides = [1, 1]} : vector<8x512xf32> to vector<8x128xf32>
    %129 = arith.negf %128 : vector<8x128xf32>
    %130 = math.exp %129 : vector<8x128xf32>
    %cst_31 = arith.constant 1.000000e+00 : f32
    %131 = vector.broadcast %cst_31 : f32 to vector<8x128xf32>
    %132 = arith.addf %131, %130 : vector<8x128xf32>
    %133 = arith.divf %131, %132 : vector<8x128xf32>
    %134 = vector.extract_strided_slice %127 {offsets = [0, 128], sizes = [8, 128], strides = [1, 1]} : vector<8x512xf32> to vector<8x128xf32>
    %135 = arith.negf %134 : vector<8x128xf32>
    %136 = math.exp %135 : vector<8x128xf32>
    %cst_32 = arith.constant 1.000000e+00 : f32
    %137 = vector.broadcast %cst_32 : f32 to vector<8x128xf32>
    %138 = arith.addf %137, %136 : vector<8x128xf32>
    %139 = arith.divf %137, %138 : vector<8x128xf32>
    %140 = vector.extract_strided_slice %127 {offsets = [0, 256], sizes = [8, 128], strides = [1, 1]} : vector<8x512xf32> to vector<8x128xf32>
    %141 = math.tanh %140 : vector<8x128xf32>
    %142 = vector.extract_strided_slice %127 {offsets = [0, 384], sizes = [8, 128], strides = [1, 1]} : vector<8x512xf32> to vector<8x128xf32>
    %143 = arith.negf %142 : vector<8x128xf32>
    %144 = math.exp %143 : vector<8x128xf32>
    %cst_33 = arith.constant 1.000000e+00 : f32
    %145 = vector.broadcast %cst_33 : f32 to vector<8x128xf32>
    %146 = arith.addf %145, %144 : vector<8x128xf32>
    %147 = arith.divf %145, %146 : vector<8x128xf32>
    %148 = arith.mulf %139, %121 : vector<8x128xf32>
    %149 = arith.mulf %133, %141 : vector<8x128xf32>
    %150 = arith.addf %148, %149 : vector<8x128xf32>
    %151 = math.tanh %150 : vector<8x128xf32>
    %152 = arith.mulf %147, %151 : vector<8x128xf32>
    %c32 = arith.constant 32 : index
    %c0_34 = arith.constant 0 : index
    %153 = vector.load %arg9[%c32, %c0_34] : memref<64x128xf32, #tpu.memory_space<vmem>>, vector<8x128xf32>
    tpu.vector_store %arg9[%c32, %c0_34], %152 {strides = array<i32>} : memref<64x128xf32, #tpu.memory_space<vmem>>, vector<8x128xf32>,
    %154 = vector.extract_strided_slice %6 {offsets = [40, 0], sizes = [8, 512], strides = [1, 1]} : vector<64x512xf32> to vector<8x512xf32>
    %cst_35 = arith.constant dense<0.000000e+00> : vector<8x512xf32>
    %155 = tpu.matmul %152, %2, %cst_35 {dimension_numbers = #tpu.dot_dimension_numbers<[1], [0], [0], [1], [0, 0, 1, 1], [], []>} : vector<8x128xf32>, vector<128x512xf32>, vector<8x512xf32> -> vector<8x512xf32>
    %156 = arith.addf %154, %155 : vector<8x512xf32>
    %157 = vector.extract_strided_slice %156 {offsets = [0, 0], sizes = [8, 128], strides = [1, 1]} : vector<8x512xf32> to vector<8x128xf32>
    %158 = arith.negf %157 : vector<8x128xf32>
    %159 = math.exp %158 : vector<8x128xf32>
    %cst_36 = arith.constant 1.000000e+00 : f32
    %160 = vector.broadcast %cst_36 : f32 to vector<8x128xf32>
    %161 = arith.addf %160, %159 : vector<8x128xf32>
    %162 = arith.divf %160, %161 : vector<8x128xf32>
    %163 = vector.extract_strided_slice %156 {offsets = [0, 128], sizes = [8, 128], strides = [1, 1]} : vector<8x512xf32> to vector<8x128xf32>
    %164 = arith.negf %163 : vector<8x128xf32>
    %165 = math.exp %164 : vector<8x128xf32>
    %cst_37 = arith.constant 1.000000e+00 : f32
    %166 = vector.broadcast %cst_37 : f32 to vector<8x128xf32>
    %167 = arith.addf %166, %165 : vector<8x128xf32>
    %168 = arith.divf %166, %167 : vector<8x128xf32>
    %169 = vector.extract_strided_slice %156 {offsets = [0, 256], sizes = [8, 128], strides = [1, 1]} : vector<8x512xf32> to vector<8x128xf32>
    %170 = math.tanh %169 : vector<8x128xf32>
    %171 = vector.extract_strided_slice %156 {offsets = [0, 384], sizes = [8, 128], strides = [1, 1]} : vector<8x512xf32> to vector<8x128xf32>
    %172 = arith.negf %171 : vector<8x128xf32>
    %173 = math.exp %172 : vector<8x128xf32>
    %cst_38 = arith.constant 1.000000e+00 : f32
    %174 = vector.broadcast %cst_38 : f32 to vector<8x128xf32>
    %175 = arith.addf %174, %173 : vector<8x128xf32>
    %176 = arith.divf %174, %175 : vector<8x128xf32>
    %177 = arith.mulf %168, %150 : vector<8x128xf32>
    %178 = arith.mulf %162, %170 : vector<8x128xf32>
    %179 = arith.addf %177, %178 : vector<8x128xf32>
    %180 = math.tanh %179 : vector<8x128xf32>
    %181 = arith.mulf %176, %180 : vector<8x128xf32>
    %c40 = arith.constant 40 : index
    %c0_39 = arith.constant 0 : index
    %182 = vector.load %arg9[%c40, %c0_39] : memref<64x128xf32, #tpu.memory_space<vmem>>, vector<8x128xf32>
    tpu.vector_store %arg9[%c40, %c0_39], %181 {strides = array<i32>} : memref<64x128xf32, #tpu.memory_space<vmem>>, vector<8x128xf32>,
    %183 = vector.extract_strided_slice %6 {offsets = [48, 0], sizes = [8, 512], strides = [1, 1]} : vector<64x512xf32> to vector<8x512xf32>
    %cst_40 = arith.constant dense<0.000000e+00> : vector<8x512xf32>
    %184 = tpu.matmul %181, %2, %cst_40 {dimension_numbers = #tpu.dot_dimension_numbers<[1], [0], [0], [1], [0, 0, 1, 1], [], []>} : vector<8x128xf32>, vector<128x512xf32>, vector<8x512xf32> -> vector<8x512xf32>
    %185 = arith.addf %183, %184 : vector<8x512xf32>
    %186 = vector.extract_strided_slice %185 {offsets = [0, 0], sizes = [8, 128], strides = [1, 1]} : vector<8x512xf32> to vector<8x128xf32>
    %187 = arith.negf %186 : vector<8x128xf32>
    %188 = math.exp %187 : vector<8x128xf32>
    %cst_41 = arith.constant 1.000000e+00 : f32
    %189 = vector.broadcast %cst_41 : f32 to vector<8x128xf32>
    %190 = arith.addf %189, %188 : vector<8x128xf32>
    %191 = arith.divf %189, %190 : vector<8x128xf32>
    %192 = vector.extract_strided_slice %185 {offsets = [0, 128], sizes = [8, 128], strides = [1, 1]} : vector<8x512xf32> to vector<8x128xf32>
    %193 = arith.negf %192 : vector<8x128xf32>
    %194 = math.exp %193 : vector<8x128xf32>
    %cst_42 = arith.constant 1.000000e+00 : f32
    %195 = vector.broadcast %cst_42 : f32 to vector<8x128xf32>
    %196 = arith.addf %195, %194 : vector<8x128xf32>
    %197 = arith.divf %195, %196 : vector<8x128xf32>
    %198 = vector.extract_strided_slice %185 {offsets = [0, 256], sizes = [8, 128], strides = [1, 1]} : vector<8x512xf32> to vector<8x128xf32>
    %199 = math.tanh %198 : vector<8x128xf32>
    %200 = vector.extract_strided_slice %185 {offsets = [0, 384], sizes = [8, 128], strides = [1, 1]} : vector<8x512xf32> to vector<8x128xf32>
    %201 = arith.negf %200 : vector<8x128xf32>
    %202 = math.exp %201 : vector<8x128xf32>
    %cst_43 = arith.constant 1.000000e+00 : f32
    %203 = vector.broadcast %cst_43 : f32 to vector<8x128xf32>
    %204 = arith.addf %203, %202 : vector<8x128xf32>
    %205 = arith.divf %203, %204 : vector<8x128xf32>
    %206 = arith.mulf %197, %179 : vector<8x128xf32>
    %207 = arith.mulf %191, %199 : vector<8x128xf32>
    %208 = arith.addf %206, %207 : vector<8x128xf32>
    %209 = math.tanh %208 : vector<8x128xf32>
    %210 = arith.mulf %205, %209 : vector<8x128xf32>
    %c48 = arith.constant 48 : index
    %c0_44 = arith.constant 0 : index
    %211 = vector.load %arg9[%c48, %c0_44] : memref<64x128xf32, #tpu.memory_space<vmem>>, vector<8x128xf32>
    tpu.vector_store %arg9[%c48, %c0_44], %210 {strides = array<i32>} : memref<64x128xf32, #tpu.memory_space<vmem>>, vector<8x128xf32>,
    %212 = vector.extract_strided_slice %6 {offsets = [56, 0], sizes = [8, 512], strides = [1, 1]} : vector<64x512xf32> to vector<8x512xf32>
    %cst_45 = arith.constant dense<0.000000e+00> : vector<8x512xf32>
    %213 = tpu.matmul %210, %2, %cst_45 {dimension_numbers = #tpu.dot_dimension_numbers<[1], [0], [0], [1], [0, 0, 1, 1], [], []>} : vector<8x128xf32>, vector<128x512xf32>, vector<8x512xf32> -> vector<8x512xf32>
    %214 = arith.addf %212, %213 : vector<8x512xf32>
    %215 = vector.extract_strided_slice %214 {offsets = [0, 0], sizes = [8, 128], strides = [1, 1]} : vector<8x512xf32> to vector<8x128xf32>
    %216 = arith.negf %215 : vector<8x128xf32>
    %217 = math.exp %216 : vector<8x128xf32>
    %cst_46 = arith.constant 1.000000e+00 : f32
    %218 = vector.broadcast %cst_46 : f32 to vector<8x128xf32>
    %219 = arith.addf %218, %217 : vector<8x128xf32>
    %220 = arith.divf %218, %219 : vector<8x128xf32>
    %221 = vector.extract_strided_slice %214 {offsets = [0, 128], sizes = [8, 128], strides = [1, 1]} : vector<8x512xf32> to vector<8x128xf32>
    %222 = arith.negf %221 : vector<8x128xf32>
    %223 = math.exp %222 : vector<8x128xf32>
    %cst_47 = arith.constant 1.000000e+00 : f32
    %224 = vector.broadcast %cst_47 : f32 to vector<8x128xf32>
    %225 = arith.addf %224, %223 : vector<8x128xf32>
    %226 = arith.divf %224, %225 : vector<8x128xf32>
    %227 = vector.extract_strided_slice %214 {offsets = [0, 256], sizes = [8, 128], strides = [1, 1]} : vector<8x512xf32> to vector<8x128xf32>
    %228 = math.tanh %227 : vector<8x128xf32>
    %229 = vector.extract_strided_slice %214 {offsets = [0, 384], sizes = [8, 128], strides = [1, 1]} : vector<8x512xf32> to vector<8x128xf32>
    %230 = arith.negf %229 : vector<8x128xf32>
    %231 = math.exp %230 : vector<8x128xf32>
    %cst_48 = arith.constant 1.000000e+00 : f32
    %232 = vector.broadcast %cst_48 : f32 to vector<8x128xf32>
    %233 = arith.addf %232, %231 : vector<8x128xf32>
    %234 = arith.divf %232, %233 : vector<8x128xf32>
    %235 = arith.mulf %226, %208 : vector<8x128xf32>
    %236 = arith.mulf %220, %228 : vector<8x128xf32>
    %237 = arith.addf %235, %236 : vector<8x128xf32>
    %238 = math.tanh %237 : vector<8x128xf32>
    %239 = arith.mulf %234, %238 : vector<8x128xf32>
    %c56 = arith.constant 56 : index
    %c0_49 = arith.constant 0 : index
    %240 = vector.load %arg9[%c56, %c0_49] : memref<64x128xf32, #tpu.memory_space<vmem>>, vector<8x128xf32>
    tpu.vector_store %arg9[%c56, %c0_49], %239 {strides = array<i32>} : memref<64x128xf32, #tpu.memory_space<vmem>>, vector<8x128xf32>,
    %c0_50 = arith.constant 0 : index
    %c0_51 = arith.constant 0 : index
    %241 = vector.load %arg9[%c0_50, %c0_51] : memref<64x128xf32, #tpu.memory_space<vmem>>, vector<64x128xf32>
    %c0_52 = arith.constant 0 : index
    %c0_53 = arith.constant 0 : index
    %242 = vector.load %arg5[%c0_52, %c0_53] : memref<128x512xf32, #tpu.memory_space<vmem>>, vector<128x512xf32>
    %c0_54 = arith.constant 0 : index
    %c0_55 = arith.constant 0 : index
    %243 = vector.load %arg6[%c0_54, %c0_55] : memref<128x512xf32, #tpu.memory_space<vmem>>, vector<128x512xf32>
    %c0_56 = arith.constant 0 : index
    %c0_57 = arith.constant 0 : index
    %244 = vector.load %arg7[%c0_56, %c0_57] : memref<1x512xf32, #tpu.memory_space<vmem>>, vector<1x512xf32>
    %cst_58 = arith.constant dense<0.000000e+00> : vector<64x512xf32>
    %245 = tpu.matmul %241, %242, %cst_58 {dimension_numbers = #tpu.dot_dimension_numbers<[1], [0], [0], [1], [0, 0, 1, 1], [], []>} : vector<64x128xf32>, vector<128x512xf32>, vector<64x512xf32> -> vector<64x512xf32>
    %246 = vector.broadcast %244 : vector<1x512xf32> to vector<64x512xf32>
    %247 = arith.addf %245, %246 : vector<64x512xf32>
    %cst_59 = arith.constant 0.000000e+00 : f32
    %248 = vector.broadcast %cst_59 : f32 to vector<8x128xf32>
    %cst_60 = arith.constant 0.000000e+00 : f32
    %249 = vector.broadcast %cst_60 : f32 to vector<8x128xf32>
    %250 = vector.extract_strided_slice %247 {offsets = [0, 0], sizes = [8, 512], strides = [1, 1]} : vector<64x512xf32> to vector<8x512xf32>
    %cst_61 = arith.constant dense<0.000000e+00> : vector<8x512xf32>
    %251 = tpu.matmul %248, %243, %cst_61 {dimension_numbers = #tpu.dot_dimension_numbers<[1], [0], [0], [1], [0, 0, 1, 1], [], []>} : vector<8x128xf32>, vector<128x512xf32>, vector<8x512xf32> -> vector<8x512xf32>
    %252 = arith.addf %250, %251 : vector<8x512xf32>
    %253 = vector.extract_strided_slice %252 {offsets = [0, 0], sizes = [8, 128], strides = [1, 1]} : vector<8x512xf32> to vector<8x128xf32>
    %254 = arith.negf %253 : vector<8x128xf32>
    %255 = math.exp %254 : vector<8x128xf32>
    %cst_62 = arith.constant 1.000000e+00 : f32
    %256 = vector.broadcast %cst_62 : f32 to vector<8x128xf32>
    %257 = arith.addf %256, %255 : vector<8x128xf32>
    %258 = arith.divf %256, %257 : vector<8x128xf32>
    %259 = vector.extract_strided_slice %252 {offsets = [0, 128], sizes = [8, 128], strides = [1, 1]} : vector<8x512xf32> to vector<8x128xf32>
    %260 = arith.negf %259 : vector<8x128xf32>
    %261 = math.exp %260 : vector<8x128xf32>
    %cst_63 = arith.constant 1.000000e+00 : f32
    %262 = vector.broadcast %cst_63 : f32 to vector<8x128xf32>
    %263 = arith.addf %262, %261 : vector<8x128xf32>
    %264 = arith.divf %262, %263 : vector<8x128xf32>
    %265 = vector.extract_strided_slice %252 {offsets = [0, 256], sizes = [8, 128], strides = [1, 1]} : vector<8x512xf32> to vector<8x128xf32>
    %266 = math.tanh %265 : vector<8x128xf32>
    %267 = vector.extract_strided_slice %252 {offsets = [0, 384], sizes = [8, 128], strides = [1, 1]} : vector<8x512xf32> to vector<8x128xf32>
    %268 = arith.negf %267 : vector<8x128xf32>
    %269 = math.exp %268 : vector<8x128xf32>
    %cst_64 = arith.constant 1.000000e+00 : f32
    %270 = vector.broadcast %cst_64 : f32 to vector<8x128xf32>
    %271 = arith.addf %270, %269 : vector<8x128xf32>
    %272 = arith.divf %270, %271 : vector<8x128xf32>
    %273 = arith.mulf %264, %249 : vector<8x128xf32>
    %274 = arith.mulf %258, %266 : vector<8x128xf32>
    %275 = arith.addf %273, %274 : vector<8x128xf32>
    %276 = math.tanh %275 : vector<8x128xf32>
    %277 = arith.mulf %272, %276 : vector<8x128xf32>
    %c0_65 = arith.constant 0 : index
    %c0_66 = arith.constant 0 : index
    %278 = vector.load %arg8[%c0_65, %c0_66] : memref<64x128xf32, #tpu.memory_space<vmem>>, vector<8x128xf32>
    tpu.vector_store %arg8[%c0_65, %c0_66], %277 {strides = array<i32>} : memref<64x128xf32, #tpu.memory_space<vmem>>, vector<8x128xf32>,
    %279 = vector.extract_strided_slice %247 {offsets = [8, 0], sizes = [8, 512], strides = [1, 1]} : vector<64x512xf32> to vector<8x512xf32>
    %cst_67 = arith.constant dense<0.000000e+00> : vector<8x512xf32>
    %280 = tpu.matmul %277, %243, %cst_67 {dimension_numbers = #tpu.dot_dimension_numbers<[1], [0], [0], [1], [0, 0, 1, 1], [], []>} : vector<8x128xf32>, vector<128x512xf32>, vector<8x512xf32> -> vector<8x512xf32>
    %281 = arith.addf %279, %280 : vector<8x512xf32>
    %282 = vector.extract_strided_slice %281 {offsets = [0, 0], sizes = [8, 128], strides = [1, 1]} : vector<8x512xf32> to vector<8x128xf32>
    %283 = arith.negf %282 : vector<8x128xf32>
    %284 = math.exp %283 : vector<8x128xf32>
    %cst_68 = arith.constant 1.000000e+00 : f32
    %285 = vector.broadcast %cst_68 : f32 to vector<8x128xf32>
    %286 = arith.addf %285, %284 : vector<8x128xf32>
    %287 = arith.divf %285, %286 : vector<8x128xf32>
    %288 = vector.extract_strided_slice %281 {offsets = [0, 128], sizes = [8, 128], strides = [1, 1]} : vector<8x512xf32> to vector<8x128xf32>
    %289 = arith.negf %288 : vector<8x128xf32>
    %290 = math.exp %289 : vector<8x128xf32>
    %cst_69 = arith.constant 1.000000e+00 : f32
    %291 = vector.broadcast %cst_69 : f32 to vector<8x128xf32>
    %292 = arith.addf %291, %290 : vector<8x128xf32>
    %293 = arith.divf %291, %292 : vector<8x128xf32>
    %294 = vector.extract_strided_slice %281 {offsets = [0, 256], sizes = [8, 128], strides = [1, 1]} : vector<8x512xf32> to vector<8x128xf32>
    %295 = math.tanh %294 : vector<8x128xf32>
    %296 = vector.extract_strided_slice %281 {offsets = [0, 384], sizes = [8, 128], strides = [1, 1]} : vector<8x512xf32> to vector<8x128xf32>
    %297 = arith.negf %296 : vector<8x128xf32>
    %298 = math.exp %297 : vector<8x128xf32>
    %cst_70 = arith.constant 1.000000e+00 : f32
    %299 = vector.broadcast %cst_70 : f32 to vector<8x128xf32>
    %300 = arith.addf %299, %298 : vector<8x128xf32>
    %301 = arith.divf %299, %300 : vector<8x128xf32>
    %302 = arith.mulf %293, %275 : vector<8x128xf32>
    %303 = arith.mulf %287, %295 : vector<8x128xf32>
    %304 = arith.addf %302, %303 : vector<8x128xf32>
    %305 = math.tanh %304 : vector<8x128xf32>
    %306 = arith.mulf %301, %305 : vector<8x128xf32>
    %c8_71 = arith.constant 8 : index
    %c0_72 = arith.constant 0 : index
    %307 = vector.load %arg8[%c8_71, %c0_72] : memref<64x128xf32, #tpu.memory_space<vmem>>, vector<8x128xf32>
    tpu.vector_store %arg8[%c8_71, %c0_72], %306 {strides = array<i32>} : memref<64x128xf32, #tpu.memory_space<vmem>>, vector<8x128xf32>,
    %308 = vector.extract_strided_slice %247 {offsets = [16, 0], sizes = [8, 512], strides = [1, 1]} : vector<64x512xf32> to vector<8x512xf32>
    %cst_73 = arith.constant dense<0.000000e+00> : vector<8x512xf32>
    %309 = tpu.matmul %306, %243, %cst_73 {dimension_numbers = #tpu.dot_dimension_numbers<[1], [0], [0], [1], [0, 0, 1, 1], [], []>} : vector<8x128xf32>, vector<128x512xf32>, vector<8x512xf32> -> vector<8x512xf32>
    %310 = arith.addf %308, %309 : vector<8x512xf32>
    %311 = vector.extract_strided_slice %310 {offsets = [0, 0], sizes = [8, 128], strides = [1, 1]} : vector<8x512xf32> to vector<8x128xf32>
    %312 = arith.negf %311 : vector<8x128xf32>
    %313 = math.exp %312 : vector<8x128xf32>
    %cst_74 = arith.constant 1.000000e+00 : f32
    %314 = vector.broadcast %cst_74 : f32 to vector<8x128xf32>
    %315 = arith.addf %314, %313 : vector<8x128xf32>
    %316 = arith.divf %314, %315 : vector<8x128xf32>
    %317 = vector.extract_strided_slice %310 {offsets = [0, 128], sizes = [8, 128], strides = [1, 1]} : vector<8x512xf32> to vector<8x128xf32>
    %318 = arith.negf %317 : vector<8x128xf32>
    %319 = math.exp %318 : vector<8x128xf32>
    %cst_75 = arith.constant 1.000000e+00 : f32
    %320 = vector.broadcast %cst_75 : f32 to vector<8x128xf32>
    %321 = arith.addf %320, %319 : vector<8x128xf32>
    %322 = arith.divf %320, %321 : vector<8x128xf32>
    %323 = vector.extract_strided_slice %310 {offsets = [0, 256], sizes = [8, 128], strides = [1, 1]} : vector<8x512xf32> to vector<8x128xf32>
    %324 = math.tanh %323 : vector<8x128xf32>
    %325 = vector.extract_strided_slice %310 {offsets = [0, 384], sizes = [8, 128], strides = [1, 1]} : vector<8x512xf32> to vector<8x128xf32>
    %326 = arith.negf %325 : vector<8x128xf32>
    %327 = math.exp %326 : vector<8x128xf32>
    %cst_76 = arith.constant 1.000000e+00 : f32
    %328 = vector.broadcast %cst_76 : f32 to vector<8x128xf32>
    %329 = arith.addf %328, %327 : vector<8x128xf32>
    %330 = arith.divf %328, %329 : vector<8x128xf32>
    %331 = arith.mulf %322, %304 : vector<8x128xf32>
    %332 = arith.mulf %316, %324 : vector<8x128xf32>
    %333 = arith.addf %331, %332 : vector<8x128xf32>
    %334 = math.tanh %333 : vector<8x128xf32>
    %335 = arith.mulf %330, %334 : vector<8x128xf32>
    %c16_77 = arith.constant 16 : index
    %c0_78 = arith.constant 0 : index
    %336 = vector.load %arg8[%c16_77, %c0_78] : memref<64x128xf32, #tpu.memory_space<vmem>>, vector<8x128xf32>
    tpu.vector_store %arg8[%c16_77, %c0_78], %335 {strides = array<i32>} : memref<64x128xf32, #tpu.memory_space<vmem>>, vector<8x128xf32>,
    %337 = vector.extract_strided_slice %247 {offsets = [24, 0], sizes = [8, 512], strides = [1, 1]} : vector<64x512xf32> to vector<8x512xf32>
    %cst_79 = arith.constant dense<0.000000e+00> : vector<8x512xf32>
    %338 = tpu.matmul %335, %243, %cst_79 {dimension_numbers = #tpu.dot_dimension_numbers<[1], [0], [0], [1], [0, 0, 1, 1], [], []>} : vector<8x128xf32>, vector<128x512xf32>, vector<8x512xf32> -> vector<8x512xf32>
    %339 = arith.addf %337, %338 : vector<8x512xf32>
    %340 = vector.extract_strided_slice %339 {offsets = [0, 0], sizes = [8, 128], strides = [1, 1]} : vector<8x512xf32> to vector<8x128xf32>
    %341 = arith.negf %340 : vector<8x128xf32>
    %342 = math.exp %341 : vector<8x128xf32>
    %cst_80 = arith.constant 1.000000e+00 : f32
    %343 = vector.broadcast %cst_80 : f32 to vector<8x128xf32>
    %344 = arith.addf %343, %342 : vector<8x128xf32>
    %345 = arith.divf %343, %344 : vector<8x128xf32>
    %346 = vector.extract_strided_slice %339 {offsets = [0, 128], sizes = [8, 128], strides = [1, 1]} : vector<8x512xf32> to vector<8x128xf32>
    %347 = arith.negf %346 : vector<8x128xf32>
    %348 = math.exp %347 : vector<8x128xf32>
    %cst_81 = arith.constant 1.000000e+00 : f32
    %349 = vector.broadcast %cst_81 : f32 to vector<8x128xf32>
    %350 = arith.addf %349, %348 : vector<8x128xf32>
    %351 = arith.divf %349, %350 : vector<8x128xf32>
    %352 = vector.extract_strided_slice %339 {offsets = [0, 256], sizes = [8, 128], strides = [1, 1]} : vector<8x512xf32> to vector<8x128xf32>
    %353 = math.tanh %352 : vector<8x128xf32>
    %354 = vector.extract_strided_slice %339 {offsets = [0, 384], sizes = [8, 128], strides = [1, 1]} : vector<8x512xf32> to vector<8x128xf32>
    %355 = arith.negf %354 : vector<8x128xf32>
    %356 = math.exp %355 : vector<8x128xf32>
    %cst_82 = arith.constant 1.000000e+00 : f32
    %357 = vector.broadcast %cst_82 : f32 to vector<8x128xf32>
    %358 = arith.addf %357, %356 : vector<8x128xf32>
    %359 = arith.divf %357, %358 : vector<8x128xf32>
    %360 = arith.mulf %351, %333 : vector<8x128xf32>
    %361 = arith.mulf %345, %353 : vector<8x128xf32>
    %362 = arith.addf %360, %361 : vector<8x128xf32>
    %363 = math.tanh %362 : vector<8x128xf32>
    %364 = arith.mulf %359, %363 : vector<8x128xf32>
    %c24_83 = arith.constant 24 : index
    %c0_84 = arith.constant 0 : index
    %365 = vector.load %arg8[%c24_83, %c0_84] : memref<64x128xf32, #tpu.memory_space<vmem>>, vector<8x128xf32>
    tpu.vector_store %arg8[%c24_83, %c0_84], %364 {strides = array<i32>} : memref<64x128xf32, #tpu.memory_space<vmem>>, vector<8x128xf32>,
    %366 = vector.extract_strided_slice %247 {offsets = [32, 0], sizes = [8, 512], strides = [1, 1]} : vector<64x512xf32> to vector<8x512xf32>
    %cst_85 = arith.constant dense<0.000000e+00> : vector<8x512xf32>
    %367 = tpu.matmul %364, %243, %cst_85 {dimension_numbers = #tpu.dot_dimension_numbers<[1], [0], [0], [1], [0, 0, 1, 1], [], []>} : vector<8x128xf32>, vector<128x512xf32>, vector<8x512xf32> -> vector<8x512xf32>
    %368 = arith.addf %366, %367 : vector<8x512xf32>
    %369 = vector.extract_strided_slice %368 {offsets = [0, 0], sizes = [8, 128], strides = [1, 1]} : vector<8x512xf32> to vector<8x128xf32>
    %370 = arith.negf %369 : vector<8x128xf32>
    %371 = math.exp %370 : vector<8x128xf32>
    %cst_86 = arith.constant 1.000000e+00 : f32
    %372 = vector.broadcast %cst_86 : f32 to vector<8x128xf32>
    %373 = arith.addf %372, %371 : vector<8x128xf32>
    %374 = arith.divf %372, %373 : vector<8x128xf32>
    %375 = vector.extract_strided_slice %368 {offsets = [0, 128], sizes = [8, 128], strides = [1, 1]} : vector<8x512xf32> to vector<8x128xf32>
    %376 = arith.negf %375 : vector<8x128xf32>
    %377 = math.exp %376 : vector<8x128xf32>
    %cst_87 = arith.constant 1.000000e+00 : f32
    %378 = vector.broadcast %cst_87 : f32 to vector<8x128xf32>
    %379 = arith.addf %378, %377 : vector<8x128xf32>
    %380 = arith.divf %378, %379 : vector<8x128xf32>
    %381 = vector.extract_strided_slice %368 {offsets = [0, 256], sizes = [8, 128], strides = [1, 1]} : vector<8x512xf32> to vector<8x128xf32>
    %382 = math.tanh %381 : vector<8x128xf32>
    %383 = vector.extract_strided_slice %368 {offsets = [0, 384], sizes = [8, 128], strides = [1, 1]} : vector<8x512xf32> to vector<8x128xf32>
    %384 = arith.negf %383 : vector<8x128xf32>
    %385 = math.exp %384 : vector<8x128xf32>
    %cst_88 = arith.constant 1.000000e+00 : f32
    %386 = vector.broadcast %cst_88 : f32 to vector<8x128xf32>
    %387 = arith.addf %386, %385 : vector<8x128xf32>
    %388 = arith.divf %386, %387 : vector<8x128xf32>
    %389 = arith.mulf %380, %362 : vector<8x128xf32>
    %390 = arith.mulf %374, %382 : vector<8x128xf32>
    %391 = arith.addf %389, %390 : vector<8x128xf32>
    %392 = math.tanh %391 : vector<8x128xf32>
    %393 = arith.mulf %388, %392 : vector<8x128xf32>
    %c32_89 = arith.constant 32 : index
    %c0_90 = arith.constant 0 : index
    %394 = vector.load %arg8[%c32_89, %c0_90] : memref<64x128xf32, #tpu.memory_space<vmem>>, vector<8x128xf32>
    tpu.vector_store %arg8[%c32_89, %c0_90], %393 {strides = array<i32>} : memref<64x128xf32, #tpu.memory_space<vmem>>, vector<8x128xf32>,
    %395 = vector.extract_strided_slice %247 {offsets = [40, 0], sizes = [8, 512], strides = [1, 1]} : vector<64x512xf32> to vector<8x512xf32>
    %cst_91 = arith.constant dense<0.000000e+00> : vector<8x512xf32>
    %396 = tpu.matmul %393, %243, %cst_91 {dimension_numbers = #tpu.dot_dimension_numbers<[1], [0], [0], [1], [0, 0, 1, 1], [], []>} : vector<8x128xf32>, vector<128x512xf32>, vector<8x512xf32> -> vector<8x512xf32>
    %397 = arith.addf %395, %396 : vector<8x512xf32>
    %398 = vector.extract_strided_slice %397 {offsets = [0, 0], sizes = [8, 128], strides = [1, 1]} : vector<8x512xf32> to vector<8x128xf32>
    %399 = arith.negf %398 : vector<8x128xf32>
    %400 = math.exp %399 : vector<8x128xf32>
    %cst_92 = arith.constant 1.000000e+00 : f32
    %401 = vector.broadcast %cst_92 : f32 to vector<8x128xf32>
    %402 = arith.addf %401, %400 : vector<8x128xf32>
    %403 = arith.divf %401, %402 : vector<8x128xf32>
    %404 = vector.extract_strided_slice %397 {offsets = [0, 128], sizes = [8, 128], strides = [1, 1]} : vector<8x512xf32> to vector<8x128xf32>
    %405 = arith.negf %404 : vector<8x128xf32>
    %406 = math.exp %405 : vector<8x128xf32>
    %cst_93 = arith.constant 1.000000e+00 : f32
    %407 = vector.broadcast %cst_93 : f32 to vector<8x128xf32>
    %408 = arith.addf %407, %406 : vector<8x128xf32>
    %409 = arith.divf %407, %408 : vector<8x128xf32>
    %410 = vector.extract_strided_slice %397 {offsets = [0, 256], sizes = [8, 128], strides = [1, 1]} : vector<8x512xf32> to vector<8x128xf32>
    %411 = math.tanh %410 : vector<8x128xf32>
    %412 = vector.extract_strided_slice %397 {offsets = [0, 384], sizes = [8, 128], strides = [1, 1]} : vector<8x512xf32> to vector<8x128xf32>
    %413 = arith.negf %412 : vector<8x128xf32>
    %414 = math.exp %413 : vector<8x128xf32>
    %cst_94 = arith.constant 1.000000e+00 : f32
    %415 = vector.broadcast %cst_94 : f32 to vector<8x128xf32>
    %416 = arith.addf %415, %414 : vector<8x128xf32>
    %417 = arith.divf %415, %416 : vector<8x128xf32>
    %418 = arith.mulf %409, %391 : vector<8x128xf32>
    %419 = arith.mulf %403, %411 : vector<8x128xf32>
    %420 = arith.addf %418, %419 : vector<8x128xf32>
    %421 = math.tanh %420 : vector<8x128xf32>
    %422 = arith.mulf %417, %421 : vector<8x128xf32>
    %c40_95 = arith.constant 40 : index
    %c0_96 = arith.constant 0 : index
    %423 = vector.load %arg8[%c40_95, %c0_96] : memref<64x128xf32, #tpu.memory_space<vmem>>, vector<8x128xf32>
    tpu.vector_store %arg8[%c40_95, %c0_96], %422 {strides = array<i32>} : memref<64x128xf32, #tpu.memory_space<vmem>>, vector<8x128xf32>,
    %424 = vector.extract_strided_slice %247 {offsets = [48, 0], sizes = [8, 512], strides = [1, 1]} : vector<64x512xf32> to vector<8x512xf32>
    %cst_97 = arith.constant dense<0.000000e+00> : vector<8x512xf32>
    %425 = tpu.matmul %422, %243, %cst_97 {dimension_numbers = #tpu.dot_dimension_numbers<[1], [0], [0], [1], [0, 0, 1, 1], [], []>} : vector<8x128xf32>, vector<128x512xf32>, vector<8x512xf32> -> vector<8x512xf32>
    %426 = arith.addf %424, %425 : vector<8x512xf32>
    %427 = vector.extract_strided_slice %426 {offsets = [0, 0], sizes = [8, 128], strides = [1, 1]} : vector<8x512xf32> to vector<8x128xf32>
    %428 = arith.negf %427 : vector<8x128xf32>
    %429 = math.exp %428 : vector<8x128xf32>
    %cst_98 = arith.constant 1.000000e+00 : f32
    %430 = vector.broadcast %cst_98 : f32 to vector<8x128xf32>
    %431 = arith.addf %430, %429 : vector<8x128xf32>
    %432 = arith.divf %430, %431 : vector<8x128xf32>
    %433 = vector.extract_strided_slice %426 {offsets = [0, 128], sizes = [8, 128], strides = [1, 1]} : vector<8x512xf32> to vector<8x128xf32>
    %434 = arith.negf %433 : vector<8x128xf32>
    %435 = math.exp %434 : vector<8x128xf32>
    %cst_99 = arith.constant 1.000000e+00 : f32
    %436 = vector.broadcast %cst_99 : f32 to vector<8x128xf32>
    %437 = arith.addf %436, %435 : vector<8x128xf32>
    %438 = arith.divf %436, %437 : vector<8x128xf32>
    %439 = vector.extract_strided_slice %426 {offsets = [0, 256], sizes = [8, 128], strides = [1, 1]} : vector<8x512xf32> to vector<8x128xf32>
    %440 = math.tanh %439 : vector<8x128xf32>
    %441 = vector.extract_strided_slice %426 {offsets = [0, 384], sizes = [8, 128], strides = [1, 1]} : vector<8x512xf32> to vector<8x128xf32>
    %442 = arith.negf %441 : vector<8x128xf32>
    %443 = math.exp %442 : vector<8x128xf32>
    %cst_100 = arith.constant 1.000000e+00 : f32
    %444 = vector.broadcast %cst_100 : f32 to vector<8x128xf32>
    %445 = arith.addf %444, %443 : vector<8x128xf32>
    %446 = arith.divf %444, %445 : vector<8x128xf32>
    %447 = arith.mulf %438, %420 : vector<8x128xf32>
    %448 = arith.mulf %432, %440 : vector<8x128xf32>
    %449 = arith.addf %447, %448 : vector<8x128xf32>
    %450 = math.tanh %449 : vector<8x128xf32>
    %451 = arith.mulf %446, %450 : vector<8x128xf32>
    %c48_101 = arith.constant 48 : index
    %c0_102 = arith.constant 0 : index
    %452 = vector.load %arg8[%c48_101, %c0_102] : memref<64x128xf32, #tpu.memory_space<vmem>>, vector<8x128xf32>
    tpu.vector_store %arg8[%c48_101, %c0_102], %451 {strides = array<i32>} : memref<64x128xf32, #tpu.memory_space<vmem>>, vector<8x128xf32>,
    %453 = vector.extract_strided_slice %247 {offsets = [56, 0], sizes = [8, 512], strides = [1, 1]} : vector<64x512xf32> to vector<8x512xf32>
    %cst_103 = arith.constant dense<0.000000e+00> : vector<8x512xf32>
    %454 = tpu.matmul %451, %243, %cst_103 {dimension_numbers = #tpu.dot_dimension_numbers<[1], [0], [0], [1], [0, 0, 1, 1], [], []>} : vector<8x128xf32>, vector<128x512xf32>, vector<8x512xf32> -> vector<8x512xf32>
    %455 = arith.addf %453, %454 : vector<8x512xf32>
    %456 = vector.extract_strided_slice %455 {offsets = [0, 0], sizes = [8, 128], strides = [1, 1]} : vector<8x512xf32> to vector<8x128xf32>
    %457 = arith.negf %456 : vector<8x128xf32>
    %458 = math.exp %457 : vector<8x128xf32>
    %cst_104 = arith.constant 1.000000e+00 : f32
    %459 = vector.broadcast %cst_104 : f32 to vector<8x128xf32>
    %460 = arith.addf %459, %458 : vector<8x128xf32>
    %461 = arith.divf %459, %460 : vector<8x128xf32>
    %462 = vector.extract_strided_slice %455 {offsets = [0, 128], sizes = [8, 128], strides = [1, 1]} : vector<8x512xf32> to vector<8x128xf32>
    %463 = arith.negf %462 : vector<8x128xf32>
    %464 = math.exp %463 : vector<8x128xf32>
    %cst_105 = arith.constant 1.000000e+00 : f32
    %465 = vector.broadcast %cst_105 : f32 to vector<8x128xf32>
    %466 = arith.addf %465, %464 : vector<8x128xf32>
    %467 = arith.divf %465, %466 : vector<8x128xf32>
    %468 = vector.extract_strided_slice %455 {offsets = [0, 256], sizes = [8, 128], strides = [1, 1]} : vector<8x512xf32> to vector<8x128xf32>
    %469 = math.tanh %468 : vector<8x128xf32>
    %470 = vector.extract_strided_slice %455 {offsets = [0, 384], sizes = [8, 128], strides = [1, 1]} : vector<8x512xf32> to vector<8x128xf32>
    %471 = arith.negf %470 : vector<8x128xf32>
    %472 = math.exp %471 : vector<8x128xf32>
    %cst_106 = arith.constant 1.000000e+00 : f32
    %473 = vector.broadcast %cst_106 : f32 to vector<8x128xf32>
    %474 = arith.addf %473, %472 : vector<8x128xf32>
    %475 = arith.divf %473, %474 : vector<8x128xf32>
    %476 = arith.mulf %467, %449 : vector<8x128xf32>
    %477 = arith.mulf %461, %469 : vector<8x128xf32>
    %478 = arith.addf %476, %477 : vector<8x128xf32>
    %479 = math.tanh %478 : vector<8x128xf32>
    %480 = arith.mulf %475, %479 : vector<8x128xf32>
    %c56_107 = arith.constant 56 : index
    %c0_108 = arith.constant 0 : index
    %481 = vector.load %arg8[%c56_107, %c0_108] : memref<64x128xf32, #tpu.memory_space<vmem>>, vector<8x128xf32>
    tpu.vector_store %arg8[%c56_107, %c0_108], %480 {strides = array<i32>} : memref<64x128xf32, #tpu.memory_space<vmem>>, vector<8x128xf32>,
    return
  }
  func.func @transform_0(%arg0: i32) -> (i32, i32) {
    %c0_i32 = arith.constant 0 : i32
    %c0_i32_0 = arith.constant 0 : i32
    %c0_i32_1 = arith.constant 0 : i32
    return %c0_i32, %c0_i32_0 : i32, i32
  }
  func.func @transform_1(%arg0: i32) -> (i32, i32) {
    %c0_i32 = arith.constant 0 : i32
    %c0_i32_0 = arith.constant 0 : i32
    %c0_i32_1 = arith.constant 0 : i32
    return %c0_i32, %c0_i32_0 : i32, i32
  }
  func.func @transform_2(%arg0: i32) -> (i32, i32) {
    %c0_i32 = arith.constant 0 : i32
    %c0_i32_0 = arith.constant 0 : i32
    %c0_i32_1 = arith.constant 0 : i32
    return %c0_i32, %c0_i32_0 : i32, i32
  }
  func.func @transform_3(%arg0: i32) -> (i32, i32) {
    %c0_i32 = arith.constant 0 : i32
    %c0_i32_0 = arith.constant 0 : i32
    %c0_i32_1 = arith.constant 0 : i32
    return %c0_i32, %c0_i32_0 : i32, i32
  }
  func.func @transform_4(%arg0: i32) -> (i32, i32) {
    %c0_i32 = arith.constant 0 : i32
    %c0_i32_0 = arith.constant 0 : i32
    %c0_i32_1 = arith.constant 0 : i32
    return %c0_i32, %c0_i32_0 : i32, i32
  }
  func.func @transform_5(%arg0: i32) -> (i32, i32) {
    %c0_i32 = arith.constant 0 : i32
    %c0_i32_0 = arith.constant 0 : i32
    %c0_i32_1 = arith.constant 0 : i32
    return %c0_i32, %c0_i32_0 : i32, i32
  }
  func.func @transform_6(%arg0: i32) -> (i32, i32) {
    %c0_i32 = arith.constant 0 : i32
    %c0_i32_0 = arith.constant 0 : i32
    %c0_i32_1 = arith.constant 0 : i32
    return %c0_i32, %c0_i32_0 : i32, i32
  }
  func.func @transform_7(%arg0: i32) -> (i32, i32) {
    %c0_i32 = arith.constant 0 : i32
    %c0_i32_0 = arith.constant 0 : i32
    %c0_i32_1 = arith.constant 0 : i32
    return %c0_i32, %c0_i32_0 : i32, i32
  }
}

</mosaic_0001>

<bundles_post_ra>
// kernel: vanilla_lstm_forward.3
= control target key start
LH: loop header
LB: loop body
LE: loop exit
PB: predicated region body
PF: predicated region fallthrough
CT: control target
= control target key end

     0   :  { %s398_s1 = inlined_call_operand.vmem [shape: f32[128,128], index: 1, kind: input, shape index: {}]   ;;  %s399_s0 = inlined_call_operand.vmem [shape: f32[64,128], index: 0, kind: input, shape index: {}]   ;;  %s400_s2 = inlined_call_operand.vmem [shape: f32[1,128], index: 2, kind: input, shape index: {}]   ;;  %s401_s3 = inlined_call_operand.vmem [shape: f32[64,128], index: 3, kind: output, shape index: {}]  }
   0x1   :  { %v22_v0 = vld [vmem:[%s398_s1] sm:$0xff]  ;;  %v23_v1 = vld [vmem:[%s398_s1 + $0x8] sm:$0xff]  ;;  %v24_v2 = vld [vmem:[%s398_s1 + $0x10] sm:$0xff] }
   0x2   :  { %v231_v3 = vpack.c.bf16 %v23_v1, %v22_v0  ;;  %v25_v4 = vld [vmem:[%s398_s1 + $0x18] sm:$0xff]  ;;  %v26_v6 = vld [vmem:[%s398_s1 + $0x20] sm:$0xff]  ;;  %v27_v7 = vld [vmem:[%s398_s1 + $0x28] sm:$0xff] }
   0x3   :  { %v235_v5 = vpack.c.bf16 %v25_v4, %v24_v2  ;;  %v239_v8 = vpack.c.bf16 %v27_v7, %v26_v6  ;;  %v14_v9 = vld [vmem:[%s399_s0] sm:$0xff]  ;;  %v28_v11 = vld [vmem:[%s398_s1 + $0x30] sm:$0xff]  ;;  %v29_v12 = vld [vmem:[%s398_s1 + $0x38] sm:$0xff] }
   0x4   :  { %232 = vmatprep.subr.bf16.mxu0 %v231_v3  ;;  %263 = vmatprep.subr.bf16.mxu1 %v231_v3  ;;  %v18_v10 = vld [vmem:[%s399_s0 + $0x20] sm:$0xff]  ;;  %v243_v13 = vpack.c.bf16 %v29_v12, %v28_v11  ;;  %v31_v15 = vld [vmem:[%s398_s1 + $0x48] sm:$0xff]  ;;  %v32_v17 = vld [vmem:[%s398_s1 + $0x50] sm:$0xff] }
   0x5   :  { %234 = vmatpush3.bf16.msra.mxu0 %v231_v3  ;;  %271 = vmatpush3.bf16.msra.mxu1 %v231_v3  ;;  %v30_v14 = vld [vmem:[%s398_s1 + $0x40] sm:$0xff]  ;;  %v33_v18 = vld [vmem:[%s398_s1 + $0x58] sm:$0xff]  ;;  %v35_v21 = vld [vmem:[%s398_s1 + $0x68] sm:$0xff] }
   0x6   :  { %236 = vmatprep.subr.bf16.mxu0 %v235_v5  ;;  %264 = vmatprep.subr.bf16.mxu1 %v235_v5  ;;  %v247_v16 = vpack.c.bf16 %v31_v15, %v30_v14  ;;  %v251_v19 = vpack.c.bf16 %v33_v18, %v32_v17  ;;  %v34_v20 = vld [vmem:[%s398_s1 + $0x60] sm:$0xff]  ;;  %v36_v23 = vld [vmem:[%s398_s1 + $0x70] sm:$0xff]  ;;  %v37_v24 = vld [vmem:[%s398_s1 + $0x78] sm:$0xff] }
   0x7   :  { %219 = vmatprep.mubr.f32.mxu0 %v14_v9  ;;  %225 = vmatprep.mubr.f32.mxu1 %v18_v10  ;;  %v255_v22 = vpack.c.bf16 %v35_v21, %v34_v20  ;;  %v259_v25 = vpack.c.bf16 %v37_v24, %v36_v23  ;;  %v15_v26 = vld [vmem:[%s399_s0 + $0x8] sm:$0xff]  ;;  %v16_v28 = vld [vmem:[%s399_s0 + $0x10] sm:$0xff]  ;;  %v17_v30 = vld [vmem:[%s399_s0 + $0x18] sm:$0xff] }
   0x8   :  { %v19_v27 = vld [vmem:[%s399_s0 + $0x28] sm:$0xff]  ;;  %v20_v29 = vld [vmem:[%s399_s0 + $0x30] sm:$0xff]  ;;  %v21_v31 = vld [vmem:[%s399_s0 + $0x38] sm:$0xff] }
   0x9   :  { %238 = vmatpush3.bf16.msra.mxu0 %v235_v5  ;;  %272 = vmatpush3.bf16.msra.mxu1 %v235_v5  ;;  %v162_v32 = vld [vmem:[%s400_s2] ss:$0 sm:$0xff] }
   0xa   :  { %240 = vmatprep.subr.bf16.mxu0 %v239_v8  ;;  %265 = vmatprep.subr.bf16.mxu1 %v239_v8 }
   0xd   :  { %242 = vmatpush3.bf16.msra.mxu0 %v239_v8  ;;  %273 = vmatpush3.bf16.msra.mxu1 %v239_v8 }
   0xe   :  { %244 = vmatprep.subr.bf16.mxu0 %v243_v13  ;;  %266 = vmatprep.subr.bf16.mxu1 %v243_v13 }
  0x11   :  { %246 = vmatpush3.bf16.msra.mxu0 %v243_v13  ;;  %274 = vmatpush3.bf16.msra.mxu1 %v243_v13 }
  0x12   :  { %248 = vmatprep.subr.bf16.mxu0 %v247_v16  ;;  %267 = vmatprep.subr.bf16.mxu1 %v247_v16 }
  0x15   :  { %250 = vmatpush3.bf16.msra.mxu0 %v247_v16  ;;  %275 = vmatpush3.bf16.msra.mxu1 %v247_v16 }
  0x16   :  { %252 = vmatprep.subr.bf16.mxu0 %v251_v19  ;;  %268 = vmatprep.subr.bf16.mxu1 %v251_v19 }
  0x19   :  { %254 = vmatpush3.bf16.msra.mxu0 %v251_v19  ;;  %276 = vmatpush3.bf16.msra.mxu1 %v251_v19 }
  0x1a   :  { %256 = vmatprep.subr.bf16.mxu0 %v255_v22  ;;  %269 = vmatprep.subr.bf16.mxu1 %v255_v22 }
  0x1d   :  { %258 = vmatpush3.bf16.msra.mxu0 %v255_v22  ;;  %277 = vmatpush3.bf16.msra.mxu1 %v255_v22 }
  0x1e   :  { %260 = vmatprep.subr.bf16.mxu0 %v259_v25  ;;  %270 = vmatprep.subr.bf16.mxu1 %v259_v25 }
  0x21   :  { %262 = vmatpush3.bf16.msra.mxu0 %v259_v25  ;;  %278 = vmatpush3.bf16.msra.mxu1 %v259_v25 }
  0x24   :  { %220 = vmatmul.mubr.f32.vlgmr.msra.gmra.mrb[0].mxu0 %v15_v26  ;;  %226 = vmatmul.mubr.f32.vlgmr.msra.gmra.mrb[0].mxu1 %v19_v27 }
  0x25   :  { %222 = vmatprep.mubr.f32.mxu0 %v16_v28  ;;  %228 = vmatprep.mubr.f32.mxu1 %v20_v29 }
  0x28   :  { %223 = vmatmul.mubr.f32.gmra.mrb[2].mxu0 %v17_v30  ;;  %229 = vmatmul.mubr.f32.gmra.mrb[2].mxu1 %v21_v31 }
  0xf7   :  { %v221_v33 = vpop.f32.mrb[0].mxu0  ;;  %v227_v34 = vpop.f32.mrb[0].mxu1 }
  0xf8   :  { %v117_v35 = vadd.f32 %v221_v33, %v162_v32  ;;  %v137_v36 = vadd.f32 %v227_v34, %v162_v32  ;;  %v111_v37 = vpop.f32.mrb[1].mxu0  ;;  %v131_v38 = vpop.f32.mrb[1].mxu1 }
  0xf9   :  { %v112_v39 = vadd.f32 %v162_v32, %v111_v37  ;;  %v132_v40 = vadd.f32 %v162_v32, %v131_v38 }
  0xfa   :  { %151 = vst [vmem:[%s401_s3 + $0x8] sm:$0xff] %v117_v35  ;;  %155 = vst [vmem:[%s401_s3 + $0x28] sm:$0xff] %v137_v36 }
  0xfb   :  { %150 = vst [vmem:[%s401_s3] sm:$0xff] %v112_v39  ;;  %154 = vst [vmem:[%s401_s3 + $0x20] sm:$0xff] %v132_v40  ;;  %v224_v41 = vpop.f32.mrb[2].mxu0  ;;  %v230_v42 = vpop.f32.mrb[2].mxu1 }
  0xfc   :  { %v127_v43 = vadd.f32 %v224_v41, %v162_v32  ;;  %v147_v44 = vadd.f32 %v230_v42, %v162_v32  ;;  %v121_v45 = vpop.f32.mrb[3].mxu0  ;;  %v141_v46 = vpop.f32.mrb[3].mxu1 }
  0xfd   :  { %v122_v47 = vadd.f32 %v162_v32, %v121_v45  ;;  %v142_v48 = vadd.f32 %v162_v32, %v141_v46 }
  0xfe   :  { %153 = vst [vmem:[%s401_s3 + $0x18] sm:$0xff] %v127_v43  ;;  %157 = vst [vmem:[%s401_s3 + $0x38] sm:$0xff] %v147_v44 }
  0xff   :  { %152 = vst [vmem:[%s401_s3 + $0x10] sm:$0xff] %v122_v47  ;;  %156 = vst [vmem:[%s401_s3 + $0x30] sm:$0xff] %v142_v48 }

// kernel: vanilla_lstm_forward.2
= control target key start
LH: loop header
LB: loop body
LE: loop exit
PB: predicated region body
PF: predicated region fallthrough
CT: control target
= control target key end

     0   :  { %12 = vsyncpa [#allocation4], 0  ;;  %s6485_s0 = inlined_call_operand.vmem [shape: f32[64,128], index: 0, kind: input, shape index: {}]   ;;  %s6486_s1 = inlined_call_operand.vmem [shape: f32[128,512], index: 1, kind: input, shape index: {}]   ;;  %s6487_s2 = inlined_call_operand.hbm [shape: f32[128,512], index: 2, kind: input, shape index: {}]   ;;  %s6488_s3 = inlined_call_operand.vmem [shape: f32[1,512], index: 3, kind: input, shape index: {}]   ;;  %s6489_s4 = inlined_call_operand.hbm [shape: f32[128,512], index: 4, kind: input, shape index: {}]   ;;  %s6490_s5 = inlined_call_operand.hbm [shape: f32[128,512], index: 5, kind: input, shape index: {}]   ;;  %s6491_s6 = inlined_call_operand.vmem [shape: f32[1,512], index: 6, kind: input, shape index: {}]   ;;  %s6492_s7 = inlined_call_operand.vmem [shape: f32[64,128], index: 7, kind: output, shape index: {}]  }
   0x1   :  { %13 = vsyncpa [#allocation6], 0  ;;  %s5237_s24 = smov [#allocation5]   ;;  %s5238_s26 = smov [#allocation3]  }
   0x2   :  { %s37_s25 = sshll.u32 %s5237_s24, 4  ;;  %s23_s27 = sshll.u32 %s5238_s26, 4  ;;  %s38_s25 = int_to_ptr.vmem [resolvable:$true] %s37_s25  ;;  %s5283_s27 = int_to_ptr.vmem [resolvable:$true] %s23_s27 }
   0x3   :  { %s5167_s30 = scalar_lea.hbm %s6489_s4, 8192 }
   0x4   :  { %p5168_p0 = scmp.ne.s32.totalorder %s6489_s4, %s5167_s30  ;;  %p5171_p1 = scmp.lt.u32.totalorder %s5167_s30, %s6489_s4 }
   0x6   :  { %p5173_p2 = pnand %p5171_p1, %p5168_p0 }
   0x8   :  { %5176 = shalt.err (!%p5173_p2)
}
   0x9   :  { %s5177_s12 = scalar_lea.vmem %s38_s25, 8192  ;;  %p5182_p4 = scmp.lt.s32.totalorder %s38_s25, %s38_s25 }
   0xa   :  { %p5178_p3 = scmp.ne.s32.totalorder %s38_s25, %s5177_s12  ;;  %p5183_p5 = scmp.lt.s32.totalorder %s5177_s12, %s5177_s12 }
   0xc   :  { %p5184_p6 = por %p5183_p5, %p5182_p4 }
   0xe   :  { %p5185_p7 = pnand %p5184_p6, %p5178_p3 }
  0x10   :  { %5188 = shalt.err (!%p5185_p7)
}
  0x11   :  { %s5239_s13 = smov 512   ;;  %s5240_s14 = smov 32  }
  0x12   :  { %43 = dma.hbm_to_vmem [thread:$0]  %s6489_s4, 8192, %s38_s25, [#allocation6], %s5239_s13, %s5239_s13, %s5240_s14  }
  0x13   :  { %s5189_s19 = scalar_lea.hbm %s6487_s2, 8192 }
  0x14   :  { %p5190_p8 = scmp.ne.s32.totalorder %s6487_s2, %s5189_s19  ;;  %p5193_p9 = scmp.lt.u32.totalorder %s5189_s19, %s6487_s2 }
  0x16   :  { %p5195_p10 = pnand %p5193_p9, %p5190_p8 }
  0x18   :  { %5198 = shalt.err (!%p5195_p10)
}
  0x19   :  { %s5199_s24 = scalar_lea.vmem %s5283_s27, 8192  ;;  %p5204_p12 = scmp.lt.s32.totalorder %s5283_s27, %s5283_s27 }
  0x1a   :  { %p5200_p11 = scmp.ne.s32.totalorder %s5283_s27, %s5199_s24  ;;  %p5205_p13 = scmp.lt.s32.totalorder %s5199_s24, %s5199_s24 }
  0x1c   :  { %p5206_p0 = por %p5205_p13, %p5204_p12 }
  0x1e   :  { %p5207_p1 = pnand %p5206_p0, %p5200_p11 }
  0x20   :  { %5210 = shalt.err (!%p5207_p1)
}
  0x21   :  { %29 = dma.hbm_to_vmem [thread:$0]  %s6487_s2, 8192, %s5283_s27, [#allocation4], %s5239_s13, %s5239_s13, %s5240_s14  }
  0x22   :  { %s5241_s26 = smov [#allocation7]   ;;  %s5211_s8 = scalar_lea.hbm %s6490_s5, 8192 }
  0x23   :  { %s49_s28 = sshll.u32 %s5241_s26, 4  ;;  %p5212_p2 = scmp.ne.s32.totalorder %s6490_s5, %s5211_s8  ;;  %s50_s28 = int_to_ptr.vmem [resolvable:$true] %s49_s28 }
  0x24   :  { %p5215_p3 = scmp.lt.u32.totalorder %s5211_s8, %s6490_s5 }
  0x26   :  { %p5217_p4 = pnand %p5215_p3, %p5212_p2 }
  0x28   :  { %5220 = shalt.err (!%p5217_p4)
}
  0x29   :  { %s5221_s15 = scalar_lea.vmem %s50_s28, 8192  ;;  %p5226_p6 = scmp.lt.s32.totalorder %s50_s28, %s50_s28 }
  0x2a   :  { %p5222_p5 = scmp.ne.s32.totalorder %s50_s28, %s5221_s15  ;;  %p5227_p7 = scmp.lt.s32.totalorder %s5221_s15, %s5221_s15 }
  0x2c   :  { %p5228_p8 = por %p5227_p7, %p5226_p6 }
  0x2e   :  { %p5229_p9 = pnand %p5228_p8, %p5222_p5 }
  0x30   :  { %5232 = shalt.err (!%p5229_p9)
}
  0x31   :  { %55 = dma.hbm_to_vmem [thread:$0]  %s6490_s5, 8192, %s50_s28, [#allocation6], %s5239_s13, %s5239_s13, %s5240_s14  }
  0x32   :  { %5233 = dma.done.wait [#allocation4], 8192  }
  0x33   :  { %5234 = vsyncadd [#allocation4], 4294959104 }
  0x34   :  { %5235 = dma.done.wait [#allocation6], 16384  }
  0x35   :  { %5236 = vsyncadd [#allocation6], 4294950912  ;;  %v5242_v0 = vmov 0.0   ;;  %v76_v1 = vld [vmem:[%s6486_s1 + $0x8] sm:$0xff]  ;;  %v78_v3 = vld [vmem:[%s6486_s1 + $0x18] sm:$0xff] }
  0x36   :  { %289 = vmatprep.mubr.f32.mxu0 %v5242_v0  ;;  %402 = vmatprep.mubr.f32.mxu1 %v5242_v0  ;;  %v80_v2 = vld [vmem:[%s6486_s1 + $0x28] sm:$0xff]  ;;  %v82_v5 = vld [vmem:[%s6486_s1 + $0x38] sm:$0xff]  ;;  %v75_v6 = vld [vmem:[%s6486_s1] sm:$0xff] }
  0x37   :  { %v3625_v4 = vpack.c.bf16 %v80_v2, %v76_v1  ;;  %v79_v7 = vld [vmem:[%s6486_s1 + $0x20] sm:$0xff]  ;;  %v3657_v8 = vpack.c.bf16 %v82_v5, %v78_v3  ;;  %v77_v10 = vld [vmem:[%s6486_s1 + $0x10] sm:$0xff]  ;;  %v84_v12 = vld [vmem:[%s6486_s1 + $0x48] sm:$0xff] }
  0x38   :  { %v3627_v9 = vpack.c.bf16 %v79_v7, %v75_v6  ;;  %v81_v11 = vld [vmem:[%s6486_s1 + $0x30] sm:$0xff]  ;;  %v88_v14 = vld [vmem:[%s6486_s1 + $0x68] sm:$0xff]  ;;  %v86_v15 = vld [vmem:[%s6486_s1 + $0x58] sm:$0xff] }
  0x39   :  { %3626 = vmatprep.subr.bf16.mxu0 %v3625_v4  ;;  %v3659_v13 = vpack.c.bf16 %v81_v11, %v77_v10  ;;  %v90_v16 = vld [vmem:[%s6486_s1 + $0x78] sm:$0xff]  ;;  %3658 = vmatprep.subr.bf16.mxu1 %v3657_v8  ;;  %v3629_v17 = vpack.c.bf16 %v88_v14, %v84_v12  ;;  %v83_v19 = vld [vmem:[%s6486_s1 + $0x40] sm:$0xff]  ;;  %v85_v21 = vld [vmem:[%s6486_s1 + $0x50] sm:$0xff] }
  0x3a   :  { %3628 = vmatpush1.bf16.msra.mxu0 %v3627_v9  ;;  %v3661_v18 = vpack.c.bf16 %v90_v16, %v86_v15  ;;  %v87_v20 = vld [vmem:[%s6486_s1 + $0x60] sm:$0xff]  ;;  %v89_v23 = vld [vmem:[%s6486_s1 + $0x70] sm:$0xff]  ;;  %v92_v24 = vld [vmem:[%s6486_s1 + $0x88] sm:$0xff] }
  0x3b   :  { %3660 = vmatpush1.bf16.msra.mxu1 %v3659_v13  ;;  %v3631_v22 = vpack.c.bf16 %v87_v20, %v83_v19  ;;  %v96_v25 = vld [vmem:[%s6486_s1 + $0xa8] sm:$0xff]  ;;  %3630 = vmatprep.subr.bf16.mxu0 %v3629_v17  ;;  %v3663_v26 = vpack.c.bf16 %v89_v23, %v85_v21  ;;  %v94_v28 = vld [vmem:[%s6486_s1 + $0x98] sm:$0xff]  ;;  %v91_v30 = vld [vmem:[%s6486_s1 + $0x80] sm:$0xff] }
  0x3c   :  { %3662 = vmatprep.subr.bf16.mxu1 %v3661_v18  ;;  %v3633_v27 = vpack.c.bf16 %v96_v25, %v92_v24  ;;  %v98_v29 = vld [vmem:[%s6486_s1 + $0xb8] sm:$0xff]  ;;  %v95_v32 = vld [vmem:[%s6486_s1 + $0xa0] sm:$0xff]  ;;  %v93_v33 = vld [vmem:[%s6486_s1 + $0x90] sm:$0xff] }
  0x3d   :  { %v3665_v31 = vpack.c.bf16 %v98_v29, %v94_v28  ;;  %v97_v34 = vld [vmem:[%s6486_s1 + $0xb0] sm:$0xff]  ;;  %v3635_v35 = vpack.c.bf16 %v95_v32, %v91_v30  ;;  %v100_v36 = vld [vmem:[%s6486_s1 + $0xc8] sm:$0xff]  ;;  %v102_v38 = vld [vmem:[%s6486_s1 + $0xd8] sm:$0xff] }
  0x3e   :  { %3632 = vmatpush1.bf16.msra.mxu0 %v3631_v22  ;;  %v104_v37 = vld [vmem:[%s6486_s1 + $0xe8] sm:$0xff]  ;;  %v3667_v39 = vpack.c.bf16 %v97_v34, %v93_v33  ;;  %v106_v41 = vld [vmem:[%s6486_s1 + $0xf8] sm:$0xff]  ;;  %v99_v42 = vld [vmem:[%s6486_s1 + $0xc0] sm:$0xff] }
  0x3f   :  { %3664 = vmatpush1.bf16.msra.mxu1 %v3663_v26  ;;  %3634 = vmatprep.subr.bf16.mxu0 %v3633_v27  ;;  %v3637_v40 = vpack.c.bf16 %v104_v37, %v100_v36  ;;  %v103_v43 = vld [vmem:[%s6486_s1 + $0xe0] sm:$0xff]  ;;  %v3669_v44 = vpack.c.bf16 %v106_v41, %v102_v38  ;;  %v101_v45 = vld [vmem:[%s6486_s1 + $0xd0] sm:$0xff]  ;;  %v108_v47 = vld [vmem:[%s6486_s1 + $0x108] sm:$0xff] }
  0x40   :  { %3666 = vmatprep.subr.bf16.mxu1 %v3665_v31  ;;  %v105_v46 = vld [vmem:[%s6486_s1 + $0xf0] sm:$0xff]  ;;  %v112_v48 = vld [vmem:[%s6486_s1 + $0x128] sm:$0xff]  ;;  %v110_v49 = vld [vmem:[%s6486_s1 + $0x118] sm:$0xff]  ;;  %v3639_v51 = vpack.c.bf16 %v103_v43, %v99_v42 }
  0x41   :  { %v114_v50 = vld [vmem:[%s6486_s1 + $0x138] sm:$0xff]  ;;  %v3671_v52 = vpack.c.bf16 %v105_v46, %v101_v45  ;;  %v3641_v53 = vpack.c.bf16 %v112_v48, %v108_v47  ;;  %v107_v54 = vld [vmem:[%s6486_s1 + $0x100] sm:$0xff]  ;;  %v109_v56 = vld [vmem:[%s6486_s1 + $0x110] sm:$0xff] }
  0x42   :  { %3636 = vmatpush1.bf16.msra.mxu0 %v3635_v35  ;;  %v111_v55 = vld [vmem:[%s6486_s1 + $0x120] sm:$0xff]  ;;  %v3673_v57 = vpack.c.bf16 %v114_v50, %v110_v49  ;;  %v113_v58 = vld [vmem:[%s6486_s1 + $0x130] sm:$0xff]  ;;  %v116_v59 = vld [vmem:[%s6486_s1 + $0x148] sm:$0xff] }
  0x43   :  { %3668 = vmatpush1.bf16.msra.mxu1 %v3667_v39  ;;  %3638 = vmatprep.subr.bf16.mxu0 %v3637_v40  ;;  %v120_v60 = vld [vmem:[%s6486_s1 + $0x168] sm:$0xff]  ;;  %v118_v61 = vld [vmem:[%s6486_s1 + $0x158] sm:$0xff]  ;;  %v3643_v63 = vpack.c.bf16 %v111_v55, %v107_v54  ;;  %v3675_v1 = vpack.c.bf16 %v113_v58, %v109_v56  ;;  %v115_v3 = vld [vmem:[%s6486_s1 + $0x140] sm:$0xff] }
  0x44   :  { %3670 = vmatprep.subr.bf16.mxu1 %v3669_v44  ;;  %v122_v62 = vld [vmem:[%s6486_s1 + $0x178] sm:$0xff]  ;;  %v3645_v2 = vpack.c.bf16 %v120_v60, %v116_v59  ;;  %v119_v4 = vld [vmem:[%s6486_s1 + $0x160] sm:$0xff]  ;;  %v117_v5 = vld [vmem:[%s6486_s1 + $0x150] sm:$0xff] }
  0x45   :  { %v3677_v6 = vpack.c.bf16 %v122_v62, %v118_v61  ;;  %v121_v7 = vld [vmem:[%s6486_s1 + $0x170] sm:$0xff]  ;;  %v124_v8 = vld [vmem:[%s6486_s1 + $0x188] sm:$0xff]  ;;  %v126_v10 = vld [vmem:[%s6486_s1 + $0x198] sm:$0xff]  ;;  %v3647_v12 = vpack.c.bf16 %v119_v4, %v115_v3 }
  0x46   :  { %3640 = vmatpush1.bf16.msra.mxu0 %v3639_v51  ;;  %v128_v9 = vld [vmem:[%s6486_s1 + $0x1a8] sm:$0xff]  ;;  %v130_v11 = vld [vmem:[%s6486_s1 + $0x1b8] sm:$0xff]  ;;  %v3679_v13 = vpack.c.bf16 %v121_v7, %v117_v5  ;;  %v123_v15 = vld [vmem:[%s6486_s1 + $0x180] sm:$0xff] }
  0x47   :  { %3672 = vmatpush1.bf16.msra.mxu1 %v3671_v52  ;;  %3642 = vmatprep.subr.bf16.mxu0 %v3641_v53  ;;  %v3649_v14 = vpack.c.bf16 %v128_v9, %v124_v8  ;;  %v127_v16 = vld [vmem:[%s6486_s1 + $0x1a0] sm:$0xff]  ;;  %v125_v17 = vld [vmem:[%s6486_s1 + $0x190] sm:$0xff]  ;;  %v3681_v18 = vpack.c.bf16 %v130_v11, %v126_v10  ;;  %v132_v20 = vld [vmem:[%s6486_s1 + $0x1c8] sm:$0xff] }
  0x48   :  { %3674 = vmatprep.subr.bf16.mxu1 %v3673_v57  ;;  %v129_v19 = vld [vmem:[%s6486_s1 + $0x1b0] sm:$0xff]  ;;  %v136_v21 = vld [vmem:[%s6486_s1 + $0x1e8] sm:$0xff]  ;;  %v134_v22 = vld [vmem:[%s6486_s1 + $0x1d8] sm:$0xff]  ;;  %v3651_v24 = vpack.c.bf16 %v127_v16, %v123_v15 }
  0x49   :  { %v138_v23 = vld [vmem:[%s6486_s1 + $0x1f8] sm:$0xff]  ;;  %v3683_v25 = vpack.c.bf16 %v129_v19, %v125_v17  ;;  %v3653_v26 = vpack.c.bf16 %v136_v21, %v132_v20  ;;  %v131_v27 = vld [vmem:[%s6486_s1 + $0x1c0] sm:$0xff]  ;;  %v133_v29 = vld [vmem:[%s6486_s1 + $0x1d0] sm:$0xff] }
  0x4a   :  { %3644 = vmatpush1.bf16.msra.mxu0 %v3643_v63  ;;  %v135_v28 = vld [vmem:[%s6486_s1 + $0x1e0] sm:$0xff]  ;;  %v3685_v30 = vpack.c.bf16 %v138_v23, %v134_v22  ;;  %v137_v31 = vld [vmem:[%s6486_s1 + $0x1f0] sm:$0xff]  ;;  %v140_v32 = vld [vmem:[#allocation3 + $0x8] sm:$0xff] }
  0x4b   :  { %3676 = vmatpush1.bf16.msra.mxu1 %v3675_v1  ;;  %3646 = vmatprep.subr.bf16.mxu0 %v3645_v2  ;;  %v144_v33 = vld [vmem:[#allocation3 + $0x28] sm:$0xff]  ;;  %v142_v34 = vld [vmem:[#allocation3 + $0x18] sm:$0xff]  ;;  %v3655_v36 = vpack.c.bf16 %v135_v28, %v131_v27  ;;  %v3687_v37 = vpack.c.bf16 %v137_v31, %v133_v29  ;;  %v139_v39 = vld [vmem:[#allocation3] sm:$0xff] }
  0x4c   :  { %3678 = vmatprep.subr.bf16.mxu1 %v3677_v6  ;;  %v146_v35 = vld [vmem:[#allocation3 + $0x38] sm:$0xff]  ;;  %v5529_v38 = vpack.c.bf16 %v144_v33, %v140_v32  ;;  %v143_v40 = vld [vmem:[#allocation3 + $0x20] sm:$0xff]  ;;  %v141_v42 = vld [vmem:[#allocation3 + $0x10] sm:$0xff] }
  0x4d   :  { %v5531_v41 = vpack.c.bf16 %v146_v35, %v142_v34  ;;  %v145_v43 = vld [vmem:[#allocation3 + $0x30] sm:$0xff]  ;;  %v148_v44 = vld [vmem:[#allocation3 + $0x48] sm:$0xff]  ;;  %v67_v46 = vld [vmem:[%s6485_s0] sm:$0xff]  ;;  %v5536_v47 = vpack.c.bf16 %v143_v40, %v139_v39 }
  0x4e   :  { %3648 = vmatpush1.bf16.msra.mxu0 %v3647_v12  ;;  %v152_v45 = vld [vmem:[#allocation3 + $0x68] sm:$0xff]  ;;  %v150_v48 = vld [vmem:[#allocation3 + $0x58] sm:$0xff]  ;;  %v5539_v50 = vpack.c.bf16 %v145_v43, %v141_v42  ;;  %v147_v51 = vld [vmem:[#allocation3 + $0x40] sm:$0xff] }
  0x4f   :  { %3680 = vmatpush1.bf16.msra.mxu1 %v3679_v13  ;;  %3650 = vmatprep.subr.bf16.mxu0 %v3649_v14  ;;  %v154_v49 = vld [vmem:[#allocation3 + $0x78] sm:$0xff]  ;;  %v151_v52 = vld [vmem:[#allocation3 + $0x60] sm:$0xff]  ;;  %v5542_v53 = vpack.c.bf16 %v152_v45, %v148_v44  ;;  %v149_v54 = vld [vmem:[#allocation3 + $0x50] sm:$0xff] }
  0x50   :  { %3682 = vmatprep.subr.bf16.mxu1 %v3681_v18  ;;  %v153_v55 = vld [vmem:[#allocation3 + $0x70] sm:$0xff]  ;;  %v5544_v56 = vpack.c.bf16 %v154_v49, %v150_v48  ;;  %v156_v57 = vld [vmem:[#allocation3 + $0x88] sm:$0xff]  ;;  %v5550_v60 = vpack.c.bf16 %v151_v52, %v147_v51  ;;  %v158_v61 = vld [vmem:[#allocation3 + $0x98] sm:$0xff] }
  0x51   :  { %v160_v58 = vld [vmem:[#allocation3 + $0xa8] sm:$0xff]  ;;  %v162_v62 = vld [vmem:[#allocation3 + $0xb8] sm:$0xff]  ;;  %v5554_v63 = vpack.c.bf16 %v153_v55, %v149_v54  ;;  %v155_v1 = vld [vmem:[#allocation3 + $0x80] sm:$0xff] }
  0x52   :  { %3652 = vmatpush1.bf16.msra.mxu0 %v3651_v24  ;;  %v68_v59 = vld [vmem:[%s6485_s0 + $0x8] sm:$0xff]  ;;  %v159_v2 = vld [vmem:[#allocation3 + $0xa0] sm:$0xff]  ;;  %v5558_v3 = vpack.c.bf16 %v160_v58, %v156_v57  ;;  %v157_v4 = vld [vmem:[#allocation3 + $0x90] sm:$0xff]  ;;  %v5561_v6 = vpack.c.bf16 %v162_v62, %v158_v61 }
  0x53   :  { %3684 = vmatpush1.bf16.msra.mxu1 %v3683_v25  ;;  %3654 = vmatprep.subr.bf16.mxu0 %v3653_v26  ;;  %v161_v5 = vld [vmem:[#allocation3 + $0xb0] sm:$0xff]  ;;  %v164_v7 = vld [vmem:[#allocation3 + $0xc8] sm:$0xff]  ;;  %v5567_v10 = vpack.c.bf16 %v159_v2, %v155_v1  ;;  %v166_v11 = vld [vmem:[#allocation3 + $0xd8] sm:$0xff] }
  0x54   :  { %3686 = vmatprep.subr.bf16.mxu1 %v3685_v30  ;;  %v168_v8 = vld [vmem:[#allocation3 + $0xe8] sm:$0xff]  ;;  %v69_v9 = vld [vmem:[%s6485_s0 + $0x10] sm:$0xff]  ;;  %v170_v12 = vld [vmem:[#allocation3 + $0xf8] sm:$0xff]  ;;  %v5571_v13 = vpack.c.bf16 %v161_v5, %v157_v4 }
  0x55   :  { %v163_v14 = vld [vmem:[#allocation3 + $0xc0] sm:$0xff]  ;;  %v5575_v16 = vpack.c.bf16 %v168_v8, %v164_v7  ;;  %v165_v17 = vld [vmem:[#allocation3 + $0xd0] sm:$0xff]  ;;  %v5578_v19 = vpack.c.bf16 %v170_v12, %v166_v11  ;;  %v172_v20 = vld [vmem:[#allocation3 + $0x108] sm:$0xff] }
  0x56   :  { %3656 = vmatpush1.bf16.msra.mxu0 %v3655_v36  ;;  %v167_v15 = vld [vmem:[#allocation3 + $0xe0] sm:$0xff]  ;;  %v169_v18 = vld [vmem:[#allocation3 + $0xf0] sm:$0xff]  ;;  %v176_v21 = vld [vmem:[#allocation3 + $0x128] sm:$0xff] }
  0x57   :  { %3688 = vmatpush1.bf16.msra.mxu1 %v3687_v37  ;;  %3690 = vmatprep.subr.bf16.mxu0 %v5529_v38  ;;  %v70_v22 = vld [vmem:[%s6485_s0 + $0x18] sm:$0xff]  ;;  %v5584_v23 = vpack.c.bf16 %v167_v15, %v163_v14  ;;  %v5588_v26 = vpack.c.bf16 %v169_v18, %v165_v17  ;;  %v171_v27 = vld [vmem:[#allocation3 + $0x100] sm:$0xff]  ;;  %v5592_v29 = vpack.c.bf16 %v176_v21, %v172_v20  ;;  %v173_v30 = vld [vmem:[#allocation3 + $0x110] sm:$0xff] }
  0x58   :  { %3722 = vmatprep.subr.bf16.mxu1 %v5531_v41  ;;  %v174_v24 = vld [vmem:[#allocation3 + $0x118] sm:$0xff]  ;;  %v175_v28 = vld [vmem:[#allocation3 + $0x120] sm:$0xff]  ;;  %v177_v31 = vld [vmem:[#allocation3 + $0x130] sm:$0xff] }
  0x59   :  { %290 = vmatmul.mubr.f32.vlgmr.msra.gmra.mrb[0].mxu0 %v67_v46  ;;  %v178_v25 = vld [vmem:[#allocation3 + $0x138] sm:$0xff]  ;;  %v180_v33 = vld [vmem:[#allocation3 + $0x148] sm:$0xff]  ;;  %v71_v35 = vld [vmem:[%s6485_s0 + $0x20] sm:$0xff]  ;;  %v5601_v36 = vpack.c.bf16 %v175_v28, %v171_v27  ;;  %v5605_v40 = vpack.c.bf16 %v177_v31, %v173_v30  ;;  %v205_v28 = vlaneseq }
  0x5a   :  { %403 = vmatmul.mubr.f32.vlgmr.msra.gmra.mrb[0].mxu1 %v67_v46  ;;  %3692 = vmatpush1.bf16.msra.mxu0 %v5536_v47  ;;  %v5595_v32 = vpack.c.bf16 %v178_v25, %v174_v24  ;;  %v184_v34 = vld [vmem:[#allocation3 + $0x168] sm:$0xff]  ;;  %v182_v37 = vld [vmem:[#allocation3 + $0x158] sm:$0xff]  ;;  %v179_v42 = vld [vmem:[#allocation3 + $0x140] sm:$0xff] }
  0x5b   :  { %3724 = vmatpush1.bf16.msra.mxu1 %v5539_v50  ;;  %295 = vmatprep.mubr.f32.mxu0 %v5242_v0  ;;  %v186_v39 = vld [vmem:[#allocation3 + $0x178] sm:$0xff]  ;;  %v183_v43 = vld [vmem:[#allocation3 + $0x160] sm:$0xff]  ;;  %v5609_v44 = vpack.c.bf16 %v184_v34, %v180_v33  ;;  %v181_v45 = vld [vmem:[#allocation3 + $0x150] sm:$0xff]  ;;  %v5703_v30 = vshrl.u32 %v205_v28, 7 }
  0x5c   :  { %408 = vmatprep.mubr.f32.mxu1 %v5242_v0  ;;  %3694 = vmatprep.subr.bf16.mxu0 %v5542_v53  ;;  %v185_v46 = vld [vmem:[#allocation3 + $0x170] sm:$0xff]  ;;  %v5612_v48 = vpack.c.bf16 %v186_v39, %v182_v37  ;;  %v188_v49 = vld [vmem:[#allocation3 + $0x188] sm:$0xff]  ;;  %v5618_v54 = vpack.c.bf16 %v183_v43, %v179_v42  ;;  %v190_v55 = vld [vmem:[#allocation3 + $0x198] sm:$0xff] }
  0x5d   :  { %296 = vmatmul.mubr.f32.gmra.mrb[2].mxu0 %v68_v59  ;;  %3726 = vmatprep.subr.bf16.mxu1 %v5544_v56  ;;  %v192_v51 = vld [vmem:[#allocation3 + $0x1a8] sm:$0xff]  ;;  %v194_v57 = vld [vmem:[#allocation3 + $0x1b8] sm:$0xff]  ;;  %v5622_v58 = vpack.c.bf16 %v185_v46, %v181_v45  ;;  %v191_v61 = vld [vmem:[#allocation3 + $0x1a0] sm:$0xff]  ;;  %v207_v31 = vsub.s32 0, %v5703_v30  ;;  %v211_v34 = vsub.s32 1, %v5703_v30  ;;  %v219_v42 = vsub.s32 3, %v5703_v30 }
  0x5e   :  { %409 = vmatmul.mubr.f32.gmra.mrb[2].mxu1 %v68_v59  ;;  %3696 = vmatpush1.bf16.msra.mxu0 %v5550_v60  ;;  %v72_v52 = vld [vmem:[%s6485_s0 + $0x28] sm:$0xff]  ;;  %v187_v59 = vld [vmem:[#allocation3 + $0x180] sm:$0xff]  ;;  %v5626_v62 = vpack.c.bf16 %v192_v51, %v188_v49  ;;  %v189_v1 = vld [vmem:[#allocation3 + $0x190] sm:$0xff]  ;;  %v5629_v4 = vpack.c.bf16 %v194_v57, %v190_v55 }
  0x5f   :  { %3728 = vmatpush1.bf16.msra.mxu1 %v5554_v63  ;;  %301 = vmatprep.mubr.f32.mxu0 %v5242_v0  ;;  %v193_v2 = vld [vmem:[#allocation3 + $0x1b0] sm:$0xff]  ;;  %v196_v5 = vld [vmem:[#allocation3 + $0x1c8] sm:$0xff]  ;;  %v198_v11 = vld [vmem:[#allocation3 + $0x1d8] sm:$0xff] }
  0x60   :  { %414 = vmatprep.mubr.f32.mxu1 %v5242_v0  ;;  %3698 = vmatprep.subr.bf16.mxu0 %v5558_v3  ;;  %v200_v7 = vld [vmem:[#allocation3 + $0x1e8] sm:$0xff]  ;;  %v73_v8 = vld [vmem:[%s6485_s0 + $0x30] sm:$0xff]  ;;  %v202_v12 = vld [vmem:[#allocation3 + $0x1f8] sm:$0xff]  ;;  %v5639_v14 = vpack.c.bf16 %v193_v2, %v189_v1 }
  0x61   :  { %302 = vmatmul.mubr.f32.gmra.mrb[4].mxu0 %v69_v9  ;;  %3730 = vmatprep.subr.bf16.mxu1 %v5561_v6  ;;  %v195_v15 = vld [vmem:[#allocation3 + $0x1c0] sm:$0xff]  ;;  %v5643_v18 = vpack.c.bf16 %v200_v7, %v196_v5  ;;  %v197_v20 = vld [vmem:[#allocation3 + $0x1d0] sm:$0xff]  ;;  %v74_v24 = vld [vmem:[%s6485_s0 + $0x38] sm:$0xff] }
  0x62   :  { %415 = vmatmul.mubr.f32.gmra.mrb[4].mxu1 %v69_v9  ;;  %3700 = vmatpush1.bf16.msra.mxu0 %v5567_v10  ;;  %v5635_v9 = vpack.c.bf16 %v191_v61, %v187_v59  ;;  %v199_v17 = vld [vmem:[#allocation3 + $0x1e0] sm:$0xff]  ;;  %v201_v21 = vld [vmem:[#allocation3 + $0x1f0] sm:$0xff]  ;;  %v215_v59 = vsub.s32 2, %v5703_v30 }
  0x63   :  { %3732 = vmatpush1.bf16.msra.mxu1 %v5571_v13  ;;  %307 = vmatprep.mubr.f32.mxu0 %v5242_v0  ;;  %v5652_v25 = vpack.c.bf16 %v199_v17, %v195_v15  ;;  %v5656_v27 = vpack.c.bf16 %v201_v21, %v197_v20  ;;  %v203_v33 = vld [vmem:[%s6488_s3] sm:$0xf] }
  0x64   :  { %420 = vmatprep.mubr.f32.mxu1 %v5242_v0  ;;  %3702 = vmatprep.subr.bf16.mxu0 %v5575_v16  ;;  %v5716_v37 = vrot.slane %v203_v33, %v211_v34  ;;  %v5723_v57 = vrot.slane %v203_v33, %v219_v42  ;;  %v5729_v1 = vrot.slane %v203_v33, %v215_v59 }
  0x65   :  { %308 = vmatmul.mubr.f32.gmra.mrb[6].mxu0 %v70_v22  ;;  %3734 = vmatprep.subr.bf16.mxu1 %v5578_v19 }
  0x66   :  { %421 = vmatmul.mubr.f32.gmra.mrb[6].mxu1 %v70_v22  ;;  %3704 = vmatpush1.bf16.msra.mxu0 %v5584_v23  ;;  %v5646_v22 = vpack.c.bf16 %v202_v12, %v198_v11 }
  0x67   :  { %3736 = vmatpush1.bf16.msra.mxu1 %v5588_v26  ;;  %313 = vmatprep.mubr.f32.mxu0 %v5242_v0 }
  0x68   :  { %426 = vmatprep.mubr.f32.mxu1 %v5242_v0  ;;  %3706 = vmatprep.subr.bf16.mxu0 %v5592_v29 }
  0x69   :  { %314 = vmatmul.mubr.f32.gmra.mrb[8].mxu0 %v71_v35  ;;  %3738 = vmatprep.subr.bf16.mxu1 %v5595_v32 }
  0x6a   :  { %427 = vmatmul.mubr.f32.gmra.mrb[8].mxu1 %v71_v35  ;;  %3708 = vmatpush1.bf16.msra.mxu0 %v5601_v36  ;;  %v5712_v35 = vrot.slane %v203_v33, %v207_v31 }
  0x6b   :  { %3740 = vmatpush1.bf16.msra.mxu1 %v5605_v40  ;;  %319 = vmatprep.mubr.f32.mxu0 %v5242_v0 }
  0x6c   :  { %432 = vmatprep.mubr.f32.mxu1 %v5242_v0  ;;  %3710 = vmatprep.subr.bf16.mxu0 %v5609_v44 }
  0x6d   :  { %320 = vmatmul.mubr.f32.gmra.mrb[10].mxu0 %v72_v52  ;;  %3742 = vmatprep.subr.bf16.mxu1 %v5612_v48 }
  0x6e   :  { %433 = vmatmul.mubr.f32.gmra.mrb[10].mxu1 %v72_v52  ;;  %3712 = vmatpush1.bf16.msra.mxu0 %v5618_v54 }
  0x6f   :  { %3744 = vmatpush1.bf16.msra.mxu1 %v5622_v58  ;;  %325 = vmatprep.mubr.f32.mxu0 %v5242_v0 }
  0x70   :  { %438 = vmatprep.mubr.f32.mxu1 %v5242_v0  ;;  %3714 = vmatprep.subr.bf16.mxu0 %v5626_v62 }
  0x71   :  { %326 = vmatmul.mubr.f32.gmra.mrb[12].mxu0 %v73_v8  ;;  %3746 = vmatprep.subr.bf16.mxu1 %v5629_v4 }
  0x72   :  { %439 = vmatmul.mubr.f32.gmra.mrb[12].mxu1 %v73_v8  ;;  %3716 = vmatpush1.bf16.msra.mxu0 %v5635_v9 }
  0x73   :  { %3748 = vmatpush1.bf16.msra.mxu1 %v5639_v14  ;;  %331 = vmatprep.mubr.f32.mxu0 %v5242_v0 }
  0x74   :  { %444 = vmatprep.mubr.f32.mxu1 %v5242_v0  ;;  %3718 = vmatprep.subr.bf16.mxu0 %v5643_v18 }
  0x75   :  { %332 = vmatmul.mubr.f32.gmra.mrb[14].mxu0 %v74_v24  ;;  %3750 = vmatprep.subr.bf16.mxu1 %v5646_v22 }
  0x76   :  { %445 = vmatmul.mubr.f32.gmra.mrb[14].mxu1 %v74_v24  ;;  %3720 = vmatpush1.bf16.msra.mxu0 %v5652_v25 }
  0x77   :  { %3752 = vmatpush1.bf16.msra.mxu1 %v5656_v27  ;;  %515 = vmatprep.mubr.f32.mxu0 %v5242_v0 }
  0x78   :  { %586 = vmatprep.mubr.f32.mxu1 %v5242_v0  ;;  %3754 = vmatprep.subr.bf16.mxu0 %v5529_v38 }
  0x79   :  { %516 = vmatmul.mubr.f32.vlgmr.msra.gmra.mrb[0].mxu0 %v5242_v0  ;;  %3786 = vmatprep.subr.bf16.mxu1 %v5531_v41 }
  0x7a   :  { %587 = vmatmul.mubr.f32.vlgmr.msra.gmra.mrb[0].mxu1 %v5242_v0  ;;  %3756 = vmatpush1.bf16.msra.mxu0 %v5536_v47 }
  0x7b   :  { %3788 = vmatpush1.bf16.msra.mxu1 %v5539_v50  ;;  %3758 = vmatprep.subr.bf16.mxu0 %v5542_v53 }
  0x7c   :  { %3790 = vmatprep.subr.bf16.mxu1 %v5544_v56  ;;  %686 = vmatprep.mubr.f32.mxu0 %v5242_v0 }
  0x7d   :  { %757 = vmatprep.mubr.f32.mxu1 %v5242_v0 }
  0x7e   :  { %3760 = vmatpush1.bf16.msra.mxu0 %v5550_v60 }
  0x7f   :  { %3792 = vmatpush1.bf16.msra.mxu1 %v5554_v63  ;;  %3762 = vmatprep.subr.bf16.mxu0 %v5558_v3 }
  0x80   :  { %3794 = vmatprep.subr.bf16.mxu1 %v5561_v6 }
  0x82   :  { %3764 = vmatpush1.bf16.msra.mxu0 %v5567_v10 }
  0x83   :  { %3796 = vmatpush1.bf16.msra.mxu1 %v5571_v13  ;;  %3766 = vmatprep.subr.bf16.mxu0 %v5575_v16 }
  0x84   :  { %3798 = vmatprep.subr.bf16.mxu1 %v5578_v19 }
  0x86   :  { %3768 = vmatpush1.bf16.msra.mxu0 %v5584_v23 }
  0x87   :  { %3800 = vmatpush1.bf16.msra.mxu1 %v5588_v26  ;;  %3770 = vmatprep.subr.bf16.mxu0 %v5592_v29 }
  0x88   :  { %3802 = vmatprep.subr.bf16.mxu1 %v5595_v32 }
  0x8a   :  { %3772 = vmatpush1.bf16.msra.mxu0 %v5601_v36 }
  0x8b   :  { %3804 = vmatpush1.bf16.msra.mxu1 %v5605_v40  ;;  %3774 = vmatprep.subr.bf16.mxu0 %v5609_v44 }
  0x8c   :  { %3806 = vmatprep.subr.bf16.mxu1 %v5612_v48 }
  0x8e   :  { %3776 = vmatpush1.bf16.msra.mxu0 %v5618_v54 }
  0x8f   :  { %3808 = vmatpush1.bf16.msra.mxu1 %v5622_v58  ;;  %3778 = vmatprep.subr.bf16.mxu0 %v5626_v62 }
  0x90   :  { %3810 = vmatprep.subr.bf16.mxu1 %v5629_v4 }
  0x92   :  { %3780 = vmatpush1.bf16.msra.mxu0 %v5635_v9 }
  0x93   :  { %3812 = vmatpush1.bf16.msra.mxu1 %v5639_v14  ;;  %3782 = vmatprep.subr.bf16.mxu0 %v5643_v18 }
  0x94   :  { %3814 = vmatprep.subr.bf16.mxu1 %v5646_v22 }
  0x96   :  { %3784 = vmatpush1.bf16.msra.mxu0 %v5652_v25 }
  0x97   :  { %3816 = vmatpush1.bf16.msra.mxu1 %v5656_v27  ;;  %3818 = vmatprep.subr.bf16.mxu0 %v5529_v38 }
  0x98   :  { %3850 = vmatprep.subr.bf16.mxu1 %v5531_v41 }
 0x14c   :  { %v517_v39 = vpop.f32.mrb[0].mxu0 }
 0x14d   :  { %v4777_v43 = vadd.f32 %v517_v39, %v5712_v35  ;;  %v588_v45 = vpop.f32.mrb[0].mxu1  ;;  %v519_v46 = vpop.f32.mrb[1].mxu0 }
 0x14e   :  { %v4778_v49 = vadd.f32 %v519_v46, %v5716_v37  ;;  %v590_v51 = vpop.f32.mrb[1].mxu1  ;;  %v4793_v5 = vadd.f32 %v588_v45, %v5729_v1 }
 0x14f   :  { %v3577_v52 = vmul.f32 -1.442695, %v4777_v43  ;;  %v4794_v61 = vadd.f32 %v590_v51, %v5723_v57 }
 0x150   :  { %v3578_v55 = vmul.f32 -1.442695, %v4778_v49 }
 0x151   :  { %4911 = vpow2.f32 %v3577_v52  ;;  %v3579_v2 = vmul.f32 -1.442695, %v4794_v61 }
 0x152   :  { %4913 = vpow2.f32 %v3578_v55 }
 0x153   :  { %4915 = vpow2.f32 %v3579_v2 }
 0x154   :  { %4917 = vtanh.f32 %v4793_v5 }
 0x15b   :  { %v4912_v7 = vpop.eup %4911 }
 0x15c   :  { %v4914_v8 = vpop.eup %4913  ;;  %v600_v11 = vadd.f32 1.0, %v4912_v7 }
 0x15d   :  { %v606_v12 = vadd.f32 1.0, %v4914_v8  ;;  %v4916_v15 = vpop.eup %4915 }
 0x15e   :  { %4919 = vrcp.f32 %v600_v11  ;;  %v4918_v17 = vpop.eup %4917  ;;  %v613_v28 = vadd.f32 1.0, %v4916_v15 }
 0x15f   :  { %4921 = vrcp.f32 %v606_v12 }
 0x160   :  { %4923 = vrcp.f32 %v613_v28 }
 0x168   :  { %v4920_v20 = vpop.eup %4919 }
 0x169   :  { %v4922_v21 = vpop.eup %4921  ;;  %v617_v24 = vmul.f32 %v4920_v20, %v4918_v17 }
 0x16a   :  { %v616_v39 = vmul.f32 0.0, %v4922_v21  ;;  %v4924_v43 = vpop.eup %4923 }
 0x16c   :  { %v5732_v33 = vadd.f32 %v617_v24, %v616_v39 }
 0x16e   :  { %4925 = vtanh.f32 %v5732_v33 }
 0x178   :  { %v4926_v45 = vpop.eup %4925 }
 0x179   :  { %v5735_v46 = vmul.f32 %v4926_v45, %v4924_v43 }
 0x17b   :  { %687 = vmatmul.mubr.f32.vlgmr.msra.gmra.mrb[2].mxu0 %v5735_v46  ;;  %758 = vmatmul.mubr.f32.vlgmr.msra.gmra.mrb[2].mxu1 %v5735_v46 }
 0x17c   :  { %3820 = vmatpush1.bf16.msra.mxu0 %v5536_v47  ;;  %3852 = vmatpush1.bf16.msra.mxu1 %v5539_v50 }
 0x17d   :  { %3822 = vmatprep.subr.bf16.mxu0 %v5542_v53  ;;  %3854 = vmatprep.subr.bf16.mxu1 %v5544_v56 }
 0x17e   :  { %857 = vmatprep.mubr.f32.mxu0 %v5242_v0  ;;  %928 = vmatprep.mubr.f32.mxu1 %v5242_v0 }
 0x180   :  { %3824 = vmatpush1.bf16.msra.mxu0 %v5550_v60  ;;  %3856 = vmatpush1.bf16.msra.mxu1 %v5554_v63 }
 0x181   :  { %3826 = vmatprep.subr.bf16.mxu0 %v5558_v3  ;;  %3858 = vmatprep.subr.bf16.mxu1 %v5561_v6 }
 0x184   :  { %3828 = vmatpush1.bf16.msra.mxu0 %v5567_v10  ;;  %3860 = vmatpush1.bf16.msra.mxu1 %v5571_v13 }
 0x185   :  { %3830 = vmatprep.subr.bf16.mxu0 %v5575_v16  ;;  %3862 = vmatprep.subr.bf16.mxu1 %v5578_v19 }
 0x188   :  { %3832 = vmatpush1.bf16.msra.mxu0 %v5584_v23  ;;  %3864 = vmatpush1.bf16.msra.mxu1 %v5588_v26 }
 0x189   :  { %3834 = vmatprep.subr.bf16.mxu0 %v5592_v29  ;;  %3866 = vmatprep.subr.bf16.mxu1 %v5595_v32 }
 0x18c   :  { %3836 = vmatpush1.bf16.msra.mxu0 %v5601_v36  ;;  %3868 = vmatpush1.bf16.msra.mxu1 %v5605_v40 }
 0x18d   :  { %3838 = vmatprep.subr.bf16.mxu0 %v5609_v44  ;;  %3870 = vmatprep.subr.bf16.mxu1 %v5612_v48 }
 0x190   :  { %3840 = vmatpush1.bf16.msra.mxu0 %v5618_v54  ;;  %3872 = vmatpush1.bf16.msra.mxu1 %v5622_v58 }
 0x191   :  { %3842 = vmatprep.subr.bf16.mxu0 %v5626_v62  ;;  %3874 = vmatprep.subr.bf16.mxu1 %v5629_v4 }
 0x194   :  { %3844 = vmatpush1.bf16.msra.mxu0 %v5635_v9  ;;  %3876 = vmatpush1.bf16.msra.mxu1 %v5639_v14 }
 0x195   :  { %3846 = vmatprep.subr.bf16.mxu0 %v5643_v18  ;;  %3878 = vmatprep.subr.bf16.mxu1 %v5646_v22 }
 0x198   :  { %3848 = vmatpush1.bf16.msra.mxu0 %v5652_v25  ;;  %3880 = vmatpush1.bf16.msra.mxu1 %v5656_v27 }
 0x199   :  { %3882 = vmatprep.subr.bf16.mxu0 %v5529_v38  ;;  %3914 = vmatprep.subr.bf16.mxu1 %v5531_v41 }
 0x24e   :  { %v688_v49 = vpop.f32.mrb[2].mxu0  ;;  %v759_v51 = vpop.f32.mrb[2].mxu1 }
 0x24f   :  { %v4779_v52 = vadd.f32 %v688_v49, %v5712_v35  ;;  %v690_v55 = vpop.f32.mrb[3].mxu0  ;;  %v761_v61 = vpop.f32.mrb[3].mxu1  ;;  %v4795_v12 = vadd.f32 %v759_v51, %v5729_v1 }
 0x250   :  { %v4780_v2 = vadd.f32 %v690_v55, %v5716_v37  ;;  %v4796_v8 = vadd.f32 %v761_v61, %v5723_v57 }
 0x251   :  { %v3580_v5 = vmul.f32 -1.442695, %v4779_v52 }
 0x252   :  { %v3581_v7 = vmul.f32 -1.442695, %v4780_v2  ;;  %v3582_v11 = vmul.f32 -1.442695, %v4796_v8 }
 0x253   :  { %4927 = vpow2.f32 %v3580_v5 }
 0x254   :  { %4929 = vpow2.f32 %v3581_v7 }
 0x255   :  { %4931 = vpow2.f32 %v3582_v11 }
 0x256   :  { %4933 = vtanh.f32 %v4795_v12 }
 0x25d   :  { %v4928_v15 = vpop.eup %4927 }
 0x25e   :  { %v4930_v17 = vpop.eup %4929  ;;  %v771_v20 = vadd.f32 1.0, %v4928_v15 }
 0x25f   :  { %v777_v21 = vadd.f32 1.0, %v4930_v17  ;;  %v4932_v24 = vpop.eup %4931 }
 0x260   :  { %4935 = vrcp.f32 %v771_v20  ;;  %v4934_v28 = vpop.eup %4933  ;;  %v784_v49 = vadd.f32 1.0, %v4932_v24 }
 0x261   :  { %4937 = vrcp.f32 %v777_v21 }
 0x262   :  { %4939 = vrcp.f32 %v784_v49 }
 0x26a   :  { %v4936_v39 = vpop.eup %4935 }
 0x26b   :  { %v4938_v43 = vpop.eup %4937  ;;  %v788_v45 = vmul.f32 %v4936_v39, %v4934_v28 }
 0x26c   :  { %v787_v52 = vmul.f32 %v4938_v43, %v5732_v33  ;;  %v4940_v51 = vpop.eup %4939 }
 0x26e   :  { %v5778_v55 = vadd.f32 %v788_v45, %v787_v52 }
 0x270   :  { %4941 = vtanh.f32 %v5778_v55 }
 0x27a   :  { %v4942_v61 = vpop.eup %4941 }
 0x27b   :  { %v5781_v2 = vmul.f32 %v4942_v61, %v4940_v51 }
 0x27d   :  { %858 = vmatmul.mubr.f32.vlgmr.msra.gmra.mrb[4].mxu0 %v5781_v2  ;;  %929 = vmatmul.mubr.f32.vlgmr.msra.gmra.mrb[4].mxu1 %v5781_v2 }
 0x27e   :  { %3884 = vmatpush1.bf16.msra.mxu0 %v5536_v47  ;;  %3916 = vmatpush1.bf16.msra.mxu1 %v5539_v50 }
 0x27f   :  { %3886 = vmatprep.subr.bf16.mxu0 %v5542_v53  ;;  %3918 = vmatprep.subr.bf16.mxu1 %v5544_v56 }
 0x280   :  { %1028 = vmatprep.mubr.f32.mxu0 %v5242_v0  ;;  %1099 = vmatprep.mubr.f32.mxu1 %v5242_v0 }
 0x282   :  { %3888 = vmatpush1.bf16.msra.mxu0 %v5550_v60  ;;  %3920 = vmatpush1.bf16.msra.mxu1 %v5554_v63 }
 0x283   :  { %3890 = vmatprep.subr.bf16.mxu0 %v5558_v3  ;;  %3922 = vmatprep.subr.bf16.mxu1 %v5561_v6 }
 0x286   :  { %3892 = vmatpush1.bf16.msra.mxu0 %v5567_v10  ;;  %3924 = vmatpush1.bf16.msra.mxu1 %v5571_v13 }
 0x287   :  { %3894 = vmatprep.subr.bf16.mxu0 %v5575_v16  ;;  %3926 = vmatprep.subr.bf16.mxu1 %v5578_v19 }
 0x28a   :  { %3896 = vmatpush1.bf16.msra.mxu0 %v5584_v23  ;;  %3928 = vmatpush1.bf16.msra.mxu1 %v5588_v26 }
 0x28b   :  { %3898 = vmatprep.subr.bf16.mxu0 %v5592_v29  ;;  %3930 = vmatprep.subr.bf16.mxu1 %v5595_v32 }
 0x28e   :  { %3900 = vmatpush1.bf16.msra.mxu0 %v5601_v36  ;;  %3932 = vmatpush1.bf16.msra.mxu1 %v5605_v40 }
 0x28f   :  { %3902 = vmatprep.subr.bf16.mxu0 %v5609_v44  ;;  %3934 = vmatprep.subr.bf16.mxu1 %v5612_v48 }
 0x292   :  { %3904 = vmatpush1.bf16.msra.mxu0 %v5618_v54  ;;  %3936 = vmatpush1.bf16.msra.mxu1 %v5622_v58 }
 0x293   :  { %3906 = vmatprep.subr.bf16.mxu0 %v5626_v62  ;;  %3938 = vmatprep.subr.bf16.mxu1 %v5629_v4 }
 0x296   :  { %3908 = vmatpush1.bf16.msra.mxu0 %v5635_v9  ;;  %3940 = vmatpush1.bf16.msra.mxu1 %v5639_v14 }
 0x297   :  { %3910 = vmatprep.subr.bf16.mxu0 %v5643_v18  ;;  %3942 = vmatprep.subr.bf16.mxu1 %v5646_v22 }
 0x29a   :  { %3912 = vmatpush1.bf16.msra.mxu0 %v5652_v25  ;;  %3944 = vmatpush1.bf16.msra.mxu1 %v5656_v27 }
 0x29b   :  { %3946 = vmatprep.subr.bf16.mxu0 %v5529_v38  ;;  %3978 = vmatprep.subr.bf16.mxu1 %v5531_v41 }
 0x350   :  { %v859_v33 = vpop.f32.mrb[4].mxu0  ;;  %v930_v5 = vpop.f32.mrb[4].mxu1 }
 0x351   :  { %v4781_v7 = vadd.f32 %v859_v33, %v5712_v35  ;;  %v861_v8 = vpop.f32.mrb[5].mxu0  ;;  %v932_v11 = vpop.f32.mrb[5].mxu1  ;;  %v4797_v24 = vadd.f32 %v930_v5, %v5729_v1 }
 0x352   :  { %v4782_v12 = vadd.f32 %v861_v8, %v5716_v37  ;;  %v4798_v20 = vadd.f32 %v932_v11, %v5723_v57 }
 0x353   :  { %v3583_v15 = vmul.f32 -1.442695, %v4781_v7 }
 0x354   :  { %v3584_v17 = vmul.f32 -1.442695, %v4782_v12  ;;  %v3585_v21 = vmul.f32 -1.442695, %v4798_v20 }
 0x355   :  { %4943 = vpow2.f32 %v3583_v15 }
 0x356   :  { %4945 = vpow2.f32 %v3584_v17 }
 0x357   :  { %4947 = vpow2.f32 %v3585_v21 }
 0x358   :  { %4949 = vtanh.f32 %v4797_v24 }
 0x35f   :  { %v4944_v28 = vpop.eup %4943 }
 0x360   :  { %v4946_v39 = vpop.eup %4945  ;;  %v942_v43 = vadd.f32 1.0, %v4944_v28 }
 0x361   :  { %v948_v45 = vadd.f32 1.0, %v4946_v39  ;;  %v4948_v49 = vpop.eup %4947 }
 0x362   :  { %4951 = vrcp.f32 %v942_v43  ;;  %v4950_v52 = vpop.eup %4949  ;;  %v955_v7 = vadd.f32 1.0, %v4948_v49 }
 0x363   :  { %4953 = vrcp.f32 %v948_v45 }
 0x364   :  { %4955 = vrcp.f32 %v955_v7 }
 0x36c   :  { %v4952_v51 = vpop.eup %4951 }
 0x36d   :  { %v4954_v61 = vpop.eup %4953  ;;  %v959_v33 = vmul.f32 %v4952_v51, %v4950_v52 }
 0x36e   :  { %v958_v8 = vmul.f32 %v4954_v61, %v5778_v55  ;;  %v4956_v5 = vpop.eup %4955 }
 0x370   :  { %v5824_v11 = vadd.f32 %v959_v33, %v958_v8 }
 0x372   :  { %4957 = vtanh.f32 %v5824_v11 }
 0x37c   :  { %v4958_v12 = vpop.eup %4957 }
 0x37d   :  { %v5827_v15 = vmul.f32 %v4958_v12, %v4956_v5 }
 0x37f   :  { %1029 = vmatmul.mubr.f32.vlgmr.msra.gmra.mrb[6].mxu0 %v5827_v15  ;;  %1100 = vmatmul.mubr.f32.vlgmr.msra.gmra.mrb[6].mxu1 %v5827_v15 }
 0x380   :  { %3948 = vmatpush1.bf16.msra.mxu0 %v5536_v47  ;;  %3980 = vmatpush1.bf16.msra.mxu1 %v5539_v50 }
 0x381   :  { %3950 = vmatprep.subr.bf16.mxu0 %v5542_v53  ;;  %3982 = vmatprep.subr.bf16.mxu1 %v5544_v56 }
 0x382   :  { %1199 = vmatprep.mubr.f32.mxu0 %v5242_v0  ;;  %1270 = vmatprep.mubr.f32.mxu1 %v5242_v0 }
 0x384   :  { %3952 = vmatpush1.bf16.msra.mxu0 %v5550_v60  ;;  %3984 = vmatpush1.bf16.msra.mxu1 %v5554_v63 }
 0x385   :  { %3954 = vmatprep.subr.bf16.mxu0 %v5558_v3  ;;  %3986 = vmatprep.subr.bf16.mxu1 %v5561_v6 }
 0x388   :  { %3956 = vmatpush1.bf16.msra.mxu0 %v5567_v10  ;;  %3988 = vmatpush1.bf16.msra.mxu1 %v5571_v13 }
 0x389   :  { %3958 = vmatprep.subr.bf16.mxu0 %v5575_v16  ;;  %3990 = vmatprep.subr.bf16.mxu1 %v5578_v19 }
 0x38c   :  { %3960 = vmatpush1.bf16.msra.mxu0 %v5584_v23  ;;  %3992 = vmatpush1.bf16.msra.mxu1 %v5588_v26 }
 0x38d   :  { %3962 = vmatprep.subr.bf16.mxu0 %v5592_v29  ;;  %3994 = vmatprep.subr.bf16.mxu1 %v5595_v32 }
 0x390   :  { %3964 = vmatpush1.bf16.msra.mxu0 %v5601_v36  ;;  %3996 = vmatpush1.bf16.msra.mxu1 %v5605_v40 }
 0x391   :  { %3966 = vmatprep.subr.bf16.mxu0 %v5609_v44  ;;  %3998 = vmatprep.subr.bf16.mxu1 %v5612_v48 }
 0x394   :  { %3968 = vmatpush1.bf16.msra.mxu0 %v5618_v54  ;;  %4000 = vmatpush1.bf16.msra.mxu1 %v5622_v58 }
 0x395   :  { %3970 = vmatprep.subr.bf16.mxu0 %v5626_v62  ;;  %4002 = vmatprep.subr.bf16.mxu1 %v5629_v4 }
 0x398   :  { %3972 = vmatpush1.bf16.msra.mxu0 %v5635_v9  ;;  %4004 = vmatpush1.bf16.msra.mxu1 %v5639_v14 }
 0x399   :  { %3974 = vmatprep.subr.bf16.mxu0 %v5643_v18  ;;  %4006 = vmatprep.subr.bf16.mxu1 %v5646_v22 }
 0x39c   :  { %3976 = vmatpush1.bf16.msra.mxu0 %v5652_v25  ;;  %4008 = vmatpush1.bf16.msra.mxu1 %v5656_v27 }
 0x39d   :  { %4010 = vmatprep.subr.bf16.mxu0 %v5529_v38  ;;  %4042 = vmatprep.subr.bf16.mxu1 %v5531_v41 }
 0x452   :  { %v1030_v55 = vpop.f32.mrb[6].mxu0  ;;  %v1101_v17 = vpop.f32.mrb[6].mxu1 }
 0x453   :  { %v4783_v20 = vadd.f32 %v1030_v55, %v5712_v35  ;;  %v1032_v21 = vpop.f32.mrb[7].mxu0  ;;  %v1103_v24 = vpop.f32.mrb[7].mxu1  ;;  %v4799_v52 = vadd.f32 %v1101_v17, %v5729_v1 }
 0x454   :  { %v4784_v28 = vadd.f32 %v1032_v21, %v5716_v37  ;;  %v4800_v45 = vadd.f32 %v1103_v24, %v5723_v57 }
 0x455   :  { %v3586_v39 = vmul.f32 -1.442695, %v4783_v20 }
 0x456   :  { %v3587_v43 = vmul.f32 -1.442695, %v4784_v28  ;;  %v3588_v49 = vmul.f32 -1.442695, %v4800_v45 }
 0x457   :  { %4959 = vpow2.f32 %v3586_v39 }
 0x458   :  { %4961 = vpow2.f32 %v3587_v43 }
 0x459   :  { %4963 = vpow2.f32 %v3588_v49 }
 0x45a   :  { %4965 = vtanh.f32 %v4799_v52 }
 0x461   :  { %v4960_v51 = vpop.eup %4959 }
 0x462   :  { %v4962_v61 = vpop.eup %4961  ;;  %v1113_v33 = vadd.f32 1.0, %v4960_v51 }
 0x463   :  { %v1119_v7 = vadd.f32 1.0, %v4962_v61  ;;  %v4964_v8 = vpop.eup %4963 }
 0x464   :  { %4967 = vrcp.f32 %v1113_v33  ;;  %v4966_v5 = vpop.eup %4965  ;;  %v1126_v21 = vadd.f32 1.0, %v4964_v8 }
 0x465   :  { %4969 = vrcp.f32 %v1119_v7 }
 0x466   :  { %4971 = vrcp.f32 %v1126_v21 }
 0x46e   :  { %v4968_v12 = vpop.eup %4967 }
 0x46f   :  { %v4970_v55 = vpop.eup %4969  ;;  %v1130_v20 = vmul.f32 %v4968_v12, %v4966_v5 }
 0x470   :  { %v1129_v28 = vmul.f32 %v4970_v55, %v5824_v11  ;;  %v4972_v17 = vpop.eup %4971 }
 0x472   :  { %v5870_v24 = vadd.f32 %v1130_v20, %v1129_v28 }
 0x474   :  { %4973 = vtanh.f32 %v5870_v24 }
 0x47e   :  { %v4974_v39 = vpop.eup %4973 }
 0x47f   :  { %v5873_v43 = vmul.f32 %v4974_v39, %v4972_v17 }
 0x481   :  { %1200 = vmatmul.mubr.f32.vlgmr.msra.gmra.mrb[8].mxu0 %v5873_v43  ;;  %1271 = vmatmul.mubr.f32.vlgmr.msra.gmra.mrb[8].mxu1 %v5873_v43 }
 0x482   :  { %4012 = vmatpush1.bf16.msra.mxu0 %v5536_v47  ;;  %4044 = vmatpush1.bf16.msra.mxu1 %v5539_v50 }
 0x483   :  { %4014 = vmatprep.subr.bf16.mxu0 %v5542_v53  ;;  %4046 = vmatprep.subr.bf16.mxu1 %v5544_v56 }
 0x484   :  { %1370 = vmatprep.mubr.f32.mxu0 %v5242_v0  ;;  %1441 = vmatprep.mubr.f32.mxu1 %v5242_v0 }
 0x486   :  { %4016 = vmatpush1.bf16.msra.mxu0 %v5550_v60  ;;  %4048 = vmatpush1.bf16.msra.mxu1 %v5554_v63 }
 0x487   :  { %4018 = vmatprep.subr.bf16.mxu0 %v5558_v3  ;;  %4050 = vmatprep.subr.bf16.mxu1 %v5561_v6 }
 0x48a   :  { %4020 = vmatpush1.bf16.msra.mxu0 %v5567_v10  ;;  %4052 = vmatpush1.bf16.msra.mxu1 %v5571_v13 }
 0x48b   :  { %4022 = vmatprep.subr.bf16.mxu0 %v5575_v16  ;;  %4054 = vmatprep.subr.bf16.mxu1 %v5578_v19 }
 0x48e   :  { %4024 = vmatpush1.bf16.msra.mxu0 %v5584_v23  ;;  %4056 = vmatpush1.bf16.msra.mxu1 %v5588_v26 }
 0x48f   :  { %4026 = vmatprep.subr.bf16.mxu0 %v5592_v29  ;;  %4058 = vmatprep.subr.bf16.mxu1 %v5595_v32 }
 0x492   :  { %4028 = vmatpush1.bf16.msra.mxu0 %v5601_v36  ;;  %4060 = vmatpush1.bf16.msra.mxu1 %v5605_v40 }
 0x493   :  { %4030 = vmatprep.subr.bf16.mxu0 %v5609_v44  ;;  %4062 = vmatprep.subr.bf16.mxu1 %v5612_v48 }
 0x496   :  { %4032 = vmatpush1.bf16.msra.mxu0 %v5618_v54  ;;  %4064 = vmatpush1.bf16.msra.mxu1 %v5622_v58 }
 0x497   :  { %4034 = vmatprep.subr.bf16.mxu0 %v5626_v62  ;;  %4066 = vmatprep.subr.bf16.mxu1 %v5629_v4 }
 0x49a   :  { %4036 = vmatpush1.bf16.msra.mxu0 %v5635_v9  ;;  %4068 = vmatpush1.bf16.msra.mxu1 %v5639_v14 }
 0x49b   :  { %4038 = vmatprep.subr.bf16.mxu0 %v5643_v18  ;;  %4070 = vmatprep.subr.bf16.mxu1 %v5646_v22 }
 0x49e   :  { %4040 = vmatpush1.bf16.msra.mxu0 %v5652_v25  ;;  %4072 = vmatpush1.bf16.msra.mxu1 %v5656_v27 }
 0x49f   :  { %4074 = vmatprep.subr.bf16.mxu0 %v5529_v38  ;;  %4106 = vmatprep.subr.bf16.mxu1 %v5531_v41 }
 0x554   :  { %v1201_v11 = vpop.f32.mrb[8].mxu0  ;;  %v1272_v45 = vpop.f32.mrb[8].mxu1 }
 0x555   :  { %v4785_v49 = vadd.f32 %v1201_v11, %v5712_v35  ;;  %v1203_v52 = vpop.f32.mrb[9].mxu0  ;;  %v1274_v51 = vpop.f32.mrb[9].mxu1  ;;  %v4801_v12 = vadd.f32 %v1272_v45, %v5729_v1 }
 0x556   :  { %v4786_v61 = vadd.f32 %v1203_v52, %v5716_v37  ;;  %v4802_v8 = vadd.f32 %v1274_v51, %v5723_v57 }
 0x557   :  { %v3589_v33 = vmul.f32 -1.442695, %v4785_v49 }
 0x558   :  { %v3590_v7 = vmul.f32 -1.442695, %v4786_v61  ;;  %v3591_v5 = vmul.f32 -1.442695, %v4802_v8 }
 0x559   :  { %4975 = vpow2.f32 %v3589_v33 }
 0x55a   :  { %4977 = vpow2.f32 %v3590_v7 }
 0x55b   :  { %4979 = vpow2.f32 %v3591_v5 }
 0x55c   :  { %4981 = vtanh.f32 %v4801_v12 }
 0x563   :  { %v4976_v55 = vpop.eup %4975 }
 0x564   :  { %v4978_v20 = vpop.eup %4977  ;;  %v1284_v21 = vadd.f32 1.0, %v4976_v55 }
 0x565   :  { %v1290_v28 = vadd.f32 1.0, %v4978_v20  ;;  %v4980_v17 = vpop.eup %4979 }
 0x566   :  { %4983 = vrcp.f32 %v1284_v21  ;;  %v4982_v39 = vpop.eup %4981  ;;  %v1297_v61 = vadd.f32 1.0, %v4980_v17 }
 0x567   :  { %4985 = vrcp.f32 %v1290_v28 }
 0x568   :  { %4987 = vrcp.f32 %v1297_v61 }
 0x570   :  { %v4984_v11 = vpop.eup %4983 }
 0x571   :  { %v4986_v49 = vpop.eup %4985  ;;  %v1301_v52 = vmul.f32 %v4984_v11, %v4982_v39 }
 0x572   :  { %v1300_v33 = vmul.f32 %v4986_v49, %v5870_v24  ;;  %v4988_v45 = vpop.eup %4987 }
 0x574   :  { %v5916_v51 = vadd.f32 %v1301_v52, %v1300_v33 }
 0x576   :  { %4989 = vtanh.f32 %v5916_v51 }
 0x580   :  { %v4990_v7 = vpop.eup %4989 }
 0x581   :  { %v5919_v8 = vmul.f32 %v4990_v7, %v4988_v45 }
 0x583   :  { %1371 = vmatmul.mubr.f32.vlgmr.msra.gmra.mrb[10].mxu0 %v5919_v8  ;;  %1442 = vmatmul.mubr.f32.vlgmr.msra.gmra.mrb[10].mxu1 %v5919_v8 }
 0x584   :  { %4076 = vmatpush1.bf16.msra.mxu0 %v5536_v47  ;;  %4108 = vmatpush1.bf16.msra.mxu1 %v5539_v50 }
 0x585   :  { %4078 = vmatprep.subr.bf16.mxu0 %v5542_v53  ;;  %4110 = vmatprep.subr.bf16.mxu1 %v5544_v56 }
 0x586   :  { %1541 = vmatprep.mubr.f32.mxu0 %v5242_v0  ;;  %1612 = vmatprep.mubr.f32.mxu1 %v5242_v0 }
 0x588   :  { %4080 = vmatpush1.bf16.msra.mxu0 %v5550_v60  ;;  %4112 = vmatpush1.bf16.msra.mxu1 %v5554_v63 }
 0x589   :  { %4082 = vmatprep.subr.bf16.mxu0 %v5558_v3  ;;  %4114 = vmatprep.subr.bf16.mxu1 %v5561_v6 }
 0x58c   :  { %4084 = vmatpush1.bf16.msra.mxu0 %v5567_v10  ;;  %4116 = vmatpush1.bf16.msra.mxu1 %v5571_v13 }
 0x58d   :  { %4086 = vmatprep.subr.bf16.mxu0 %v5575_v16  ;;  %4118 = vmatprep.subr.bf16.mxu1 %v5578_v19 }
 0x590   :  { %4088 = vmatpush1.bf16.msra.mxu0 %v5584_v23  ;;  %4120 = vmatpush1.bf16.msra.mxu1 %v5588_v26 }
 0x591   :  { %4090 = vmatprep.subr.bf16.mxu0 %v5592_v29  ;;  %4122 = vmatprep.subr.bf16.mxu1 %v5595_v32 }
 0x594   :  { %4092 = vmatpush1.bf16.msra.mxu0 %v5601_v36  ;;  %4124 = vmatpush1.bf16.msra.mxu1 %v5605_v40 }
 0x595   :  { %4094 = vmatprep.subr.bf16.mxu0 %v5609_v44  ;;  %4126 = vmatprep.subr.bf16.mxu1 %v5612_v48 }
 0x598   :  { %4096 = vmatpush1.bf16.msra.mxu0 %v5618_v54  ;;  %4128 = vmatpush1.bf16.msra.mxu1 %v5622_v58 }
 0x599   :  { %4098 = vmatprep.subr.bf16.mxu0 %v5626_v62  ;;  %4130 = vmatprep.subr.bf16.mxu1 %v5629_v4 }
 0x59c   :  { %4100 = vmatpush1.bf16.msra.mxu0 %v5635_v9  ;;  %4132 = vmatpush1.bf16.msra.mxu1 %v5639_v14 }
 0x59d   :  { %4102 = vmatprep.subr.bf16.mxu0 %v5643_v18  ;;  %4134 = vmatprep.subr.bf16.mxu1 %v5646_v22 }
 0x5a0   :  { %4104 = vmatpush1.bf16.msra.mxu0 %v5652_v25  ;;  %4136 = vmatpush1.bf16.msra.mxu1 %v5656_v27 }
 0x5a1   :  { %4138 = vmatprep.subr.bf16.mxu0 %v5529_v38  ;;  %4170 = vmatprep.subr.bf16.mxu1 %v5531_v41 }
 0x656   :  { %v1372_v24 = vpop.f32.mrb[10].mxu0  ;;  %v1443_v5 = vpop.f32.mrb[10].mxu1 }
 0x657   :  { %v4787_v12 = vadd.f32 %v1372_v24, %v5712_v35  ;;  %v1374_v55 = vpop.f32.mrb[11].mxu0  ;;  %v1445_v20 = vpop.f32.mrb[11].mxu1  ;;  %v4803_v49 = vadd.f32 %v1443_v5, %v5729_v1 }
 0x658   :  { %v4788_v21 = vadd.f32 %v1374_v55, %v5716_v37  ;;  %v4804_v39 = vadd.f32 %v1445_v20, %v5723_v57 }
 0x659   :  { %v3592_v28 = vmul.f32 -1.442695, %v4787_v12 }
 0x65a   :  { %v3593_v17 = vmul.f32 -1.442695, %v4788_v21  ;;  %v3594_v11 = vmul.f32 -1.442695, %v4804_v39  ;;  %v1829_v39 = vld [vmem:[#allocation5 + $0x10] sm:$0xff] }
 0x65b   :  { %4991 = vpow2.f32 %v3592_v28 }
 0x65c   :  { %4993 = vpow2.f32 %v3593_v17 }
 0x65d   :  { %4995 = vpow2.f32 %v3594_v11  ;;  %v1833_v11 = vld [vmem:[#allocation5 + $0x30] sm:$0xff] }
 0x65e   :  { %4997 = vtanh.f32 %v4803_v49  ;;  %v1836_v49 = vld [vmem:[#allocation5 + $0x48] sm:$0xff] }
 0x665   :  { %v4992_v38 = vpop.eup %4991 }
 0x666   :  { %v4994_v52 = vpop.eup %4993  ;;  %v1455_v41 = vadd.f32 1.0, %v4992_v38  ;;  %v1840_v38 = vld [vmem:[#allocation5 + $0x68] sm:$0xff] }
 0x667   :  { %v1461_v61 = vadd.f32 1.0, %v4994_v52  ;;  %v4996_v33 = vpop.eup %4995  ;;  %v1838_v52 = vld [vmem:[#allocation5 + $0x58] sm:$0xff] }
 0x668   :  { %4999 = vrcp.f32 %v1455_v41  ;;  %v4998_v45 = vpop.eup %4997  ;;  %v1468_v55 = vadd.f32 1.0, %v4996_v33  ;;  %v1842_v41 = vld [vmem:[#allocation5 + $0x78] sm:$0xff] }
 0x669   :  { %5001 = vrcp.f32 %v1461_v61 }
 0x66a   :  { %5003 = vrcp.f32 %v1468_v55 }
 0x672   :  { %v5000_v7 = vpop.eup %4999 }
 0x673   :  { %v5002_v24 = vpop.eup %5001  ;;  %v1472_v12 = vmul.f32 %v5000_v7, %v4998_v45  ;;  %v4235_v7 = vpack.c.bf16 %v1833_v11, %v1829_v39  ;;  %v1859_v39 = vld [vmem:[#allocation5 + $0x100] sm:$0xff] }
 0x674   :  { %v1471_v21 = vmul.f32 %v5002_v24, %v5916_v51  ;;  %v5004_v5 = vpop.eup %5003  ;;  %v1831_v51 = vld [vmem:[#allocation5 + $0x20] sm:$0xff] }
 0x675   :  { %v1835_v24 = vld [vmem:[#allocation5 + $0x40] sm:$0xff] }
 0x676   :  { %v5962_v20 = vadd.f32 %v1472_v12, %v1471_v21  ;;  %v1839_v12 = vld [vmem:[#allocation5 + $0x60] sm:$0xff]  ;;  %v4205_v21 = vpack.c.bf16 %v1840_v38, %v1836_v49 }
 0x677   :  { %v1863_v11 = vld [vmem:[#allocation5 + $0x120] sm:$0xff] }
 0x678   :  { %5005 = vtanh.f32 %v5962_v20 }
 0x682   :  { %v5006_v28 = vpop.eup %5005 }
 0x683   :  { %v5965_v17 = vmul.f32 %v5006_v28, %v5004_v5  ;;  %v1837_v5 = vld [vmem:[#allocation5 + $0x50] sm:$0xff] }
 0x684   :  { %v1841_v28 = vld [vmem:[#allocation5 + $0x70] sm:$0xff] }
 0x685   :  { %1542 = vmatmul.mubr.f32.vlgmr.msra.gmra.mrb[12].mxu0 %v5965_v17  ;;  %1613 = vmatmul.mubr.f32.vlgmr.msra.gmra.mrb[12].mxu1 %v5965_v17 }
 0x686   :  { %4140 = vmatpush1.bf16.msra.mxu0 %v5536_v47  ;;  %4172 = vmatpush1.bf16.msra.mxu1 %v5539_v50  ;;  %v1828_v47 = vld [vmem:[#allocation5 + $0x8] sm:$0xff] }
 0x687   :  { %4142 = vmatprep.subr.bf16.mxu0 %v5542_v53  ;;  %4174 = vmatprep.subr.bf16.mxu1 %v5544_v56  ;;  %v1832_v50 = vld [vmem:[#allocation5 + $0x28] sm:$0xff]  ;;  %v1830_v53 = vld [vmem:[#allocation5 + $0x18] sm:$0xff] }
 0x688   :  { %1712 = vmatprep.mubr.f32.mxu0 %v5242_v0  ;;  %1783 = vmatprep.mubr.f32.mxu1 %v5242_v0  ;;  %v4201_v56 = vpack.c.bf16 %v1832_v50, %v1828_v47  ;;  %v1844_v47 = vld [vmem:[#allocation5 + $0x88] sm:$0xff] }
 0x689   :  { %v1848_v50 = vld [vmem:[#allocation5 + $0xa8] sm:$0xff] }
 0x68a   :  { %4144 = vmatpush1.bf16.msra.mxu0 %v5550_v60  ;;  %4176 = vmatpush1.bf16.msra.mxu1 %v5554_v63  ;;  %v1834_v60 = vld [vmem:[#allocation5 + $0x38] sm:$0xff] }
 0x68b   :  { %4146 = vmatprep.subr.bf16.mxu0 %v5558_v3  ;;  %4178 = vmatprep.subr.bf16.mxu1 %v5561_v6  ;;  %v4233_v63 = vpack.c.bf16 %v1834_v60, %v1830_v53  ;;  %v1846_v53 = vld [vmem:[#allocation5 + $0x98] sm:$0xff]  ;;  %v4207_v60 = vpack.c.bf16 %v1839_v12, %v1835_v24  ;;  %v4219_v24 = vpack.c.bf16 %v1863_v11, %v1859_v39  ;;  %v1893_v11 = vld [vmem:[#allocation7 + $0x10] sm:$0xff] }
 0x68e   :  { %4148 = vmatpush1.bf16.msra.mxu0 %v5567_v10  ;;  %4180 = vmatpush1.bf16.msra.mxu1 %v5571_v13 }
 0x68f   :  { %4150 = vmatprep.subr.bf16.mxu0 %v5575_v16  ;;  %4182 = vmatprep.subr.bf16.mxu1 %v5578_v19 }
 0x692   :  { %4152 = vmatpush1.bf16.msra.mxu0 %v5584_v23  ;;  %4184 = vmatpush1.bf16.msra.mxu1 %v5588_v26 }
 0x693   :  { %4154 = vmatprep.subr.bf16.mxu0 %v5592_v29  ;;  %4186 = vmatprep.subr.bf16.mxu1 %v5595_v32 }
 0x696   :  { %4156 = vmatpush1.bf16.msra.mxu0 %v5601_v36  ;;  %4188 = vmatpush1.bf16.msra.mxu1 %v5605_v40 }
 0x697   :  { %4158 = vmatprep.subr.bf16.mxu0 %v5609_v44  ;;  %4190 = vmatprep.subr.bf16.mxu1 %v5612_v48 }
 0x69a   :  { %4160 = vmatpush1.bf16.msra.mxu0 %v5618_v54  ;;  %4192 = vmatpush1.bf16.msra.mxu1 %v5622_v58 }
 0x69b   :  { %4162 = vmatprep.subr.bf16.mxu0 %v5626_v62  ;;  %4194 = vmatprep.subr.bf16.mxu1 %v5629_v4 }
 0x69e   :  { %4164 = vmatpush1.bf16.msra.mxu0 %v5635_v9  ;;  %4196 = vmatpush1.bf16.msra.mxu1 %v5639_v14 }
 0x69f   :  { %4166 = vmatprep.subr.bf16.mxu0 %v5643_v18  ;;  %4198 = vmatprep.subr.bf16.mxu1 %v5646_v22 }
 0x6a2   :  { %4168 = vmatpush1.bf16.msra.mxu0 %v5652_v25  ;;  %4200 = vmatpush1.bf16.msra.mxu1 %v5656_v27  ;;  %v1827_v27 = vld [vmem:[#allocation5] sm:$0xff] }
 0x6a3   :  { %4202 = vmatprep.subr.bf16.mxu0 %v4201_v56  ;;  %4234 = vmatprep.subr.bf16.mxu1 %v4233_v63  ;;  %v4203_v45 = vpack.c.bf16 %v1831_v51, %v1827_v27  ;;  %v1850_v56 = vld [vmem:[#allocation5 + $0xb8] sm:$0xff]  ;;  %v4239_v63 = vpack.c.bf16 %v1841_v28, %v1837_v5 }
 0x758   :  { %v1543_v3 = vpop.f32.mrb[12].mxu0  ;;  %v1614_v6 = vpop.f32.mrb[12].mxu1 }
 0x759   :  { %v4789_v10 = vadd.f32 %v1543_v3, %v5712_v35  ;;  %v1545_v13 = vpop.f32.mrb[13].mxu0  ;;  %v1616_v16 = vpop.f32.mrb[13].mxu1  ;;  %v4805_v36 = vadd.f32 %v1614_v6, %v5729_v1  ;;  %v1843_v3 = vld [vmem:[#allocation5 + $0x80] sm:$0xff] }
 0x75a   :  { %v4790_v19 = vadd.f32 %v1545_v13, %v5716_v37  ;;  %v4806_v29 = vadd.f32 %v1616_v16, %v5723_v57  ;;  %v1847_v6 = vld [vmem:[#allocation5 + $0xa0] sm:$0xff]  ;;  %v4241_v13 = vpack.c.bf16 %v1850_v56, %v1846_v53  ;;  %v1845_v16 = vld [vmem:[#allocation5 + $0x90] sm:$0xff]  ;;  %v1876_v53 = vld [vmem:[#allocation5 + $0x188] sm:$0xff] }
 0x75b   :  { %v3595_v23 = vmul.f32 -1.442695, %v4789_v10  ;;  %v4209_v10 = vpack.c.bf16 %v1848_v50, %v1844_v47  ;;  %v1869_v47 = vld [vmem:[#allocation5 + $0x150] sm:$0xff]  ;;  %v1880_v56 = vld [vmem:[#allocation5 + $0x1a8] sm:$0xff] }
 0x75c   :  { %v3596_v26 = vmul.f32 -1.442695, %v4790_v19  ;;  %v3597_v32 = vmul.f32 -1.442695, %v4806_v29  ;;  %v1849_v19 = vld [vmem:[#allocation5 + $0xb0] sm:$0xff]  ;;  %v1854_v29 = vld [vmem:[#allocation5 + $0xd8] sm:$0xff] }
 0x75d   :  { %5007 = vpow2.f32 %v3595_v23  ;;  %v1852_v23 = vld [vmem:[#allocation5 + $0xc8] sm:$0xff]  ;;  %v1873_v50 = vld [vmem:[#allocation5 + $0x170] sm:$0xff] }
 0x75e   :  { %5009 = vpow2.f32 %v3596_v26  ;;  %v1856_v26 = vld [vmem:[#allocation5 + $0xe8] sm:$0xff] }
 0x75f   :  { %5011 = vpow2.f32 %v3597_v32  ;;  %v1858_v32 = vld [vmem:[#allocation5 + $0xf8] sm:$0xff] }
 0x760   :  { %5013 = vtanh.f32 %v4805_v36  ;;  %v4211_v36 = vpack.c.bf16 %v1847_v6, %v1843_v3  ;;  %v4255_v6 = vpack.c.bf16 %v1873_v50, %v1869_v47  ;;  %v1912_v47 = vld [vmem:[#allocation7 + $0xa8] sm:$0xff]  ;;  %v1910_v50 = vld [vmem:[#allocation7 + $0x98] sm:$0xff] }
 0x767   :  { %v5008_v40 = vpop.eup %5007 }
 0x768   :  { %v5010_v44 = vpop.eup %5009  ;;  %v1626_v48 = vadd.f32 1.0, %v5008_v40  ;;  %v4243_v40 = vpack.c.bf16 %v1849_v19, %v1845_v16  ;;  %v4225_v16 = vpack.c.bf16 %v1880_v56, %v1876_v53  ;;  %v1914_v56 = vld [vmem:[#allocation7 + $0xb8] sm:$0xff] }
 0x769   :  { %v1632_v54 = vadd.f32 1.0, %v5010_v44  ;;  %v5012_v58 = vpop.eup %5011  ;;  %v1851_v44 = vld [vmem:[#allocation5 + $0xc0] sm:$0xff] }
 0x76a   :  { %5015 = vrcp.f32 %v1626_v48  ;;  %v5014_v62 = vpop.eup %5013  ;;  %v1639_v18 = vadd.f32 1.0, %v5012_v58  ;;  %v1855_v48 = vld [vmem:[#allocation5 + $0xe0] sm:$0xff]  ;;  %v4245_v58 = vpack.c.bf16 %v1858_v32, %v1854_v29  ;;  %v1884_v29 = vld [vmem:[#allocation5 + $0x1c8] sm:$0xff] }
 0x76b   :  { %5017 = vrcp.f32 %v1632_v54  ;;  %v4213_v54 = vpack.c.bf16 %v1856_v26, %v1852_v23  ;;  %v4215_v27 = vpack.c.bf16 %v1855_v48, %v1851_v44  ;;  %v1877_v23 = vld [vmem:[#allocation5 + $0x190] sm:$0xff]  ;;  %v1888_v32 = vld [vmem:[#allocation5 + $0x1e8] sm:$0xff] }
 0x76c   :  { %5019 = vrcp.f32 %v1639_v18  ;;  %v1862_v18 = vld [vmem:[#allocation5 + $0x118] sm:$0xff]  ;;  %v1881_v26 = vld [vmem:[#allocation5 + $0x1b0] sm:$0xff] }
 0x76d   :  { %v4259_v48 = vpack.c.bf16 %v1881_v26, %v1877_v23  ;;  %v1920_v23 = vld [vmem:[#allocation7 + $0xe8] sm:$0xff]  ;;  %v1918_v26 = vld [vmem:[#allocation7 + $0xd8] sm:$0xff] }
 0x774   :  { %v5016_v4 = vpop.eup %5015 }
 0x775   :  { %v5018_v9 = vpop.eup %5017  ;;  %v1643_v14 = vmul.f32 %v5016_v4, %v5014_v62  ;;  %v1853_v62 = vld [vmem:[#allocation5 + $0xd0] sm:$0xff] }
 0x776   :  { %v1642_v22 = vmul.f32 %v5018_v9, %v5962_v20  ;;  %v5020_v61 = vpop.eup %5019  ;;  %v4237_v20 = vpack.c.bf16 %v1842_v41, %v1838_v52  ;;  %v1857_v4 = vld [vmem:[#allocation5 + $0xf0] sm:$0xff]  ;;  %v1860_v9 = vld [vmem:[#allocation5 + $0x108] sm:$0xff] }
 0x777   :  { %v4247_v51 = vpack.c.bf16 %v1857_v4, %v1853_v62  ;;  %v1861_v52 = vld [vmem:[#allocation5 + $0x110] sm:$0xff]  ;;  %v1887_v4 = vld [vmem:[#allocation5 + $0x1e0] sm:$0xff] }
 0x778   :  { %v6006_v25 = vadd.f32 %v1643_v14, %v1642_v22  ;;  %v1864_v14 = vld [vmem:[#allocation5 + $0x128] sm:$0xff]  ;;  %v1866_v22 = vld [vmem:[#allocation5 + $0x138] sm:$0xff]  ;;  %v1865_v41 = vld [vmem:[#allocation5 + $0x130] sm:$0xff] }
 0x779   :  { %v4217_v49 = vpack.c.bf16 %v1864_v14, %v1860_v9  ;;  %v4249_v38 = vpack.c.bf16 %v1866_v22, %v1862_v18  ;;  %v4251_v12 = vpack.c.bf16 %v1865_v41, %v1861_v52  ;;  %v1885_v9 = vld [vmem:[#allocation5 + $0x1d0] sm:$0xff]  ;;  %v1904_v52 = vld [vmem:[#allocation7 + $0x68] sm:$0xff]  ;;  %v1902_v41 = vld [vmem:[#allocation7 + $0x58] sm:$0xff] }
 0x77a   :  { %5021 = vtanh.f32 %v6006_v25  ;;  %v1889_v14 = vld [vmem:[#allocation5 + $0x1f0] sm:$0xff] }
 0x77b   :  { %v4263_v22 = vpack.c.bf16 %v1889_v14, %v1885_v9  ;;  %v1928_v9 = vld [vmem:[#allocation7 + $0x128] sm:$0xff]  ;;  %v1926_v14 = vld [vmem:[#allocation7 + $0x118] sm:$0xff] }
 0x784   :  { %v5022_v33 = vpop.eup %5021 }
 0x785   :  { %v6009_v55 = vmul.f32 %v5022_v33, %v5020_v61  ;;  %v1868_v61 = vld [vmem:[#allocation5 + $0x148] sm:$0xff] }
 0x786   :  { %v1872_v33 = vld [vmem:[#allocation5 + $0x168] sm:$0xff] }
 0x787   :  { %1713 = vmatmul.mubr.f32.vlgmr.msra.gmra.mrb[14].mxu0 %v6009_v55  ;;  %1784 = vmatmul.mubr.f32.vlgmr.msra.gmra.mrb[14].mxu1 %v6009_v55  ;;  %v4221_v5 = vpack.c.bf16 %v1872_v33, %v1868_v61  ;;  %v1906_v33 = vld [vmem:[#allocation7 + $0x78] sm:$0xff] }
 0x788   :  { %4204 = vmatpush1.bf16.msra.mxu0 %v4203_v45  ;;  %4236 = vmatpush1.bf16.msra.mxu1 %v4235_v7  ;;  %v1870_v45 = vld [vmem:[#allocation5 + $0x158] sm:$0xff] }
 0x789   :  { %4206 = vmatprep.subr.bf16.mxu0 %v4205_v21  ;;  %4238 = vmatprep.subr.bf16.mxu1 %v4237_v20  ;;  %v1874_v7 = vld [vmem:[#allocation5 + $0x178] sm:$0xff]  ;;  %v1867_v21 = vld [vmem:[#allocation5 + $0x140] sm:$0xff] }
 0x78a   :  { %2041 = vmatprep.mubr.f32.mxu0 %v5242_v0  ;;  %2154 = vmatprep.mubr.f32.mxu1 %v5242_v0  ;;  %v1871_v20 = vld [vmem:[#allocation5 + $0x160] sm:$0xff]  ;;  %v4253_v28 = vpack.c.bf16 %v1874_v7, %v1870_v45 }
 0x78b   :  { %v4223_v3 = vpack.c.bf16 %v1871_v20, %v1867_v21  ;;  %v1899_v45 = vld [vmem:[#allocation7 + $0x40] sm:$0xff]  ;;  %v1901_v21 = vld [vmem:[#allocation7 + $0x50] sm:$0xff] }
 0x78c   :  { %4208 = vmatpush1.bf16.msra.mxu0 %v4207_v60  ;;  %4240 = vmatpush1.bf16.msra.mxu1 %v4239_v63  ;;  %v1878_v60 = vld [vmem:[#allocation5 + $0x198] sm:$0xff]  ;;  %v1903_v7 = vld [vmem:[#allocation7 + $0x60] sm:$0xff]  ;;  %v1905_v20 = vld [vmem:[#allocation7 + $0x70] sm:$0xff] }
 0x78d   :  { %4210 = vmatprep.subr.bf16.mxu0 %v4209_v10  ;;  %4242 = vmatprep.subr.bf16.mxu1 %v4241_v13  ;;  %v1882_v63 = vld [vmem:[#allocation5 + $0x1b8] sm:$0xff]  ;;  %v1875_v10 = vld [vmem:[#allocation5 + $0x180] sm:$0xff] }
 0x78e   :  { %v1879_v13 = vld [vmem:[#allocation5 + $0x1a0] sm:$0xff]  ;;  %v4257_v19 = vpack.c.bf16 %v1882_v63, %v1878_v60 }
 0x78f   :  { %v4227_v44 = vpack.c.bf16 %v1879_v13, %v1875_v10  ;;  %v1907_v60 = vld [vmem:[#allocation7 + $0x80] sm:$0xff]  ;;  %v1909_v10 = vld [vmem:[#allocation7 + $0x90] sm:$0xff] }
 0x790   :  { %4212 = vmatpush1.bf16.msra.mxu0 %v4211_v36  ;;  %4244 = vmatpush1.bf16.msra.mxu1 %v4243_v40  ;;  %v1886_v36 = vld [vmem:[#allocation5 + $0x1d8] sm:$0xff]  ;;  %v1911_v63 = vld [vmem:[#allocation7 + $0xa0] sm:$0xff]  ;;  %v1913_v13 = vld [vmem:[#allocation7 + $0xb0] sm:$0xff] }
 0x791   :  { %4214 = vmatprep.subr.bf16.mxu0 %v4213_v54  ;;  %4246 = vmatprep.subr.bf16.mxu1 %v4245_v58  ;;  %v1890_v40 = vld [vmem:[#allocation5 + $0x1f8] sm:$0xff]  ;;  %v1883_v54 = vld [vmem:[#allocation5 + $0x1c0] sm:$0xff]  ;;  %v4229_v58 = vpack.c.bf16 %v1888_v32, %v1884_v29 }
 0x792   :  { %v4261_v62 = vpack.c.bf16 %v1890_v40, %v1886_v36  ;;  %v4231_v18 = vpack.c.bf16 %v1887_v4, %v1883_v54  ;;  %v1922_v32 = vld [vmem:[#allocation7 + $0xf8] sm:$0xff]  ;;  %v1915_v36 = vld [vmem:[#allocation7 + $0xc0] sm:$0xff]  ;;  %v1917_v54 = vld [vmem:[#allocation7 + $0xd0] sm:$0xff] }
 0x793   :  { %v1919_v40 = vld [vmem:[#allocation7 + $0xe0] sm:$0xff] }
 0x794   :  { %4216 = vmatpush1.bf16.msra.mxu0 %v4215_v27  ;;  %4248 = vmatpush1.bf16.msra.mxu1 %v4247_v51  ;;  %v1891_v27 = vld [vmem:[#allocation7] sm:$0xff] }
 0x795   :  { %4218 = vmatprep.subr.bf16.mxu0 %v4217_v49  ;;  %4250 = vmatprep.subr.bf16.mxu1 %v4249_v38  ;;  %v1897_v49 = vld [vmem:[#allocation7 + $0x30] sm:$0xff]  ;;  %v1900_v38 = vld [vmem:[#allocation7 + $0x48] sm:$0xff] }
 0x796   :  { %v6055_v61 = vpack.c.bf16 %v1904_v52, %v1900_v38 }
 0x798   :  { %4220 = vmatpush1.bf16.msra.mxu0 %v4219_v24  ;;  %4252 = vmatpush1.bf16.msra.mxu1 %v4251_v12  ;;  %v6057_v24 = vpack.c.bf16 %v1906_v33, %v1902_v41  ;;  %v6059_v12 = vpack.c.bf16 %v1903_v7, %v1899_v45  ;;  %v1934_v41 = vld [vmem:[#allocation7 + $0x158] sm:$0xff]  ;;  %v1931_v45 = vld [vmem:[#allocation7 + $0x140] sm:$0xff] }
 0x799   :  { %4222 = vmatprep.subr.bf16.mxu0 %v4221_v5  ;;  %4254 = vmatprep.subr.bf16.mxu1 %v4253_v28  ;;  %v6062_v5 = vpack.c.bf16 %v1905_v20, %v1901_v21  ;;  %v1908_v28 = vld [vmem:[#allocation7 + $0x88] sm:$0xff]  ;;  %v1938_v33 = vld [vmem:[#allocation7 + $0x178] sm:$0xff]  ;;  %v1935_v21 = vld [vmem:[#allocation7 + $0x160] sm:$0xff] }
 0x79a   :  { %v6067_v53 = vpack.c.bf16 %v1912_v47, %v1908_v28  ;;  %v6103_v7 = vpack.c.bf16 %v1938_v33, %v1934_v41  ;;  %v1933_v20 = vld [vmem:[#allocation7 + $0x150] sm:$0xff]  ;;  %v6106_v47 = vpack.c.bf16 %v1935_v21, %v1931_v45 }
 0x79b   :  { %v1937_v28 = vld [vmem:[#allocation7 + $0x170] sm:$0xff] }
 0x79c   :  { %4224 = vmatpush1.bf16.msra.mxu0 %v4223_v3  ;;  %4256 = vmatpush1.bf16.msra.mxu1 %v4255_v6  ;;  %v6069_v3 = vpack.c.bf16 %v1914_v56, %v1910_v50  ;;  %v6071_v6 = vpack.c.bf16 %v1911_v63, %v1907_v60  ;;  %v1940_v50 = vld [vmem:[#allocation7 + $0x188] sm:$0xff]  ;;  %v1942_v60 = vld [vmem:[#allocation7 + $0x198] sm:$0xff]  ;;  %v6110_v63 = vpack.c.bf16 %v1937_v28, %v1933_v20 }
 0x79d   :  { %4226 = vmatprep.subr.bf16.mxu0 %v4225_v16  ;;  %4258 = vmatprep.subr.bf16.mxu1 %v4257_v19  ;;  %v6074_v16 = vpack.c.bf16 %v1913_v13, %v1909_v10  ;;  %v1916_v19 = vld [vmem:[#allocation7 + $0xc8] sm:$0xff]  ;;  %v1946_v13 = vld [vmem:[#allocation7 + $0x1b8] sm:$0xff] }
 0x79e   :  { %v6079_v29 = vpack.c.bf16 %v1920_v23, %v1916_v19  ;;  %v1944_v56 = vld [vmem:[#allocation7 + $0x1a8] sm:$0xff]  ;;  %v1939_v19 = vld [vmem:[#allocation7 + $0x180] sm:$0xff] }
 0x79f   :  { %v6112_v10 = vpack.c.bf16 %v1944_v56, %v1940_v50  ;;  %v1943_v23 = vld [vmem:[#allocation7 + $0x1a0] sm:$0xff] }
 0x7a0   :  { %4228 = vmatpush1.bf16.msra.mxu0 %v4227_v44  ;;  %4260 = vmatpush1.bf16.msra.mxu1 %v4259_v48  ;;  %v6081_v44 = vpack.c.bf16 %v1922_v32, %v1918_v26  ;;  %v6083_v48 = vpack.c.bf16 %v1919_v40, %v1915_v36  ;;  %v6115_v26 = vpack.c.bf16 %v1946_v13, %v1942_v60  ;;  %v1941_v32 = vld [vmem:[#allocation7 + $0x190] sm:$0xff] }
 0x7a1   :  { %4230 = vmatprep.subr.bf16.mxu0 %v4229_v58  ;;  %4262 = vmatprep.subr.bf16.mxu1 %v4261_v62  ;;  %v1921_v58 = vld [vmem:[#allocation7 + $0xf0] sm:$0xff]  ;;  %v1924_v62 = vld [vmem:[#allocation7 + $0x108] sm:$0xff]  ;;  %v6118_v40 = vpack.c.bf16 %v1943_v23, %v1939_v19 }
 0x7a2   :  { %v6086_v4 = vpack.c.bf16 %v1921_v58, %v1917_v54  ;;  %v1945_v36 = vld [vmem:[#allocation7 + $0x1b0] sm:$0xff]  ;;  %v1948_v58 = vld [vmem:[#allocation7 + $0x1c8] sm:$0xff] }
 0x7a3   :  { %v6122_v54 = vpack.c.bf16 %v1945_v36, %v1941_v32 }
 0x7a4   :  { %4232 = vmatpush1.bf16.msra.mxu0 %v4231_v18  ;;  %4264 = vmatpush1.bf16.msra.mxu1 %v4263_v22  ;;  %v1930_v18 = vld [vmem:[#allocation7 + $0x138] sm:$0xff]  ;;  %v6090_v22 = vpack.c.bf16 %v1928_v9, %v1924_v62  ;;  %v1952_v62 = vld [vmem:[#allocation7 + $0x1e8] sm:$0xff] }
 0x7a5   :  { %v1950_v9 = vld [vmem:[#allocation7 + $0x1d8] sm:$0xff] }
 0x7a7   :  { %2042 = vmatmul.mubr.f32.vlgmr.msra.gmra.mrb[16].mxu0 %v5735_v46  ;;  %2155 = vmatmul.mubr.f32.vlgmr.msra.gmra.mrb[16].mxu1 %v5735_v46  ;;  %v1892_v46 = vld [vmem:[#allocation7 + $0x8] sm:$0xff] }
 0x7a8   :  { %2047 = vmatprep.mubr.f32.mxu0 %v5242_v0  ;;  %2160 = vmatprep.mubr.f32.mxu1 %v5242_v0 }
 0x7ab   :  { %2048 = vmatmul.mubr.f32.gmra.mrb[18].mxu0 %v5781_v2  ;;  %2161 = vmatmul.mubr.f32.gmra.mrb[18].mxu1 %v5781_v2  ;;  %v1896_v2 = vld [vmem:[#allocation7 + $0x28] sm:$0xff] }
 0x7ac   :  { %2053 = vmatprep.mubr.f32.mxu0 %v5242_v0  ;;  %2166 = vmatprep.mubr.f32.mxu1 %v5242_v0 }
 0x7af   :  { %2054 = vmatmul.mubr.f32.gmra.mrb[20].mxu0 %v5827_v15  ;;  %2167 = vmatmul.mubr.f32.gmra.mrb[20].mxu1 %v5827_v15  ;;  %v1894_v15 = vld [vmem:[#allocation7 + $0x18] sm:$0xff] }
 0x7b0   :  { %2059 = vmatprep.mubr.f32.mxu0 %v5242_v0  ;;  %2172 = vmatprep.mubr.f32.mxu1 %v5242_v0 }
 0x7b3   :  { %2060 = vmatmul.mubr.f32.gmra.mrb[22].mxu0 %v5873_v43  ;;  %2173 = vmatmul.mubr.f32.gmra.mrb[22].mxu1 %v5873_v43  ;;  %v6043_v43 = vpack.c.bf16 %v1896_v2, %v1892_v46  ;;  %v6092_v46 = vpack.c.bf16 %v1930_v18, %v1926_v14  ;;  %v1923_v2 = vld [vmem:[#allocation7 + $0x100] sm:$0xff]  ;;  %v6127_v14 = vpack.c.bf16 %v1952_v62, %v1948_v58  ;;  %v1954_v18 = vld [vmem:[#allocation7 + $0x1f8] sm:$0xff] }
 0x7b4   :  { %2065 = vmatprep.mubr.f32.mxu0 %v5242_v0  ;;  %2178 = vmatprep.mubr.f32.mxu1 %v5242_v0 }
 0x7b5   :  { %4266 = vmatprep.subr.bf16.mxu0 %v6043_v43 }
 0x7b7   :  { %2066 = vmatmul.mubr.f32.gmra.mrb[24].mxu0 %v5919_v8  ;;  %2179 = vmatmul.mubr.f32.gmra.mrb[24].mxu1 %v5919_v8  ;;  %v1898_v8 = vld [vmem:[#allocation7 + $0x38] sm:$0xff] }
 0x7b8   :  { %2071 = vmatprep.mubr.f32.mxu0 %v5242_v0  ;;  %2184 = vmatprep.mubr.f32.mxu1 %v5242_v0  ;;  %v6045_v51 = vpack.c.bf16 %v1898_v8, %v1894_v15  ;;  %v1927_v15 = vld [vmem:[#allocation7 + $0x120] sm:$0xff]  ;;  %v1925_v8 = vld [vmem:[#allocation7 + $0x110] sm:$0xff] }
 0x7ba   :  { %4298 = vmatprep.subr.bf16.mxu1 %v6045_v51 }
 0x7bb   :  { %2072 = vmatmul.mubr.f32.gmra.mrb[26].mxu0 %v5965_v17  ;;  %2185 = vmatmul.mubr.f32.gmra.mrb[26].mxu1 %v5965_v17  ;;  %v1895_v17 = vld [vmem:[#allocation7 + $0x20] sm:$0xff] }
 0x7bc   :  { %2077 = vmatprep.mubr.f32.mxu0 %v5242_v0  ;;  %2190 = vmatprep.mubr.f32.mxu1 %v5242_v0  ;;  %v6047_v39 = vpack.c.bf16 %v1895_v17, %v1891_v27  ;;  %v6095_v27 = vpack.c.bf16 %v1927_v15, %v1923_v2  ;;  %v1929_v17 = vld [vmem:[#allocation7 + $0x130] sm:$0xff]  ;;  %v1947_v2 = vld [vmem:[#allocation7 + $0x1c0] sm:$0xff] }
 0x7bd   :  { %v6099_v38 = vpack.c.bf16 %v1929_v17, %v1925_v8  ;;  %v1951_v15 = vld [vmem:[#allocation7 + $0x1e0] sm:$0xff]  ;;  %v6129_v8 = vpack.c.bf16 %v1954_v18, %v1950_v9 }
 0x7be   :  { %4268 = vmatpush1.bf16.msra.mxu0 %v6047_v39  ;;  %v6131_v17 = vpack.c.bf16 %v1951_v15, %v1947_v2 }
 0x7bf   :  { %2078 = vmatmul.mubr.f32.gmra.mrb[28].mxu0 %v6009_v55  ;;  %2191 = vmatmul.mubr.f32.gmra.mrb[28].mxu1 %v6009_v55  ;;  %v6050_v55 = vpack.c.bf16 %v1897_v49, %v1893_v11  ;;  %v1932_v11 = vld [vmem:[#allocation7 + $0x148] sm:$0xff] }
 0x7c0   :  { %2083 = vmatprep.mubr.f32.mxu0 %v5242_v0  ;;  %2196 = vmatprep.mubr.f32.mxu1 %v5242_v0  ;;  %v1936_v49 = vld [vmem:[#allocation7 + $0x168] sm:$0xff] }
 0x7c1   :  { %4300 = vmatpush1.bf16.msra.mxu1 %v6050_v55  ;;  %4270 = vmatprep.subr.bf16.mxu0 %v6055_v61  ;;  %v6101_v52 = vpack.c.bf16 %v1936_v49, %v1932_v11  ;;  %v1949_v11 = vld [vmem:[#allocation7 + $0x1d0] sm:$0xff] }
 0x7c2   :  { %4302 = vmatprep.subr.bf16.mxu1 %v6057_v24  ;;  %4272 = vmatpush1.bf16.msra.mxu0 %v6059_v12  ;;  %v1953_v49 = vld [vmem:[#allocation7 + $0x1f0] sm:$0xff] }
 0x7c3   :  { %4274 = vmatprep.subr.bf16.mxu0 %v6067_v53  ;;  %v6134_v41 = vpack.c.bf16 %v1953_v49, %v1949_v11 }
 0x7c5   :  { %4304 = vmatpush1.bf16.msra.mxu1 %v6062_v5 }
 0x7c6   :  { %4306 = vmatprep.subr.bf16.mxu1 %v6069_v3  ;;  %4276 = vmatpush1.bf16.msra.mxu0 %v6071_v6 }
 0x7c7   :  { %4278 = vmatprep.subr.bf16.mxu0 %v6079_v29 }
 0x7c9   :  { %4308 = vmatpush1.bf16.msra.mxu1 %v6074_v16 }
 0x7ca   :  { %4310 = vmatprep.subr.bf16.mxu1 %v6081_v44  ;;  %4280 = vmatpush1.bf16.msra.mxu0 %v6083_v48 }
 0x7cb   :  { %4282 = vmatprep.subr.bf16.mxu0 %v6090_v22 }
 0x7cd   :  { %4312 = vmatpush1.bf16.msra.mxu1 %v6086_v4 }
 0x7ce   :  { %4314 = vmatprep.subr.bf16.mxu1 %v6092_v46  ;;  %4284 = vmatpush1.bf16.msra.mxu0 %v6095_v27 }
 0x7cf   :  { %4286 = vmatprep.subr.bf16.mxu0 %v6101_v52 }
 0x7d1   :  { %4316 = vmatpush1.bf16.msra.mxu1 %v6099_v38 }
 0x7d2   :  { %4318 = vmatprep.subr.bf16.mxu1 %v6103_v7  ;;  %4288 = vmatpush1.bf16.msra.mxu0 %v6106_v47 }
 0x7d3   :  { %4290 = vmatprep.subr.bf16.mxu0 %v6112_v10 }
 0x7d5   :  { %4320 = vmatpush1.bf16.msra.mxu1 %v6110_v63 }
 0x7d6   :  { %4322 = vmatprep.subr.bf16.mxu1 %v6115_v26  ;;  %4292 = vmatpush1.bf16.msra.mxu0 %v6118_v40 }
 0x7d7   :  { %4294 = vmatprep.subr.bf16.mxu0 %v6127_v14 }
 0x7d9   :  { %4324 = vmatpush1.bf16.msra.mxu1 %v6122_v54 }
 0x7da   :  { %4326 = vmatprep.subr.bf16.mxu1 %v6129_v8  ;;  %4296 = vmatpush1.bf16.msra.mxu0 %v6131_v17 }
 0x7db   :  { %4330 = vmatprep.subr.bf16.mxu0 %v6043_v43 }
 0x7dd   :  { %4328 = vmatpush1.bf16.msra.mxu1 %v6134_v41 }
 0x7de   :  { %4362 = vmatprep.subr.bf16.mxu1 %v6045_v51 }
 0x85a   :  { %v1714_v33 = vpop.f32.mrb[14].mxu0  ;;  %v1785_v45 = vpop.f32.mrb[14].mxu1 }
 0x85b   :  { %v4791_v21 = vadd.f32 %v1714_v33, %v5712_v35  ;;  %v1716_v20 = vpop.f32.mrb[15].mxu0  ;;  %v1787_v28 = vpop.f32.mrb[15].mxu1  ;;  %v4807_v23 = vadd.f32 %v1785_v45, %v5729_v1 }
 0x85c   :  { %v4792_v50 = vadd.f32 %v1716_v20, %v5716_v37  ;;  %v4808_v13 = vadd.f32 %v1787_v28, %v5723_v57 }
 0x85d   :  { %v3598_v56 = vmul.f32 -1.442695, %v4791_v21 }
 0x85e   :  { %v3599_v60 = vmul.f32 -1.442695, %v4792_v50  ;;  %v3600_v19 = vmul.f32 -1.442695, %v4808_v13 }
 0x85f   :  { %5023 = vpow2.f32 %v3598_v56 }
 0x860   :  { %5025 = vpow2.f32 %v3599_v60 }
 0x861   :  { %5027 = vpow2.f32 %v3600_v19 }
 0x862   :  { %5029 = vtanh.f32 %v4807_v23 }
 0x869   :  { %v5024_v32 = vpop.eup %5023 }
 0x86a   :  { %v5026_v36 = vpop.eup %5025  ;;  %v1797_v58 = vadd.f32 1.0, %v5024_v32 }
 0x86b   :  { %v1803_v62 = vadd.f32 1.0, %v5026_v36  ;;  %v5028_v35 = vpop.eup %5027 }
 0x86c   :  { %5031 = vrcp.f32 %v1797_v58  ;;  %v5030_v9 = vpop.eup %5029  ;;  %v1810_v15 = vadd.f32 1.0, %v5028_v35 }
 0x86d   :  { %5033 = vrcp.f32 %v1803_v62 }
 0x86e   :  { %5035 = vrcp.f32 %v1810_v15 }
 0x876   :  { %v5032_v37 = vpop.eup %5031 }
 0x877   :  { %v5034_v18 = vpop.eup %5033  ;;  %v1814_v2 = vmul.f32 %v5032_v37, %v5030_v9 }
 0x878   :  { %v1813_v11 = vmul.f32 %v5034_v18, %v6006_v25  ;;  %v5036_v1 = vpop.eup %5035  ;;  %v1955_v25 = vld [vmem:[%s6491_s6] sm:$0xf] }
 0x879   :  { %v6189_v45 = vrot.slane %v1955_v25, %v207_v31  ;;  %v6193_v21 = vrot.slane %v1955_v25, %v211_v34  ;;  %v6199_v32 = vrot.slane %v1955_v25, %v219_v42  ;;  %v6204_v34 = vrot.slane %v1955_v25, %v215_v59 }
 0x87a   :  { %v1815_v57 = vadd.f32 %v1814_v2, %v1813_v11 }
 0x87c   :  { %5037 = vtanh.f32 %v1815_v57 }
 0x886   :  { %v5038_v49 = vpop.eup %5037 }
 0x887   :  { %v1817_v33 = vmul.f32 %v5038_v49, %v5036_v1 }
 0x889   :  { %2084 = vmatmul.mubr.f32.gmra.mrb[30].mxu0 %v1817_v33  ;;  %2197 = vmatmul.mubr.f32.gmra.mrb[30].mxu1 %v1817_v33 }
 0x88a   :  { %2267 = vmatprep.mubr.f32.mxu0 %v5242_v0  ;;  %2338 = vmatprep.mubr.f32.mxu1 %v5242_v0 }
 0x88d   :  { %2268 = vmatmul.mubr.f32.vlgmr.msra.gmra.mrb[16].mxu0 %v5242_v0  ;;  %2339 = vmatmul.mubr.f32.vlgmr.msra.gmra.mrb[16].mxu1 %v5242_v0 }
 0x88e   :  { %4332 = vmatpush1.bf16.msra.mxu0 %v6047_v39  ;;  %4364 = vmatpush1.bf16.msra.mxu1 %v6050_v55 }
 0x88f   :  { %4334 = vmatprep.subr.bf16.mxu0 %v6055_v61  ;;  %4366 = vmatprep.subr.bf16.mxu1 %v6057_v24 }
 0x890   :  { %2438 = vmatprep.mubr.f32.mxu0 %v5242_v0  ;;  %2509 = vmatprep.mubr.f32.mxu1 %v5242_v0 }
 0x892   :  { %4336 = vmatpush1.bf16.msra.mxu0 %v6059_v12  ;;  %4368 = vmatpush1.bf16.msra.mxu1 %v6062_v5 }
 0x893   :  { %4338 = vmatprep.subr.bf16.mxu0 %v6067_v53  ;;  %4370 = vmatprep.subr.bf16.mxu1 %v6069_v3 }
 0x896   :  { %4340 = vmatpush1.bf16.msra.mxu0 %v6071_v6  ;;  %4372 = vmatpush1.bf16.msra.mxu1 %v6074_v16 }
 0x897   :  { %4342 = vmatprep.subr.bf16.mxu0 %v6079_v29  ;;  %4374 = vmatprep.subr.bf16.mxu1 %v6081_v44 }
 0x89a   :  { %4344 = vmatpush1.bf16.msra.mxu0 %v6083_v48  ;;  %4376 = vmatpush1.bf16.msra.mxu1 %v6086_v4 }
 0x89b   :  { %4346 = vmatprep.subr.bf16.mxu0 %v6090_v22  ;;  %4378 = vmatprep.subr.bf16.mxu1 %v6092_v46 }
 0x89e   :  { %4348 = vmatpush1.bf16.msra.mxu0 %v6095_v27  ;;  %4380 = vmatpush1.bf16.msra.mxu1 %v6099_v38 }
 0x89f   :  { %4350 = vmatprep.subr.bf16.mxu0 %v6101_v52  ;;  %4382 = vmatprep.subr.bf16.mxu1 %v6103_v7 }
 0x8a2   :  { %4352 = vmatpush1.bf16.msra.mxu0 %v6106_v47  ;;  %4384 = vmatpush1.bf16.msra.mxu1 %v6110_v63 }
 0x8a3   :  { %4354 = vmatprep.subr.bf16.mxu0 %v6112_v10  ;;  %4386 = vmatprep.subr.bf16.mxu1 %v6115_v26 }
 0x8a6   :  { %4356 = vmatpush1.bf16.msra.mxu0 %v6118_v40  ;;  %4388 = vmatpush1.bf16.msra.mxu1 %v6122_v54 }
 0x8a7   :  { %4358 = vmatprep.subr.bf16.mxu0 %v6127_v14  ;;  %4390 = vmatprep.subr.bf16.mxu1 %v6129_v8 }
 0x8aa   :  { %4360 = vmatpush1.bf16.msra.mxu0 %v6131_v17  ;;  %4392 = vmatpush1.bf16.msra.mxu1 %v6134_v41 }
 0x8ab   :  { %4394 = vmatprep.subr.bf16.mxu0 %v6043_v43  ;;  %4426 = vmatprep.subr.bf16.mxu1 %v6045_v51 }
 0x960   :  { %v2269_v20 = vpop.f32.mrb[16].mxu0  ;;  %v2340_v28 = vpop.f32.mrb[16].mxu1 }
 0x961   :  { %v4809_v50 = vadd.f32 %v2269_v20, %v6189_v45  ;;  %v2271_v56 = vpop.f32.mrb[17].mxu0  ;;  %v2342_v60 = vpop.f32.mrb[17].mxu1  ;;  %v4825_v58 = vadd.f32 %v2340_v28, %v6204_v34 }
 0x962   :  { %v4810_v13 = vadd.f32 %v2271_v56, %v6193_v21  ;;  %v4826_v31 = vadd.f32 %v2342_v60, %v6199_v32 }
 0x963   :  { %v3601_v19 = vmul.f32 -1.442695, %v4809_v50 }
 0x964   :  { %v3602_v23 = vmul.f32 -1.442695, %v4810_v13  ;;  %v3603_v36 = vmul.f32 -1.442695, %v4826_v31 }
 0x965   :  { %5039 = vpow2.f32 %v3601_v19 }
 0x966   :  { %5041 = vpow2.f32 %v3602_v23 }
 0x967   :  { %5043 = vpow2.f32 %v3603_v36 }
 0x968   :  { %5045 = vtanh.f32 %v4825_v58 }
 0x96f   :  { %v5040_v62 = vpop.eup %5039 }
 0x970   :  { %v5042_v35 = vpop.eup %5041  ;;  %v2352_v9 = vadd.f32 1.0, %v5040_v62 }
 0x971   :  { %v2358_v37 = vadd.f32 1.0, %v5042_v35  ;;  %v5044_v42 = vpop.eup %5043 }
 0x972   :  { %5047 = vrcp.f32 %v2352_v9  ;;  %v5046_v18 = vpop.eup %5045  ;;  %v2365_v57 = vadd.f32 1.0, %v5044_v42 }
 0x973   :  { %5049 = vrcp.f32 %v2358_v37 }
 0x974   :  { %5051 = vrcp.f32 %v2365_v57 }
 0x97c   :  { %v5048_v2 = vpop.eup %5047 }
 0x97d   :  { %v5050_v15 = vpop.eup %5049  ;;  %v2369_v11 = vmul.f32 %v5048_v2, %v5046_v18 }
 0x97e   :  { %v2368_v30 = vmul.f32 0.0, %v5050_v15  ;;  %v5052_v1 = vpop.eup %5051 }
 0x980   :  { %v6207_v59 = vadd.f32 %v2369_v11, %v2368_v30 }
 0x982   :  { %5053 = vtanh.f32 %v6207_v59 }
 0x98c   :  { %v5054_v49 = vpop.eup %5053 }
 0x98d   :  { %v2372_v33 = vmul.f32 %v5054_v49, %v5052_v1 }
 0x98f   :  { %2373 = vst [vmem:[%s6492_s7] sm:$0xff] %v2372_v33  ;;  %2439 = vmatmul.mubr.f32.vlgmr.msra.gmra.mrb[18].mxu0 %v2372_v33  ;;  %2510 = vmatmul.mubr.f32.vlgmr.msra.gmra.mrb[18].mxu1 %v2372_v33 }
 0x990   :  { %4396 = vmatpush1.bf16.msra.mxu0 %v6047_v39  ;;  %4428 = vmatpush1.bf16.msra.mxu1 %v6050_v55 }
 0x991   :  { %4398 = vmatprep.subr.bf16.mxu0 %v6055_v61  ;;  %4430 = vmatprep.subr.bf16.mxu1 %v6057_v24 }
 0x992   :  { %2609 = vmatprep.mubr.f32.mxu0 %v5242_v0  ;;  %2680 = vmatprep.mubr.f32.mxu1 %v5242_v0 }
 0x994   :  { %4400 = vmatpush1.bf16.msra.mxu0 %v6059_v12  ;;  %4432 = vmatpush1.bf16.msra.mxu1 %v6062_v5 }
 0x995   :  { %4402 = vmatprep.subr.bf16.mxu0 %v6067_v53  ;;  %4434 = vmatprep.subr.bf16.mxu1 %v6069_v3 }
 0x998   :  { %4404 = vmatpush1.bf16.msra.mxu0 %v6071_v6  ;;  %4436 = vmatpush1.bf16.msra.mxu1 %v6074_v16 }
 0x999   :  { %4406 = vmatprep.subr.bf16.mxu0 %v6079_v29  ;;  %4438 = vmatprep.subr.bf16.mxu1 %v6081_v44 }
 0x99c   :  { %4408 = vmatpush1.bf16.msra.mxu0 %v6083_v48  ;;  %4440 = vmatpush1.bf16.msra.mxu1 %v6086_v4 }
 0x99d   :  { %4410 = vmatprep.subr.bf16.mxu0 %v6090_v22  ;;  %4442 = vmatprep.subr.bf16.mxu1 %v6092_v46 }
 0x9a0   :  { %4412 = vmatpush1.bf16.msra.mxu0 %v6095_v27  ;;  %4444 = vmatpush1.bf16.msra.mxu1 %v6099_v38 }
 0x9a1   :  { %4414 = vmatprep.subr.bf16.mxu0 %v6101_v52  ;;  %4446 = vmatprep.subr.bf16.mxu1 %v6103_v7 }
 0x9a4   :  { %4416 = vmatpush1.bf16.msra.mxu0 %v6106_v47  ;;  %4448 = vmatpush1.bf16.msra.mxu1 %v6110_v63 }
 0x9a5   :  { %4418 = vmatprep.subr.bf16.mxu0 %v6112_v10  ;;  %4450 = vmatprep.subr.bf16.mxu1 %v6115_v26 }
 0x9a8   :  { %4420 = vmatpush1.bf16.msra.mxu0 %v6118_v40  ;;  %4452 = vmatpush1.bf16.msra.mxu1 %v6122_v54 }
 0x9a9   :  { %4422 = vmatprep.subr.bf16.mxu0 %v6127_v14  ;;  %4454 = vmatprep.subr.bf16.mxu1 %v6129_v8 }
 0x9ac   :  { %4424 = vmatpush1.bf16.msra.mxu0 %v6131_v17  ;;  %4456 = vmatpush1.bf16.msra.mxu1 %v6134_v41 }
 0x9ad   :  { %4458 = vmatprep.subr.bf16.mxu0 %v6043_v43  ;;  %4490 = vmatprep.subr.bf16.mxu1 %v6045_v51 }
 0xa62   :  { %v2440_v25 = vpop.f32.mrb[18].mxu0  ;;  %v2511_v20 = vpop.f32.mrb[18].mxu1 }
 0xa63   :  { %v4811_v28 = vadd.f32 %v2440_v25, %v6189_v45  ;;  %v2442_v50 = vpop.f32.mrb[19].mxu0  ;;  %v2513_v56 = vpop.f32.mrb[19].mxu1  ;;  %v4827_v36 = vadd.f32 %v2511_v20, %v6204_v34 }
 0xa64   :  { %v4812_v60 = vadd.f32 %v2442_v50, %v6193_v21  ;;  %v4828_v23 = vadd.f32 %v2513_v56, %v6199_v32 }
 0xa65   :  { %v3604_v13 = vmul.f32 -1.442695, %v4811_v28 }
 0xa66   :  { %v3605_v19 = vmul.f32 -1.442695, %v4812_v60  ;;  %v3606_v31 = vmul.f32 -1.442695, %v4828_v23 }
 0xa67   :  { %5055 = vpow2.f32 %v3604_v13 }
 0xa68   :  { %5057 = vpow2.f32 %v3605_v19 }
 0xa69   :  { %5059 = vpow2.f32 %v3606_v31 }
 0xa6a   :  { %5061 = vtanh.f32 %v4827_v36 }
 0xa71   :  { %v5056_v58 = vpop.eup %5055 }
 0xa72   :  { %v5058_v62 = vpop.eup %5057  ;;  %v2523_v35 = vadd.f32 1.0, %v5056_v58 }
 0xa73   :  { %v2529_v9 = vadd.f32 1.0, %v5058_v62  ;;  %v5060_v37 = vpop.eup %5059 }
 0xa74   :  { %5063 = vrcp.f32 %v2523_v35  ;;  %v5062_v42 = vpop.eup %5061  ;;  %v2536_v11 = vadd.f32 1.0, %v5060_v37 }
 0xa75   :  { %5065 = vrcp.f32 %v2529_v9 }
 0xa76   :  { %5067 = vrcp.f32 %v2536_v11 }
 0xa7e   :  { %v5064_v18 = vpop.eup %5063 }
 0xa7f   :  { %v5066_v2 = vpop.eup %5065  ;;  %v2540_v15 = vmul.f32 %v5064_v18, %v5062_v42 }
 0xa80   :  { %v2539_v57 = vmul.f32 %v5066_v2, %v6207_v59  ;;  %v5068_v1 = vpop.eup %5067 }
 0xa82   :  { %v6252_v30 = vadd.f32 %v2540_v15, %v2539_v57 }
 0xa84   :  { %5069 = vtanh.f32 %v6252_v30 }
 0xa8e   :  { %v5070_v49 = vpop.eup %5069 }
 0xa8f   :  { %v2543_v33 = vmul.f32 %v5070_v49, %v5068_v1 }
 0xa91   :  { %2544 = vst [vmem:[%s6492_s7 + $0x8] sm:$0xff] %v2543_v33  ;;  %2610 = vmatmul.mubr.f32.vlgmr.msra.gmra.mrb[20].mxu0 %v2543_v33  ;;  %2681 = vmatmul.mubr.f32.vlgmr.msra.gmra.mrb[20].mxu1 %v2543_v33 }
 0xa92   :  { %4460 = vmatpush1.bf16.msra.mxu0 %v6047_v39  ;;  %4492 = vmatpush1.bf16.msra.mxu1 %v6050_v55 }
 0xa93   :  { %4462 = vmatprep.subr.bf16.mxu0 %v6055_v61  ;;  %4494 = vmatprep.subr.bf16.mxu1 %v6057_v24 }
 0xa94   :  { %2780 = vmatprep.mubr.f32.mxu0 %v5242_v0  ;;  %2851 = vmatprep.mubr.f32.mxu1 %v5242_v0 }
 0xa96   :  { %4464 = vmatpush1.bf16.msra.mxu0 %v6059_v12  ;;  %4496 = vmatpush1.bf16.msra.mxu1 %v6062_v5 }
 0xa97   :  { %4466 = vmatprep.subr.bf16.mxu0 %v6067_v53  ;;  %4498 = vmatprep.subr.bf16.mxu1 %v6069_v3 }
 0xa9a   :  { %4468 = vmatpush1.bf16.msra.mxu0 %v6071_v6  ;;  %4500 = vmatpush1.bf16.msra.mxu1 %v6074_v16 }
 0xa9b   :  { %4470 = vmatprep.subr.bf16.mxu0 %v6079_v29  ;;  %4502 = vmatprep.subr.bf16.mxu1 %v6081_v44 }
 0xa9e   :  { %4472 = vmatpush1.bf16.msra.mxu0 %v6083_v48  ;;  %4504 = vmatpush1.bf16.msra.mxu1 %v6086_v4 }
 0xa9f   :  { %4474 = vmatprep.subr.bf16.mxu0 %v6090_v22  ;;  %4506 = vmatprep.subr.bf16.mxu1 %v6092_v46 }
 0xaa2   :  { %4476 = vmatpush1.bf16.msra.mxu0 %v6095_v27  ;;  %4508 = vmatpush1.bf16.msra.mxu1 %v6099_v38 }
 0xaa3   :  { %4478 = vmatprep.subr.bf16.mxu0 %v6101_v52  ;;  %4510 = vmatprep.subr.bf16.mxu1 %v6103_v7 }
 0xaa6   :  { %4480 = vmatpush1.bf16.msra.mxu0 %v6106_v47  ;;  %4512 = vmatpush1.bf16.msra.mxu1 %v6110_v63 }
 0xaa7   :  { %4482 = vmatprep.subr.bf16.mxu0 %v6112_v10  ;;  %4514 = vmatprep.subr.bf16.mxu1 %v6115_v26 }
 0xaaa   :  { %4484 = vmatpush1.bf16.msra.mxu0 %v6118_v40  ;;  %4516 = vmatpush1.bf16.msra.mxu1 %v6122_v54 }
 0xaab   :  { %4486 = vmatprep.subr.bf16.mxu0 %v6127_v14  ;;  %4518 = vmatprep.subr.bf16.mxu1 %v6129_v8 }
 0xaae   :  { %4488 = vmatpush1.bf16.msra.mxu0 %v6131_v17  ;;  %4520 = vmatpush1.bf16.msra.mxu1 %v6134_v41 }
 0xaaf   :  { %4522 = vmatprep.subr.bf16.mxu0 %v6043_v43  ;;  %4554 = vmatprep.subr.bf16.mxu1 %v6045_v51 }
 0xb64   :  { %v2611_v59 = vpop.f32.mrb[20].mxu0  ;;  %v2682_v25 = vpop.f32.mrb[20].mxu1 }
 0xb65   :  { %v4813_v20 = vadd.f32 %v2611_v59, %v6189_v45  ;;  %v2613_v28 = vpop.f32.mrb[21].mxu0  ;;  %v2684_v50 = vpop.f32.mrb[21].mxu1  ;;  %v4829_v31 = vadd.f32 %v2682_v25, %v6204_v34 }
 0xb66   :  { %v4814_v56 = vadd.f32 %v2613_v28, %v6193_v21  ;;  %v4830_v19 = vadd.f32 %v2684_v50, %v6199_v32 }
 0xb67   :  { %v3607_v60 = vmul.f32 -1.442695, %v4813_v20 }
 0xb68   :  { %v3608_v13 = vmul.f32 -1.442695, %v4814_v56  ;;  %v3609_v23 = vmul.f32 -1.442695, %v4830_v19 }
 0xb69   :  { %5071 = vpow2.f32 %v3607_v60 }
 0xb6a   :  { %5073 = vpow2.f32 %v3608_v13 }
 0xb6b   :  { %5075 = vpow2.f32 %v3609_v23 }
 0xb6c   :  { %5077 = vtanh.f32 %v4829_v31 }
 0xb73   :  { %v5072_v36 = vpop.eup %5071 }
 0xb74   :  { %v5074_v58 = vpop.eup %5073  ;;  %v2694_v62 = vadd.f32 1.0, %v5072_v36 }
 0xb75   :  { %v2700_v35 = vadd.f32 1.0, %v5074_v58  ;;  %v5076_v9 = vpop.eup %5075 }
 0xb76   :  { %5079 = vrcp.f32 %v2694_v62  ;;  %v5078_v37 = vpop.eup %5077  ;;  %v2707_v15 = vadd.f32 1.0, %v5076_v9 }
 0xb77   :  { %5081 = vrcp.f32 %v2700_v35 }
 0xb78   :  { %5083 = vrcp.f32 %v2707_v15 }
 0xb80   :  { %v5080_v42 = vpop.eup %5079 }
 0xb81   :  { %v5082_v18 = vpop.eup %5081  ;;  %v2711_v2 = vmul.f32 %v5080_v42, %v5078_v37 }
 0xb82   :  { %v2710_v11 = vmul.f32 %v5082_v18, %v6252_v30  ;;  %v5084_v1 = vpop.eup %5083 }
 0xb84   :  { %v6297_v57 = vadd.f32 %v2711_v2, %v2710_v11 }
 0xb86   :  { %5085 = vtanh.f32 %v6297_v57 }
 0xb90   :  { %v5086_v49 = vpop.eup %5085 }
 0xb91   :  { %v2714_v33 = vmul.f32 %v5086_v49, %v5084_v1 }
 0xb93   :  { %2715 = vst [vmem:[%s6492_s7 + $0x10] sm:$0xff] %v2714_v33  ;;  %2781 = vmatmul.mubr.f32.vlgmr.msra.gmra.mrb[22].mxu0 %v2714_v33  ;;  %2852 = vmatmul.mubr.f32.vlgmr.msra.gmra.mrb[22].mxu1 %v2714_v33 }
 0xb94   :  { %4524 = vmatpush1.bf16.msra.mxu0 %v6047_v39  ;;  %4556 = vmatpush1.bf16.msra.mxu1 %v6050_v55 }
 0xb95   :  { %4526 = vmatprep.subr.bf16.mxu0 %v6055_v61  ;;  %4558 = vmatprep.subr.bf16.mxu1 %v6057_v24 }
 0xb96   :  { %2951 = vmatprep.mubr.f32.mxu0 %v5242_v0  ;;  %3022 = vmatprep.mubr.f32.mxu1 %v5242_v0 }
 0xb98   :  { %4528 = vmatpush1.bf16.msra.mxu0 %v6059_v12  ;;  %4560 = vmatpush1.bf16.msra.mxu1 %v6062_v5 }
 0xb99   :  { %4530 = vmatprep.subr.bf16.mxu0 %v6067_v53  ;;  %4562 = vmatprep.subr.bf16.mxu1 %v6069_v3 }
 0xb9c   :  { %4532 = vmatpush1.bf16.msra.mxu0 %v6071_v6  ;;  %4564 = vmatpush1.bf16.msra.mxu1 %v6074_v16 }
 0xb9d   :  { %4534 = vmatprep.subr.bf16.mxu0 %v6079_v29  ;;  %4566 = vmatprep.subr.bf16.mxu1 %v6081_v44 }
 0xba0   :  { %4536 = vmatpush1.bf16.msra.mxu0 %v6083_v48  ;;  %4568 = vmatpush1.bf16.msra.mxu1 %v6086_v4 }
 0xba1   :  { %4538 = vmatprep.subr.bf16.mxu0 %v6090_v22  ;;  %4570 = vmatprep.subr.bf16.mxu1 %v6092_v46 }
 0xba4   :  { %4540 = vmatpush1.bf16.msra.mxu0 %v6095_v27  ;;  %4572 = vmatpush1.bf16.msra.mxu1 %v6099_v38 }
 0xba5   :  { %4542 = vmatprep.subr.bf16.mxu0 %v6101_v52  ;;  %4574 = vmatprep.subr.bf16.mxu1 %v6103_v7 }
 0xba8   :  { %4544 = vmatpush1.bf16.msra.mxu0 %v6106_v47  ;;  %4576 = vmatpush1.bf16.msra.mxu1 %v6110_v63 }
 0xba9   :  { %4546 = vmatprep.subr.bf16.mxu0 %v6112_v10  ;;  %4578 = vmatprep.subr.bf16.mxu1 %v6115_v26 }
 0xbac   :  { %4548 = vmatpush1.bf16.msra.mxu0 %v6118_v40  ;;  %4580 = vmatpush1.bf16.msra.mxu1 %v6122_v54 }
 0xbad   :  { %4550 = vmatprep.subr.bf16.mxu0 %v6127_v14  ;;  %4582 = vmatprep.subr.bf16.mxu1 %v6129_v8 }
 0xbb0   :  { %4552 = vmatpush1.bf16.msra.mxu0 %v6131_v17  ;;  %4584 = vmatpush1.bf16.msra.mxu1 %v6134_v41 }
 0xbb1   :  { %4586 = vmatprep.subr.bf16.mxu0 %v6043_v43  ;;  %4618 = vmatprep.subr.bf16.mxu1 %v6045_v51 }
 0xc66   :  { %v2782_v30 = vpop.f32.mrb[22].mxu0  ;;  %v2853_v59 = vpop.f32.mrb[22].mxu1 }
 0xc67   :  { %v4815_v25 = vadd.f32 %v2782_v30, %v6189_v45  ;;  %v2784_v20 = vpop.f32.mrb[23].mxu0  ;;  %v2855_v28 = vpop.f32.mrb[23].mxu1  ;;  %v4831_v23 = vadd.f32 %v2853_v59, %v6204_v34 }
 0xc68   :  { %v4816_v50 = vadd.f32 %v2784_v20, %v6193_v21  ;;  %v4832_v13 = vadd.f32 %v2855_v28, %v6199_v32 }
 0xc69   :  { %v3610_v56 = vmul.f32 -1.442695, %v4815_v25 }
 0xc6a   :  { %v3611_v60 = vmul.f32 -1.442695, %v4816_v50  ;;  %v3612_v19 = vmul.f32 -1.442695, %v4832_v13 }
 0xc6b   :  { %5087 = vpow2.f32 %v3610_v56 }
 0xc6c   :  { %5089 = vpow2.f32 %v3611_v60 }
 0xc6d   :  { %5091 = vpow2.f32 %v3612_v19 }
 0xc6e   :  { %5093 = vtanh.f32 %v4831_v23 }
 0xc75   :  { %v5088_v31 = vpop.eup %5087 }
 0xc76   :  { %v5090_v36 = vpop.eup %5089  ;;  %v2865_v58 = vadd.f32 1.0, %v5088_v31 }
 0xc77   :  { %v2871_v62 = vadd.f32 1.0, %v5090_v36  ;;  %v5092_v35 = vpop.eup %5091 }
 0xc78   :  { %5095 = vrcp.f32 %v2865_v58  ;;  %v5094_v9 = vpop.eup %5093  ;;  %v2878_v2 = vadd.f32 1.0, %v5092_v35 }
 0xc79   :  { %5097 = vrcp.f32 %v2871_v62 }
 0xc7a   :  { %5099 = vrcp.f32 %v2878_v2 }
 0xc82   :  { %v5096_v37 = vpop.eup %5095 }
 0xc83   :  { %v5098_v42 = vpop.eup %5097  ;;  %v2882_v18 = vmul.f32 %v5096_v37, %v5094_v9 }
 0xc84   :  { %v2881_v15 = vmul.f32 %v5098_v42, %v6297_v57  ;;  %v5100_v1 = vpop.eup %5099 }
 0xc86   :  { %v6342_v11 = vadd.f32 %v2882_v18, %v2881_v15 }
 0xc88   :  { %5101 = vtanh.f32 %v6342_v11 }
 0xc92   :  { %v5102_v49 = vpop.eup %5101 }
 0xc93   :  { %v2885_v33 = vmul.f32 %v5102_v49, %v5100_v1 }
 0xc95   :  { %2886 = vst [vmem:[%s6492_s7 + $0x18] sm:$0xff] %v2885_v33  ;;  %2952 = vmatmul.mubr.f32.vlgmr.msra.gmra.mrb[24].mxu0 %v2885_v33  ;;  %3023 = vmatmul.mubr.f32.vlgmr.msra.gmra.mrb[24].mxu1 %v2885_v33 }
 0xc96   :  { %4588 = vmatpush1.bf16.msra.mxu0 %v6047_v39  ;;  %4620 = vmatpush1.bf16.msra.mxu1 %v6050_v55 }
 0xc97   :  { %4590 = vmatprep.subr.bf16.mxu0 %v6055_v61  ;;  %4622 = vmatprep.subr.bf16.mxu1 %v6057_v24 }
 0xc98   :  { %3122 = vmatprep.mubr.f32.mxu0 %v5242_v0  ;;  %3193 = vmatprep.mubr.f32.mxu1 %v5242_v0 }
 0xc9a   :  { %4592 = vmatpush1.bf16.msra.mxu0 %v6059_v12  ;;  %4624 = vmatpush1.bf16.msra.mxu1 %v6062_v5 }
 0xc9b   :  { %4594 = vmatprep.subr.bf16.mxu0 %v6067_v53  ;;  %4626 = vmatprep.subr.bf16.mxu1 %v6069_v3 }
 0xc9e   :  { %4596 = vmatpush1.bf16.msra.mxu0 %v6071_v6  ;;  %4628 = vmatpush1.bf16.msra.mxu1 %v6074_v16 }
 0xc9f   :  { %4598 = vmatprep.subr.bf16.mxu0 %v6079_v29  ;;  %4630 = vmatprep.subr.bf16.mxu1 %v6081_v44 }
 0xca2   :  { %4600 = vmatpush1.bf16.msra.mxu0 %v6083_v48  ;;  %4632 = vmatpush1.bf16.msra.mxu1 %v6086_v4 }
 0xca3   :  { %4602 = vmatprep.subr.bf16.mxu0 %v6090_v22  ;;  %4634 = vmatprep.subr.bf16.mxu1 %v6092_v46 }
 0xca6   :  { %4604 = vmatpush1.bf16.msra.mxu0 %v6095_v27  ;;  %4636 = vmatpush1.bf16.msra.mxu1 %v6099_v38 }
 0xca7   :  { %4606 = vmatprep.subr.bf16.mxu0 %v6101_v52  ;;  %4638 = vmatprep.subr.bf16.mxu1 %v6103_v7 }
 0xcaa   :  { %4608 = vmatpush1.bf16.msra.mxu0 %v6106_v47  ;;  %4640 = vmatpush1.bf16.msra.mxu1 %v6110_v63 }
 0xcab   :  { %4610 = vmatprep.subr.bf16.mxu0 %v6112_v10  ;;  %4642 = vmatprep.subr.bf16.mxu1 %v6115_v26 }
 0xcae   :  { %4612 = vmatpush1.bf16.msra.mxu0 %v6118_v40  ;;  %4644 = vmatpush1.bf16.msra.mxu1 %v6122_v54 }
 0xcaf   :  { %4614 = vmatprep.subr.bf16.mxu0 %v6127_v14  ;;  %4646 = vmatprep.subr.bf16.mxu1 %v6129_v8 }
 0xcb2   :  { %4616 = vmatpush1.bf16.msra.mxu0 %v6131_v17  ;;  %4648 = vmatpush1.bf16.msra.mxu1 %v6134_v41 }
 0xcb3   :  { %4650 = vmatprep.subr.bf16.mxu0 %v6043_v43  ;;  %4682 = vmatprep.subr.bf16.mxu1 %v6045_v51 }
 0xd68   :  { %v2953_v57 = vpop.f32.mrb[24].mxu0  ;;  %v3024_v30 = vpop.f32.mrb[24].mxu1 }
 0xd69   :  { %v4817_v59 = vadd.f32 %v2953_v57, %v6189_v45  ;;  %v2955_v25 = vpop.f32.mrb[25].mxu0  ;;  %v3026_v20 = vpop.f32.mrb[25].mxu1  ;;  %v4833_v19 = vadd.f32 %v3024_v30, %v6204_v34 }
 0xd6a   :  { %v4818_v28 = vadd.f32 %v2955_v25, %v6193_v21  ;;  %v4834_v60 = vadd.f32 %v3026_v20, %v6199_v32 }
 0xd6b   :  { %v3613_v50 = vmul.f32 -1.442695, %v4817_v59 }
 0xd6c   :  { %v3614_v56 = vmul.f32 -1.442695, %v4818_v28  ;;  %v3615_v13 = vmul.f32 -1.442695, %v4834_v60 }
 0xd6d   :  { %5103 = vpow2.f32 %v3613_v50 }
 0xd6e   :  { %5105 = vpow2.f32 %v3614_v56 }
 0xd6f   :  { %5107 = vpow2.f32 %v3615_v13 }
 0xd70   :  { %5109 = vtanh.f32 %v4833_v19 }
 0xd77   :  { %v5104_v23 = vpop.eup %5103 }
 0xd78   :  { %v5106_v31 = vpop.eup %5105  ;;  %v3036_v36 = vadd.f32 1.0, %v5104_v23 }
 0xd79   :  { %v3042_v58 = vadd.f32 1.0, %v5106_v31  ;;  %v5108_v62 = vpop.eup %5107 }
 0xd7a   :  { %5111 = vrcp.f32 %v3036_v36  ;;  %v5110_v35 = vpop.eup %5109  ;;  %v3049_v18 = vadd.f32 1.0, %v5108_v62 }
 0xd7b   :  { %5113 = vrcp.f32 %v3042_v58 }
 0xd7c   :  { %5115 = vrcp.f32 %v3049_v18 }
 0xd84   :  { %v5112_v9 = vpop.eup %5111 }
 0xd85   :  { %v5114_v37 = vpop.eup %5113  ;;  %v3053_v42 = vmul.f32 %v5112_v9, %v5110_v35 }
 0xd86   :  { %v3052_v2 = vmul.f32 %v5114_v37, %v6342_v11  ;;  %v5116_v1 = vpop.eup %5115 }
 0xd88   :  { %v6387_v15 = vadd.f32 %v3053_v42, %v3052_v2 }
 0xd8a   :  { %5117 = vtanh.f32 %v6387_v15 }
 0xd94   :  { %v5118_v49 = vpop.eup %5117 }
 0xd95   :  { %v3056_v33 = vmul.f32 %v5118_v49, %v5116_v1 }
 0xd97   :  { %3057 = vst [vmem:[%s6492_s7 + $0x20] sm:$0xff] %v3056_v33  ;;  %3123 = vmatmul.mubr.f32.vlgmr.msra.gmra.mrb[26].mxu0 %v3056_v33  ;;  %3194 = vmatmul.mubr.f32.vlgmr.msra.gmra.mrb[26].mxu1 %v3056_v33 }
 0xd98   :  { %4652 = vmatpush1.bf16.msra.mxu0 %v6047_v39  ;;  %4684 = vmatpush1.bf16.msra.mxu1 %v6050_v55 }
 0xd99   :  { %4654 = vmatprep.subr.bf16.mxu0 %v6055_v61  ;;  %4686 = vmatprep.subr.bf16.mxu1 %v6057_v24 }
 0xd9a   :  { %3293 = vmatprep.mubr.f32.mxu0 %v5242_v0  ;;  %3364 = vmatprep.mubr.f32.mxu1 %v5242_v0 }
 0xd9c   :  { %4656 = vmatpush1.bf16.msra.mxu0 %v6059_v12  ;;  %4688 = vmatpush1.bf16.msra.mxu1 %v6062_v5 }
 0xd9d   :  { %4658 = vmatprep.subr.bf16.mxu0 %v6067_v53  ;;  %4690 = vmatprep.subr.bf16.mxu1 %v6069_v3 }
 0xda0   :  { %4660 = vmatpush1.bf16.msra.mxu0 %v6071_v6  ;;  %4692 = vmatpush1.bf16.msra.mxu1 %v6074_v16 }
 0xda1   :  { %4662 = vmatprep.subr.bf16.mxu0 %v6079_v29  ;;  %4694 = vmatprep.subr.bf16.mxu1 %v6081_v44 }
 0xda4   :  { %4664 = vmatpush1.bf16.msra.mxu0 %v6083_v48  ;;  %4696 = vmatpush1.bf16.msra.mxu1 %v6086_v4 }
 0xda5   :  { %4666 = vmatprep.subr.bf16.mxu0 %v6090_v22  ;;  %4698 = vmatprep.subr.bf16.mxu1 %v6092_v46 }
 0xda8   :  { %4668 = vmatpush1.bf16.msra.mxu0 %v6095_v27  ;;  %4700 = vmatpush1.bf16.msra.mxu1 %v6099_v38 }
 0xda9   :  { %4670 = vmatprep.subr.bf16.mxu0 %v6101_v52  ;;  %4702 = vmatprep.subr.bf16.mxu1 %v6103_v7 }
 0xdac   :  { %4672 = vmatpush1.bf16.msra.mxu0 %v6106_v47  ;;  %4704 = vmatpush1.bf16.msra.mxu1 %v6110_v63 }
 0xdad   :  { %4674 = vmatprep.subr.bf16.mxu0 %v6112_v10  ;;  %4706 = vmatprep.subr.bf16.mxu1 %v6115_v26 }
 0xdb0   :  { %4676 = vmatpush1.bf16.msra.mxu0 %v6118_v40  ;;  %4708 = vmatpush1.bf16.msra.mxu1 %v6122_v54 }
 0xdb1   :  { %4678 = vmatprep.subr.bf16.mxu0 %v6127_v14  ;;  %4710 = vmatprep.subr.bf16.mxu1 %v6129_v8 }
 0xdb4   :  { %4680 = vmatpush1.bf16.msra.mxu0 %v6131_v17  ;;  %4712 = vmatpush1.bf16.msra.mxu1 %v6134_v41 }
 0xdb5   :  { %4714 = vmatprep.subr.bf16.mxu0 %v6043_v43  ;;  %4746 = vmatprep.subr.bf16.mxu1 %v6045_v51 }
 0xe6a   :  { %v3124_v11 = vpop.f32.mrb[26].mxu0  ;;  %v3195_v57 = vpop.f32.mrb[26].mxu1 }
 0xe6b   :  { %v4819_v30 = vadd.f32 %v3124_v11, %v6189_v45  ;;  %v3126_v59 = vpop.f32.mrb[27].mxu0  ;;  %v3197_v25 = vpop.f32.mrb[27].mxu1  ;;  %v4835_v13 = vadd.f32 %v3195_v57, %v6204_v34 }
 0xe6c   :  { %v4820_v20 = vadd.f32 %v3126_v59, %v6193_v21  ;;  %v4836_v56 = vadd.f32 %v3197_v25, %v6199_v32 }
 0xe6d   :  { %v3616_v28 = vmul.f32 -1.442695, %v4819_v30 }
 0xe6e   :  { %v3617_v50 = vmul.f32 -1.442695, %v4820_v20  ;;  %v3618_v60 = vmul.f32 -1.442695, %v4836_v56 }
 0xe6f   :  { %5119 = vpow2.f32 %v3616_v28 }
 0xe70   :  { %5121 = vpow2.f32 %v3617_v50 }
 0xe71   :  { %5123 = vpow2.f32 %v3618_v60 }
 0xe72   :  { %5125 = vtanh.f32 %v4835_v13 }
 0xe79   :  { %v5120_v43 = vpop.eup %5119 }
 0xe7a   :  { %v5122_v19 = vpop.eup %5121  ;;  %v3207_v51 = vadd.f32 1.0, %v5120_v43 }
 0xe7b   :  { %v3213_v23 = vadd.f32 1.0, %v5122_v19  ;;  %v5124_v31 = vpop.eup %5123 }
 0xe7c   :  { %5127 = vrcp.f32 %v3207_v51  ;;  %v5126_v36 = vpop.eup %5125  ;;  %v3220_v9 = vadd.f32 1.0, %v5124_v31 }
 0xe7d   :  { %5129 = vrcp.f32 %v3213_v23 }
 0xe7e   :  { %5131 = vrcp.f32 %v3220_v9 }
 0xe86   :  { %v5128_v58 = vpop.eup %5127 }
 0xe87   :  { %v5130_v62 = vpop.eup %5129  ;;  %v3224_v35 = vmul.f32 %v5128_v58, %v5126_v36 }
 0xe88   :  { %v3223_v37 = vmul.f32 %v5130_v62, %v6387_v15  ;;  %v5132_v18 = vpop.eup %5131 }
 0xe8a   :  { %v6432_v42 = vadd.f32 %v3224_v35, %v3223_v37 }
 0xe8c   :  { %5133 = vtanh.f32 %v6432_v42 }
 0xe96   :  { %v5134_v2 = vpop.eup %5133 }
 0xe97   :  { %v3227_v1 = vmul.f32 %v5134_v2, %v5132_v18 }
 0xe99   :  { %3228 = vst [vmem:[%s6492_s7 + $0x28] sm:$0xff] %v3227_v1  ;;  %3294 = vmatmul.mubr.f32.vlgmr.msra.gmra.mrb[28].mxu0 %v3227_v1  ;;  %3365 = vmatmul.mubr.f32.vlgmr.msra.gmra.mrb[28].mxu1 %v3227_v1 }
 0xe9a   :  { %4716 = vmatpush1.bf16.msra.mxu0 %v6047_v39  ;;  %4748 = vmatpush1.bf16.msra.mxu1 %v6050_v55 }
 0xe9b   :  { %4718 = vmatprep.subr.bf16.mxu0 %v6055_v61  ;;  %4750 = vmatprep.subr.bf16.mxu1 %v6057_v24 }
 0xe9c   :  { %3464 = vmatprep.mubr.f32.mxu0 %v5242_v0  ;;  %3535 = vmatprep.mubr.f32.mxu1 %v5242_v0 }
 0xe9e   :  { %4720 = vmatpush1.bf16.msra.mxu0 %v6059_v12  ;;  %4752 = vmatpush1.bf16.msra.mxu1 %v6062_v5 }
 0xe9f   :  { %4722 = vmatprep.subr.bf16.mxu0 %v6067_v53  ;;  %4754 = vmatprep.subr.bf16.mxu1 %v6069_v3 }
 0xea2   :  { %4724 = vmatpush1.bf16.msra.mxu0 %v6071_v6  ;;  %4756 = vmatpush1.bf16.msra.mxu1 %v6074_v16 }
 0xea3   :  { %4726 = vmatprep.subr.bf16.mxu0 %v6079_v29  ;;  %4758 = vmatprep.subr.bf16.mxu1 %v6081_v44 }
 0xea6   :  { %4728 = vmatpush1.bf16.msra.mxu0 %v6083_v48  ;;  %4760 = vmatpush1.bf16.msra.mxu1 %v6086_v4 }
 0xea7   :  { %4730 = vmatprep.subr.bf16.mxu0 %v6090_v22  ;;  %4762 = vmatprep.subr.bf16.mxu1 %v6092_v46 }
 0xeaa   :  { %4732 = vmatpush1.bf16.msra.mxu0 %v6095_v27  ;;  %4764 = vmatpush1.bf16.msra.mxu1 %v6099_v38 }
 0xeab   :  { %4734 = vmatprep.subr.bf16.mxu0 %v6101_v52  ;;  %4766 = vmatprep.subr.bf16.mxu1 %v6103_v7 }
 0xeae   :  { %4736 = vmatpush1.bf16.msra.mxu0 %v6106_v47  ;;  %4768 = vmatpush1.bf16.msra.mxu1 %v6110_v63 }
 0xeaf   :  { %4738 = vmatprep.subr.bf16.mxu0 %v6112_v10  ;;  %4770 = vmatprep.subr.bf16.mxu1 %v6115_v26 }
 0xeb2   :  { %4740 = vmatpush1.bf16.msra.mxu0 %v6118_v40  ;;  %4772 = vmatpush1.bf16.msra.mxu1 %v6122_v54 }
 0xeb3   :  { %4742 = vmatprep.subr.bf16.mxu0 %v6127_v14  ;;  %4774 = vmatprep.subr.bf16.mxu1 %v6129_v8 }
 0xeb6   :  { %4744 = vmatpush1.bf16.msra.mxu0 %v6131_v17  ;;  %4776 = vmatpush1.bf16.msra.mxu1 %v6134_v41 }
 0xf6c   :  { %v3295_v0 = vpop.f32.mrb[28].mxu0  ;;  %v3366_v39 = vpop.f32.mrb[28].mxu1 }
 0xf6d   :  { %v4821_v55 = vadd.f32 %v3295_v0, %v6189_v45  ;;  %v3297_v61 = vpop.f32.mrb[29].mxu0  ;;  %v3368_v24 = vpop.f32.mrb[29].mxu1  ;;  %v4837_v16 = vadd.f32 %v3366_v39, %v6204_v34 }
 0xf6e   :  { %v4822_v12 = vadd.f32 %v3297_v61, %v6193_v21  ;;  %v4838_v3 = vadd.f32 %v3368_v24, %v6199_v32 }
 0xf6f   :  { %v3619_v5 = vmul.f32 -1.442695, %v4821_v55 }
 0xf70   :  { %v3620_v53 = vmul.f32 -1.442695, %v4822_v12  ;;  %v3621_v6 = vmul.f32 -1.442695, %v4838_v3 }
 0xf71   :  { %5135 = vpow2.f32 %v3619_v5 }
 0xf72   :  { %5137 = vpow2.f32 %v3620_v53 }
 0xf73   :  { %5139 = vpow2.f32 %v3621_v6 }
 0xf74   :  { %5141 = vtanh.f32 %v4837_v16 }
 0xf7b   :  { %v5136_v29 = vpop.eup %5135 }
 0xf7c   :  { %v5138_v44 = vpop.eup %5137  ;;  %v3378_v48 = vadd.f32 1.0, %v5136_v29 }
 0xf7d   :  { %v3384_v4 = vadd.f32 1.0, %v5138_v44  ;;  %v5140_v22 = vpop.eup %5139 }
 0xf7e   :  { %5143 = vrcp.f32 %v3378_v48  ;;  %v5142_v46 = vpop.eup %5141  ;;  %v3391_v7 = vadd.f32 1.0, %v5140_v22 }
 0xf7f   :  { %5145 = vrcp.f32 %v3384_v4 }
 0xf80   :  { %5147 = vrcp.f32 %v3391_v7 }
 0xf88   :  { %v5144_v27 = vpop.eup %5143 }
 0xf89   :  { %v5146_v38 = vpop.eup %5145  ;;  %v3395_v52 = vmul.f32 %v5144_v27, %v5142_v46 }
 0xf8a   :  { %v3394_v47 = vmul.f32 %v5146_v38, %v6432_v42  ;;  %v5148_v10 = vpop.eup %5147 }
 0xf8c   :  { %v3396_v63 = vadd.f32 %v3395_v52, %v3394_v47 }
 0xf8e   :  { %5149 = vtanh.f32 %v3396_v63 }
 0xf98   :  { %v5150_v26 = vpop.eup %5149 }
 0xf99   :  { %v3398_v40 = vmul.f32 %v5150_v26, %v5148_v10 }
 0xf9b   :  { %3399 = vst [vmem:[%s6492_s7 + $0x30] sm:$0xff] %v3398_v40  ;;  %3465 = vmatmul.mubr.f32.vlgmr.msra.gmra.mrb[30].mxu0 %v3398_v40  ;;  %3536 = vmatmul.mubr.f32.vlgmr.msra.gmra.mrb[30].mxu1 %v3398_v40 }
0x106e   :  { %v3466_v54 = vpop.f32.mrb[30].mxu0  ;;  %v3537_v14 = vpop.f32.mrb[30].mxu1 }
0x106f   :  { %v4823_v8 = vadd.f32 %v3466_v54, %v6189_v45  ;;  %v3468_v17 = vpop.f32.mrb[31].mxu0  ;;  %v3539_v41 = vpop.f32.mrb[31].mxu1  ;;  %v4839_v30 = vadd.f32 %v3537_v14, %v6204_v34 }
0x1070   :  { %v4824_v15 = vadd.f32 %v3468_v17, %v6193_v21  ;;  %v4840_v11 = vadd.f32 %v3539_v41, %v6199_v32 }
0x1071   :  { %v3622_v49 = vmul.f32 -1.442695, %v4823_v8 }
0x1072   :  { %v3623_v33 = vmul.f32 -1.442695, %v4824_v15  ;;  %v3624_v57 = vmul.f32 -1.442695, %v4840_v11 }
0x1073   :  { %5151 = vpow2.f32 %v3622_v49 }
0x1074   :  { %5153 = vpow2.f32 %v3623_v33 }
0x1075   :  { %5155 = vpow2.f32 %v3624_v57 }
0x1076   :  { %5157 = vtanh.f32 %v4839_v30 }
0x107d   :  { %v5152_v59 = vpop.eup %5151 }
0x107e   :  { %v5154_v25 = vpop.eup %5153  ;;  %v3549_v20 = vadd.f32 1.0, %v5152_v59 }
0x107f   :  { %v3555_v28 = vadd.f32 1.0, %v5154_v25  ;;  %v5156_v45 = vpop.eup %5155 }
0x1080   :  { %5159 = vrcp.f32 %v3549_v20  ;;  %v5158_v50 = vpop.eup %5157  ;;  %v3562_v13 = vadd.f32 1.0, %v5156_v45 }
0x1081   :  { %5161 = vrcp.f32 %v3555_v28 }
0x1082   :  { %5163 = vrcp.f32 %v3562_v13 }
0x108a   :  { %v5160_v21 = vpop.eup %5159 }
0x108b   :  { %v5162_v56 = vpop.eup %5161  ;;  %v3566_v60 = vmul.f32 %v5160_v21, %v5158_v50 }
0x108c   :  { %v3565_v43 = vmul.f32 %v5162_v56, %v3396_v63  ;;  %v5164_v32 = vpop.eup %5163 }
0x108e   :  { %v3567_v19 = vadd.f32 %v3566_v60, %v3565_v43 }
0x1090   :  { %5165 = vtanh.f32 %v3567_v19 }
0x109a   :  { %v5166_v34 = vpop.eup %5165 }
0x109b   :  { %v3569_v51 = vmul.f32 %v5166_v34, %v5164_v32 }
0x109d   :  { %3570 = vst [vmem:[%s6492_s7 + $0x38] sm:$0xff] %v3569_v51 }
0x109e   :  { %3575 = vsyncpa [#allocation4], 1 }
0x109f   :  { %3576 = vsyncpa [#allocation6], 1 }

</bundles_post_ra>
